<compile_context>
chip_gen: v6e
topology: v6e:2x2x1
jax: 0.10.0
libtpu: 0.0.40
codegen_flags: <defaults>
</compile_context>

<pallas_src>
import jax
import jax.numpy as jnp
from jax import lax
from jax.experimental import pallas as pl
from jax.experimental.pallas import tpu as pltpu

LANE = 128
SUBLANE = 8


def _round_up(n, m):
    return ((n + m - 1) // m) * m


# ----------------------------- Pallas kernel -----------------------------

def make_gru_kernel(T, B_pad, H_pad, O_pad):
    HP2 = 2 * H_pad
    HP3 = 3 * H_pad

    def kernel(x_ref, w_ih_ref, w_hh_ref, b_x_ref, b_hn_ref,
               w_lin_ref, b_lin_ref, out_ref, states_ref, gx_ref):
        # x_ref:      (T*B_pad, C_pad)   time-major rows, row = t*B_pad + b
        # w_ih_ref:   (C_pad, 3*H_pad)   gate slots r|z|n, each 128 lanes
        # w_hh_ref:   (H_pad, 3*H_pad)
        # b_x_ref:    (1, 3*H_pad)       [b_ir+b_hr | b_iz+b_hz | b_in] per slot
        # b_hn_ref:   (1, H_pad)
        # w_lin_ref:  (H_pad, O_pad)
        # b_lin_ref:  (1, O_pad)
        # out_ref:    (T*B_pad, O_pad)
        # states_ref: (T*B_pad, H_pad)
        # gx_ref:     (T*B_pad, 3*H_pad) f32 scratch — hoisted input projections

        # ---- hoisted input projection (independent of h, off the serial chain)
        gx_ref[...] = (jnp.dot(x_ref[...].astype(jnp.float32), w_ih_ref[...],
                               preferred_element_type=jnp.float32)
                       + b_x_ref[...])                                # (T*B_pad, 3*H_pad)

        # Identical RHS for all T recurrent matmuls — load once, let the
        # compiler hoist the MXU weight push out of the unrolled loop.
        w_hh = w_hh_ref[...]                                          # (H_pad, 3*H_pad)
        # Hoisted broadcast (JAX does not CSE broadcast_in_dim).
        b_hn_b = jnp.broadcast_to(b_hn_ref[...], (B_pad, H_pad))      # (B_pad, H_pad)

        # ---- serial GRU recurrence, fully unrolled (static, 128-aligned slices)
        h = jnp.zeros((B_pad, H_pad), jnp.float32)
        for t in range(T):
            r0 = t * B_pad
            gx_t = gx_ref[r0:r0 + B_pad, :]                           # (B_pad, 3*H_pad)
            gh = jnp.dot(h, w_hh, preferred_element_type=jnp.float32) # (B_pad, 3*H_pad)
            rz = jax.nn.sigmoid(gx_t[:, :HP2] + gh[:, :HP2])          # r|z, one EUP pass
            r = rz[:, :H_pad]
            z = rz[:, H_pad:HP2]
            n = jnp.tanh(gx_t[:, HP2:HP3] + r * (gh[:, HP2:HP3] + b_hn_b))
            h = (1.0 - z) * n + z * h                                 # (B_pad, H_pad)
            # Unmasked lane-dense store (H padded to 128, B padded to 8 sublanes).
            states_ref[r0:r0 + B_pad, :] = h.astype(states_ref.dtype)

        # ---- hoisted output Linear + residual (one matmul, one dense store) ----
        y = (jnp.dot(states_ref[...].astype(jnp.float32), w_lin_ref[...],
                     preferred_element_type=jnp.float32)
             + b_lin_ref[...])                                        # (T*B_pad, O_pad)
        # Residual lane re-read here (x not kept live across the recurrence).
        resid = x_ref[:, 0:1].astype(jnp.float32)                     # (T*B_pad, 1)
        out_ref[...] = (y + resid).astype(out_ref.dtype)

    return kernel


# ----------------------------- Wrapper -----------------------------

def audio_rnn_forward(x, params):
    """Forward pass matching AudioRNN(cell_type='gru', residual_connection=True)."""
    ndim = x.ndim
    if ndim == 2:
        x = x[:, :, None]                                             # (B, T) -> (B, T, 1)
    B, T, C = x.shape
    H, O = params["H"], params["O"]
    H_pad, C_pad, O_pad = params["H_pad"], params["C_pad"], params["O_pad"]
    B_pad = max(SUBLANE, _round_up(B, SUBLANE))

    # Time-major, zero-padded, flattened 2-D slab: row = t*B_pad + b,
    # B on sublanes, channels on lanes (layout plumbing in XLA, cheap).
    x_tm = jnp.transpose(x, (1, 0, 2)).astype(jnp.float32)            # (T, B, C)
    x_pad = jnp.zeros((T, B_pad, C_pad), jnp.float32).at[:, :B, :C].set(x_tm)
    x2d = x_pad.reshape(T * B_pad, C_pad)

    out2d, states2d = pl.pallas_call(
        make_gru_kernel(T, B_pad, H_pad, O_pad),
        out_shape=(
            jax.ShapeDtypeStruct((T * B_pad, O_pad), jnp.float32),
            jax.ShapeDtypeStruct((T * B_pad, H_pad), jnp.float32),
        ),
        in_specs=[pl.BlockSpec(memory_space=pltpu.MemorySpace.VMEM)] * 7,
        out_specs=(
            pl.BlockSpec(memory_space=pltpu.MemorySpace.VMEM),
            pl.BlockSpec(memory_space=pltpu.MemorySpace.VMEM),
        ),
        scratch_shapes=[pltpu.VMEM((T * B_pad, 3 * H_pad), jnp.float32)],
    )(x2d, params["w_ih"], params["w_hh"], params["b_x"], params["b_hn"],
      params["w_lin"], params["b_lin"])

    # Strip padding, back to batch-major.
    out = jnp.transpose(out2d.reshape(T, B_pad, O_pad)[:, :B, :O], (1, 0, 2))
    states = jnp.transpose(states2d.reshape(T, B_pad, H_pad)[:, :B, :H], (1, 0, 2))
    out = out.astype(x.dtype)
    states = states.astype(x.dtype)
    if ndim == 2:
        out = out[:, :, 0]
    return out, states


# ----------------------------- Parameter init / packing -----------------------------

def pack_params(tp):
    """Convert PyTorch-layout GRU/Linear params to the padded, lane-dense kernel layout."""
    H = tp["weight_hh"].shape[1]
    C = tp["weight_ih"].shape[1]
    O = tp["weight_lin"].shape[0]
    H_pad = _round_up(H, LANE)
    C_pad = _round_up(C, LANE)
    O_pad = _round_up(O, LANE)
    b_ih, b_hh = tp["bias_ih"], tp["bias_hh"]

    w_ih_t = jnp.transpose(tp["weight_ih"])                           # (C, 3H), gates r|z|n
    w_hh_t = jnp.transpose(tp["weight_hh"])                           # (H, 3H)

    def pad_gate_cols(w, rows, rows_pad):
        out = jnp.zeros((rows_pad, 3 * H_pad), jnp.float32)
        for g in range(3):
            out = out.at[:rows, g * H_pad:g * H_pad + H].set(w[:, g * H:(g + 1) * H])
        return out

    b_x = jnp.zeros((1, 3 * H_pad), jnp.float32)
    b_x = b_x.at[0, 0:H].set(b_ih[:H] + b_hh[:H])                       # r
    b_x = b_x.at[0, H_pad:H_pad + H].set(b_ih[H:2 * H] + b_hh[H:2 * H]) # z
    b_x = b_x.at[0, 2 * H_pad:2 * H_pad + H].set(b_ih[2 * H:])          # n (input bias)

    return {
        "w_ih": pad_gate_cols(w_ih_t, C, C_pad),                        # (C_pad, 3*H_pad)
        "w_hh": pad_gate_cols(w_hh_t, H, H_pad),                        # (H_pad, 3*H_pad)
        "b_x": b_x,                                                     # (1, 3*H_pad)
        "b_hn": jnp.zeros((1, H_pad), jnp.float32).at[0, :H].set(b_hh[2 * H:]),
        "w_lin": jnp.zeros((H_pad, O_pad), jnp.float32)
                   .at[:H, :O].set(jnp.transpose(tp["weight_lin"])),    # (H_pad, O_pad)
        "b_lin": jnp.zeros((1, O_pad), jnp.float32).at[0, :O].set(tp["bias_lin"]),
        "H": H, "C": C, "O": O,
        "H_pad": H_pad, "C_pad": C_pad, "O_pad": O_pad,
    }


def init_params(key, in_channels, hidden_size, out_channels):
    """PyTorch-style shapes, uniform(-1/sqrt(H), 1/sqrt(H))."""
    C, H, O = in_channels, hidden_size, out_channels
    k = 1.0 / jnp.sqrt(jnp.float32(H))
    keys = jax.random.split(key, 6)
    torch_params = {
        "weight_ih": jax.random.uniform(keys[0], (3 * H, C), jnp.float32, -k, k),
        "weight_hh": jax.random.uniform(keys[1], (3 * H, H), jnp.float32, -k, k),
        "bias_ih":   jax.random.uniform(keys[2], (3 * H,), jnp.float32, -k, k),
        "bias_hh":   jax.random.uniform(keys[3], (3 * H,), jnp.float32, -k, k),
        "weight_lin": jax.random.uniform(keys[4], (O, H), jnp.float32, -k, k),
        "bias_lin":   jax.random.uniform(keys[5], (O,), jnp.float32, -k, k),
    }
    return torch_params, pack_params(torch_params)


# ----------------------------- Pure-JAX reference (PyTorch equations) -----------------------------

def audio_rnn_reference(x, tp):
    ndim = x.ndim
    if ndim == 2:
        x = x[:, :, None]
    B, T, C = x.shape
    H = tp["weight_hh"].shape[1]
    w_ih, w_hh = tp["weight_ih"], tp["weight_hh"]
    b_ih, b_hh = tp["bias_ih"], tp["bias_hh"]
    w_ir, w_iz, w_in = w_ih[:H], w_ih[H:2 * H], w_ih[2 * H:]
    w_hr, w_hz, w_hn = w_hh[:H], w_hh[H:2 * H], w_hh[2 * H:]
    b_ir, b_iz, b_in = b_ih[:H], b_ih[H:2 * H], b_ih[2 * H:]
    b_hr, b_hz, b_hn = b_hh[:H], b_hh[H:2 * H], b_hh[2 * H:]

    def step(h, x_t):
        r = jax.nn.sigmoid(x_t @ w_ir.T + b_ir + h @ w_hr.T + b_hr)
        z = jax.nn.sigmoid(x_t @ w_iz.T + b_iz + h @ w_hz.T + b_hz)
        n = jnp.tanh(x_t @ w_in.T + b_in + r * (h @ w_hn.T + b_hn))
        h_new = (1.0 - z) * n + z * h
        return h_new, h_new

    h0 = jnp.zeros((B, H), jnp.float32)
    _, states_tm = lax.scan(step, h0, jnp.transpose(x, (1, 0, 2)))
    states = jnp.transpose(states_tm, (1, 0, 2))
    out = states @ tp["weight_lin"].T + tp["bias_lin"]
    out = out + x[..., 0:1]
    if ndim == 2:
        out = out[..., 0]
    return out, states


# ----------------------------- Main -----------------------------

if __name__ == "__main__":
    B, T, C, H, O = 2, 16, 1, 32, 1   # batch=2, seq=16, in_channels=1, hidden=32, out=1

    key = jax.random.PRNGKey(0)
    torch_params, kernel_params = init_params(key, C, H, O)
    x = jax.random.normal(jax.random.fold_in(key, 99), (B, T), dtype=jnp.float32)

    out, states = audio_rnn_forward(x, kernel_params)
    out, states = jax.block_until_ready((out, states))

    out_r, states_r = audio_rnn_reference(x, torch_params)
    assert out.shape == (B, T) and states.shape == (B, T, H)
    assert jnp.allclose(out, out_r, atol=1e-4, rtol=1e-4), "output mismatch vs reference"
    assert jnp.allclose(states, states_r, atol=1e-4, rtol=1e-4), "states mismatch vs reference"

    print("KERNEL_OK")
</pallas_src>

<mosaic_0001>
module attributes {stable_mosaic.version = 11 : i64} {
  func.func @kernel(%arg0: memref<128x128xf32, #tpu.memory_space<vmem>>, %arg1: memref<128x384xf32, #tpu.memory_space<vmem>>, %arg2: memref<128x384xf32, #tpu.memory_space<vmem>>, %arg3: memref<1x384xf32, #tpu.memory_space<vmem>>, %arg4: memref<1x128xf32, #tpu.memory_space<vmem>>, %arg5: memref<128x128xf32, #tpu.memory_space<vmem>>, %arg6: memref<1x128xf32, #tpu.memory_space<vmem>>, %arg7: memref<128x128xf32, #tpu.memory_space<vmem>>, %arg8: memref<128x128xf32, #tpu.memory_space<vmem>>, %arg9: memref<128x384xf32, #tpu.memory_space<vmem>>) attributes {dimension_semantics = [], scalar_prefetch = 0 : i64, scratch_operands = 1 : i64, tpu.core_type = #tpu.core_type<tc>} {
    %c0 = arith.constant 0 : index
    %c0_0 = arith.constant 0 : index
    %0 = vector.load %arg0[%c0, %c0_0] : memref<128x128xf32, #tpu.memory_space<vmem>>, vector<128x128xf32>
    %c0_1 = arith.constant 0 : index
    %c0_2 = arith.constant 0 : index
    %1 = vector.load %arg1[%c0_1, %c0_2] : memref<128x384xf32, #tpu.memory_space<vmem>>, vector<128x384xf32>
    %cst = arith.constant dense<0.000000e+00> : vector<128x384xf32>
    %2 = tpu.matmul %0, %1, %cst {dimension_numbers = #tpu.dot_dimension_numbers<[1], [0], [0], [1], [0, 0, 1, 1], [], []>} : vector<128x128xf32>, vector<128x384xf32>, vector<128x384xf32> -> vector<128x384xf32>
    %c0_3 = arith.constant 0 : index
    %c0_4 = arith.constant 0 : index
    %3 = vector.load %arg3[%c0_3, %c0_4] : memref<1x384xf32, #tpu.memory_space<vmem>>, vector<1x384xf32>
    %4 = vector.broadcast %3 : vector<1x384xf32> to vector<128x384xf32>
    %5 = arith.addf %2, %4 : vector<128x384xf32>
    %c0_5 = arith.constant 0 : index
    %c0_6 = arith.constant 0 : index
    %6 = vector.load %arg9[%c0_5, %c0_6] : memref<128x384xf32, #tpu.memory_space<vmem>>, vector<128x384xf32>
    tpu.vector_store %arg9[%c0_5, %c0_6], %5 {strides = array<i32>} : memref<128x384xf32, #tpu.memory_space<vmem>>, vector<128x384xf32>,
    %c0_7 = arith.constant 0 : index
    %c0_8 = arith.constant 0 : index
    %7 = vector.load %arg2[%c0_7, %c0_8] : memref<128x384xf32, #tpu.memory_space<vmem>>, vector<128x384xf32>
    %c0_9 = arith.constant 0 : index
    %c0_10 = arith.constant 0 : index
    %8 = vector.load %arg4[%c0_9, %c0_10] : memref<1x128xf32, #tpu.memory_space<vmem>>, vector<1x128xf32>
    %9 = vector.shape_cast %8 : vector<1x128xf32> to vector<1x128xf32>
    %10 = vector.broadcast %9 : vector<1x128xf32> to vector<8x128xf32>
    %cst_11 = arith.constant 0.000000e+00 : f32
    %11 = vector.broadcast %cst_11 : f32 to vector<8x128xf32>
    %c0_12 = arith.constant 0 : index
    %c0_13 = arith.constant 0 : index
    %12 = vector.load %arg9[%c0_12, %c0_13] : memref<128x384xf32, #tpu.memory_space<vmem>>, vector<8x384xf32>
    %cst_14 = arith.constant dense<0.000000e+00> : vector<8x384xf32>
    %13 = tpu.matmul %11, %7, %cst_14 {dimension_numbers = #tpu.dot_dimension_numbers<[1], [0], [0], [1], [0, 0, 1, 1], [], []>} : vector<8x128xf32>, vector<128x384xf32>, vector<8x384xf32> -> vector<8x384xf32>
    %14 = vector.extract_strided_slice %12 {offsets = [0, 0], sizes = [8, 256], strides = [1, 1]} : vector<8x384xf32> to vector<8x256xf32>
    %15 = vector.extract_strided_slice %13 {offsets = [0, 0], sizes = [8, 256], strides = [1, 1]} : vector<8x384xf32> to vector<8x256xf32>
    %16 = arith.addf %14, %15 : vector<8x256xf32>
    %17 = arith.negf %16 : vector<8x256xf32>
    %18 = math.exp %17 : vector<8x256xf32>
    %cst_15 = arith.constant 1.000000e+00 : f32
    %19 = vector.broadcast %cst_15 : f32 to vector<8x256xf32>
    %20 = arith.addf %19, %18 : vector<8x256xf32>
    %21 = arith.divf %19, %20 : vector<8x256xf32>
    %22 = vector.extract_strided_slice %21 {offsets = [0, 0], sizes = [8, 128], strides = [1, 1]} : vector<8x256xf32> to vector<8x128xf32>
    %23 = vector.extract_strided_slice %21 {offsets = [0, 128], sizes = [8, 128], strides = [1, 1]} : vector<8x256xf32> to vector<8x128xf32>
    %24 = vector.extract_strided_slice %12 {offsets = [0, 256], sizes = [8, 128], strides = [1, 1]} : vector<8x384xf32> to vector<8x128xf32>
    %25 = vector.extract_strided_slice %13 {offsets = [0, 256], sizes = [8, 128], strides = [1, 1]} : vector<8x384xf32> to vector<8x128xf32>
    %26 = arith.addf %25, %10 : vector<8x128xf32>
    %27 = arith.mulf %22, %26 : vector<8x128xf32>
    %28 = arith.addf %24, %27 : vector<8x128xf32>
    %29 = math.tanh %28 : vector<8x128xf32>
    %cst_16 = arith.constant 1.000000e+00 : f32
    %30 = vector.broadcast %cst_16 : f32 to vector<8x128xf32>
    %31 = arith.subf %30, %23 : vector<8x128xf32>
    %32 = arith.mulf %31, %29 : vector<8x128xf32>
    %33 = arith.mulf %23, %11 : vector<8x128xf32>
    %34 = arith.addf %32, %33 : vector<8x128xf32>
    %c0_17 = arith.constant 0 : index
    %c0_18 = arith.constant 0 : index
    %35 = vector.load %arg8[%c0_17, %c0_18] : memref<128x128xf32, #tpu.memory_space<vmem>>, vector<8x128xf32>
    tpu.vector_store %arg8[%c0_17, %c0_18], %34 {strides = array<i32>} : memref<128x128xf32, #tpu.memory_space<vmem>>, vector<8x128xf32>,
    %c8 = arith.constant 8 : index
    %c0_19 = arith.constant 0 : index
    %36 = vector.load %arg9[%c8, %c0_19] : memref<128x384xf32, #tpu.memory_space<vmem>>, vector<8x384xf32>
    %cst_20 = arith.constant dense<0.000000e+00> : vector<8x384xf32>
    %37 = tpu.matmul %34, %7, %cst_20 {dimension_numbers = #tpu.dot_dimension_numbers<[1], [0], [0], [1], [0, 0, 1, 1], [], []>} : vector<8x128xf32>, vector<128x384xf32>, vector<8x384xf32> -> vector<8x384xf32>
    %38 = vector.extract_strided_slice %36 {offsets = [0, 0], sizes = [8, 256], strides = [1, 1]} : vector<8x384xf32> to vector<8x256xf32>
    %39 = vector.extract_strided_slice %37 {offsets = [0, 0], sizes = [8, 256], strides = [1, 1]} : vector<8x384xf32> to vector<8x256xf32>
    %40 = arith.addf %38, %39 : vector<8x256xf32>
    %41 = arith.negf %40 : vector<8x256xf32>
    %42 = math.exp %41 : vector<8x256xf32>
    %cst_21 = arith.constant 1.000000e+00 : f32
    %43 = vector.broadcast %cst_21 : f32 to vector<8x256xf32>
    %44 = arith.addf %43, %42 : vector<8x256xf32>
    %45 = arith.divf %43, %44 : vector<8x256xf32>
    %46 = vector.extract_strided_slice %45 {offsets = [0, 0], sizes = [8, 128], strides = [1, 1]} : vector<8x256xf32> to vector<8x128xf32>
    %47 = vector.extract_strided_slice %45 {offsets = [0, 128], sizes = [8, 128], strides = [1, 1]} : vector<8x256xf32> to vector<8x128xf32>
    %48 = vector.extract_strided_slice %36 {offsets = [0, 256], sizes = [8, 128], strides = [1, 1]} : vector<8x384xf32> to vector<8x128xf32>
    %49 = vector.extract_strided_slice %37 {offsets = [0, 256], sizes = [8, 128], strides = [1, 1]} : vector<8x384xf32> to vector<8x128xf32>
    %50 = arith.addf %49, %10 : vector<8x128xf32>
    %51 = arith.mulf %46, %50 : vector<8x128xf32>
    %52 = arith.addf %48, %51 : vector<8x128xf32>
    %53 = math.tanh %52 : vector<8x128xf32>
    %cst_22 = arith.constant 1.000000e+00 : f32
    %54 = vector.broadcast %cst_22 : f32 to vector<8x128xf32>
    %55 = arith.subf %54, %47 : vector<8x128xf32>
    %56 = arith.mulf %55, %53 : vector<8x128xf32>
    %57 = arith.mulf %47, %34 : vector<8x128xf32>
    %58 = arith.addf %56, %57 : vector<8x128xf32>
    %c8_23 = arith.constant 8 : index
    %c0_24 = arith.constant 0 : index
    %59 = vector.load %arg8[%c8_23, %c0_24] : memref<128x128xf32, #tpu.memory_space<vmem>>, vector<8x128xf32>
    tpu.vector_store %arg8[%c8_23, %c0_24], %58 {strides = array<i32>} : memref<128x128xf32, #tpu.memory_space<vmem>>, vector<8x128xf32>,
    %c16 = arith.constant 16 : index
    %c0_25 = arith.constant 0 : index
    %60 = vector.load %arg9[%c16, %c0_25] : memref<128x384xf32, #tpu.memory_space<vmem>>, vector<8x384xf32>
    %cst_26 = arith.constant dense<0.000000e+00> : vector<8x384xf32>
    %61 = tpu.matmul %58, %7, %cst_26 {dimension_numbers = #tpu.dot_dimension_numbers<[1], [0], [0], [1], [0, 0, 1, 1], [], []>} : vector<8x128xf32>, vector<128x384xf32>, vector<8x384xf32> -> vector<8x384xf32>
    %62 = vector.extract_strided_slice %60 {offsets = [0, 0], sizes = [8, 256], strides = [1, 1]} : vector<8x384xf32> to vector<8x256xf32>
    %63 = vector.extract_strided_slice %61 {offsets = [0, 0], sizes = [8, 256], strides = [1, 1]} : vector<8x384xf32> to vector<8x256xf32>
    %64 = arith.addf %62, %63 : vector<8x256xf32>
    %65 = arith.negf %64 : vector<8x256xf32>
    %66 = math.exp %65 : vector<8x256xf32>
    %cst_27 = arith.constant 1.000000e+00 : f32
    %67 = vector.broadcast %cst_27 : f32 to vector<8x256xf32>
    %68 = arith.addf %67, %66 : vector<8x256xf32>
    %69 = arith.divf %67, %68 : vector<8x256xf32>
    %70 = vector.extract_strided_slice %69 {offsets = [0, 0], sizes = [8, 128], strides = [1, 1]} : vector<8x256xf32> to vector<8x128xf32>
    %71 = vector.extract_strided_slice %69 {offsets = [0, 128], sizes = [8, 128], strides = [1, 1]} : vector<8x256xf32> to vector<8x128xf32>
    %72 = vector.extract_strided_slice %60 {offsets = [0, 256], sizes = [8, 128], strides = [1, 1]} : vector<8x384xf32> to vector<8x128xf32>
    %73 = vector.extract_strided_slice %61 {offsets = [0, 256], sizes = [8, 128], strides = [1, 1]} : vector<8x384xf32> to vector<8x128xf32>
    %74 = arith.addf %73, %10 : vector<8x128xf32>
    %75 = arith.mulf %70, %74 : vector<8x128xf32>
    %76 = arith.addf %72, %75 : vector<8x128xf32>
    %77 = math.tanh %76 : vector<8x128xf32>
    %cst_28 = arith.constant 1.000000e+00 : f32
    %78 = vector.broadcast %cst_28 : f32 to vector<8x128xf32>
    %79 = arith.subf %78, %71 : vector<8x128xf32>
    %80 = arith.mulf %79, %77 : vector<8x128xf32>
    %81 = arith.mulf %71, %58 : vector<8x128xf32>
    %82 = arith.addf %80, %81 : vector<8x128xf32>
    %c16_29 = arith.constant 16 : index
    %c0_30 = arith.constant 0 : index
    %83 = vector.load %arg8[%c16_29, %c0_30] : memref<128x128xf32, #tpu.memory_space<vmem>>, vector<8x128xf32>
    tpu.vector_store %arg8[%c16_29, %c0_30], %82 {strides = array<i32>} : memref<128x128xf32, #tpu.memory_space<vmem>>, vector<8x128xf32>,
    %c24 = arith.constant 24 : index
    %c0_31 = arith.constant 0 : index
    %84 = vector.load %arg9[%c24, %c0_31] : memref<128x384xf32, #tpu.memory_space<vmem>>, vector<8x384xf32>
    %cst_32 = arith.constant dense<0.000000e+00> : vector<8x384xf32>
    %85 = tpu.matmul %82, %7, %cst_32 {dimension_numbers = #tpu.dot_dimension_numbers<[1], [0], [0], [1], [0, 0, 1, 1], [], []>} : vector<8x128xf32>, vector<128x384xf32>, vector<8x384xf32> -> vector<8x384xf32>
    %86 = vector.extract_strided_slice %84 {offsets = [0, 0], sizes = [8, 256], strides = [1, 1]} : vector<8x384xf32> to vector<8x256xf32>
    %87 = vector.extract_strided_slice %85 {offsets = [0, 0], sizes = [8, 256], strides = [1, 1]} : vector<8x384xf32> to vector<8x256xf32>
    %88 = arith.addf %86, %87 : vector<8x256xf32>
    %89 = arith.negf %88 : vector<8x256xf32>
    %90 = math.exp %89 : vector<8x256xf32>
    %cst_33 = arith.constant 1.000000e+00 : f32
    %91 = vector.broadcast %cst_33 : f32 to vector<8x256xf32>
    %92 = arith.addf %91, %90 : vector<8x256xf32>
    %93 = arith.divf %91, %92 : vector<8x256xf32>
    %94 = vector.extract_strided_slice %93 {offsets = [0, 0], sizes = [8, 128], strides = [1, 1]} : vector<8x256xf32> to vector<8x128xf32>
    %95 = vector.extract_strided_slice %93 {offsets = [0, 128], sizes = [8, 128], strides = [1, 1]} : vector<8x256xf32> to vector<8x128xf32>
    %96 = vector.extract_strided_slice %84 {offsets = [0, 256], sizes = [8, 128], strides = [1, 1]} : vector<8x384xf32> to vector<8x128xf32>
    %97 = vector.extract_strided_slice %85 {offsets = [0, 256], sizes = [8, 128], strides = [1, 1]} : vector<8x384xf32> to vector<8x128xf32>
    %98 = arith.addf %97, %10 : vector<8x128xf32>
    %99 = arith.mulf %94, %98 : vector<8x128xf32>
    %100 = arith.addf %96, %99 : vector<8x128xf32>
    %101 = math.tanh %100 : vector<8x128xf32>
    %cst_34 = arith.constant 1.000000e+00 : f32
    %102 = vector.broadcast %cst_34 : f32 to vector<8x128xf32>
    %103 = arith.subf %102, %95 : vector<8x128xf32>
    %104 = arith.mulf %103, %101 : vector<8x128xf32>
    %105 = arith.mulf %95, %82 : vector<8x128xf32>
    %106 = arith.addf %104, %105 : vector<8x128xf32>
    %c24_35 = arith.constant 24 : index
    %c0_36 = arith.constant 0 : index
    %107 = vector.load %arg8[%c24_35, %c0_36] : memref<128x128xf32, #tpu.memory_space<vmem>>, vector<8x128xf32>
    tpu.vector_store %arg8[%c24_35, %c0_36], %106 {strides = array<i32>} : memref<128x128xf32, #tpu.memory_space<vmem>>, vector<8x128xf32>,
    %c32 = arith.constant 32 : index
    %c0_37 = arith.constant 0 : index
    %108 = vector.load %arg9[%c32, %c0_37] : memref<128x384xf32, #tpu.memory_space<vmem>>, vector<8x384xf32>
    %cst_38 = arith.constant dense<0.000000e+00> : vector<8x384xf32>
    %109 = tpu.matmul %106, %7, %cst_38 {dimension_numbers = #tpu.dot_dimension_numbers<[1], [0], [0], [1], [0, 0, 1, 1], [], []>} : vector<8x128xf32>, vector<128x384xf32>, vector<8x384xf32> -> vector<8x384xf32>
    %110 = vector.extract_strided_slice %108 {offsets = [0, 0], sizes = [8, 256], strides = [1, 1]} : vector<8x384xf32> to vector<8x256xf32>
    %111 = vector.extract_strided_slice %109 {offsets = [0, 0], sizes = [8, 256], strides = [1, 1]} : vector<8x384xf32> to vector<8x256xf32>
    %112 = arith.addf %110, %111 : vector<8x256xf32>
    %113 = arith.negf %112 : vector<8x256xf32>
    %114 = math.exp %113 : vector<8x256xf32>
    %cst_39 = arith.constant 1.000000e+00 : f32
    %115 = vector.broadcast %cst_39 : f32 to vector<8x256xf32>
    %116 = arith.addf %115, %114 : vector<8x256xf32>
    %117 = arith.divf %115, %116 : vector<8x256xf32>
    %118 = vector.extract_strided_slice %117 {offsets = [0, 0], sizes = [8, 128], strides = [1, 1]} : vector<8x256xf32> to vector<8x128xf32>
    %119 = vector.extract_strided_slice %117 {offsets = [0, 128], sizes = [8, 128], strides = [1, 1]} : vector<8x256xf32> to vector<8x128xf32>
    %120 = vector.extract_strided_slice %108 {offsets = [0, 256], sizes = [8, 128], strides = [1, 1]} : vector<8x384xf32> to vector<8x128xf32>
    %121 = vector.extract_strided_slice %109 {offsets = [0, 256], sizes = [8, 128], strides = [1, 1]} : vector<8x384xf32> to vector<8x128xf32>
    %122 = arith.addf %121, %10 : vector<8x128xf32>
    %123 = arith.mulf %118, %122 : vector<8x128xf32>
    %124 = arith.addf %120, %123 : vector<8x128xf32>
    %125 = math.tanh %124 : vector<8x128xf32>
    %cst_40 = arith.constant 1.000000e+00 : f32
    %126 = vector.broadcast %cst_40 : f32 to vector<8x128xf32>
    %127 = arith.subf %126, %119 : vector<8x128xf32>
    %128 = arith.mulf %127, %125 : vector<8x128xf32>
    %129 = arith.mulf %119, %106 : vector<8x128xf32>
    %130 = arith.addf %128, %129 : vector<8x128xf32>
    %c32_41 = arith.constant 32 : index
    %c0_42 = arith.constant 0 : index
    %131 = vector.load %arg8[%c32_41, %c0_42] : memref<128x128xf32, #tpu.memory_space<vmem>>, vector<8x128xf32>
    tpu.vector_store %arg8[%c32_41, %c0_42], %130 {strides = array<i32>} : memref<128x128xf32, #tpu.memory_space<vmem>>, vector<8x128xf32>,
    %c40 = arith.constant 40 : index
    %c0_43 = arith.constant 0 : index
    %132 = vector.load %arg9[%c40, %c0_43] : memref<128x384xf32, #tpu.memory_space<vmem>>, vector<8x384xf32>
    %cst_44 = arith.constant dense<0.000000e+00> : vector<8x384xf32>
    %133 = tpu.matmul %130, %7, %cst_44 {dimension_numbers = #tpu.dot_dimension_numbers<[1], [0], [0], [1], [0, 0, 1, 1], [], []>} : vector<8x128xf32>, vector<128x384xf32>, vector<8x384xf32> -> vector<8x384xf32>
    %134 = vector.extract_strided_slice %132 {offsets = [0, 0], sizes = [8, 256], strides = [1, 1]} : vector<8x384xf32> to vector<8x256xf32>
    %135 = vector.extract_strided_slice %133 {offsets = [0, 0], sizes = [8, 256], strides = [1, 1]} : vector<8x384xf32> to vector<8x256xf32>
    %136 = arith.addf %134, %135 : vector<8x256xf32>
    %137 = arith.negf %136 : vector<8x256xf32>
    %138 = math.exp %137 : vector<8x256xf32>
    %cst_45 = arith.constant 1.000000e+00 : f32
    %139 = vector.broadcast %cst_45 : f32 to vector<8x256xf32>
    %140 = arith.addf %139, %138 : vector<8x256xf32>
    %141 = arith.divf %139, %140 : vector<8x256xf32>
    %142 = vector.extract_strided_slice %141 {offsets = [0, 0], sizes = [8, 128], strides = [1, 1]} : vector<8x256xf32> to vector<8x128xf32>
    %143 = vector.extract_strided_slice %141 {offsets = [0, 128], sizes = [8, 128], strides = [1, 1]} : vector<8x256xf32> to vector<8x128xf32>
    %144 = vector.extract_strided_slice %132 {offsets = [0, 256], sizes = [8, 128], strides = [1, 1]} : vector<8x384xf32> to vector<8x128xf32>
    %145 = vector.extract_strided_slice %133 {offsets = [0, 256], sizes = [8, 128], strides = [1, 1]} : vector<8x384xf32> to vector<8x128xf32>
    %146 = arith.addf %145, %10 : vector<8x128xf32>
    %147 = arith.mulf %142, %146 : vector<8x128xf32>
    %148 = arith.addf %144, %147 : vector<8x128xf32>
    %149 = math.tanh %148 : vector<8x128xf32>
    %cst_46 = arith.constant 1.000000e+00 : f32
    %150 = vector.broadcast %cst_46 : f32 to vector<8x128xf32>
    %151 = arith.subf %150, %143 : vector<8x128xf32>
    %152 = arith.mulf %151, %149 : vector<8x128xf32>
    %153 = arith.mulf %143, %130 : vector<8x128xf32>
    %154 = arith.addf %152, %153 : vector<8x128xf32>
    %c40_47 = arith.constant 40 : index
    %c0_48 = arith.constant 0 : index
    %155 = vector.load %arg8[%c40_47, %c0_48] : memref<128x128xf32, #tpu.memory_space<vmem>>, vector<8x128xf32>
    tpu.vector_store %arg8[%c40_47, %c0_48], %154 {strides = array<i32>} : memref<128x128xf32, #tpu.memory_space<vmem>>, vector<8x128xf32>,
    %c48 = arith.constant 48 : index
    %c0_49 = arith.constant 0 : index
    %156 = vector.load %arg9[%c48, %c0_49] : memref<128x384xf32, #tpu.memory_space<vmem>>, vector<8x384xf32>
    %cst_50 = arith.constant dense<0.000000e+00> : vector<8x384xf32>
    %157 = tpu.matmul %154, %7, %cst_50 {dimension_numbers = #tpu.dot_dimension_numbers<[1], [0], [0], [1], [0, 0, 1, 1], [], []>} : vector<8x128xf32>, vector<128x384xf32>, vector<8x384xf32> -> vector<8x384xf32>
    %158 = vector.extract_strided_slice %156 {offsets = [0, 0], sizes = [8, 256], strides = [1, 1]} : vector<8x384xf32> to vector<8x256xf32>
    %159 = vector.extract_strided_slice %157 {offsets = [0, 0], sizes = [8, 256], strides = [1, 1]} : vector<8x384xf32> to vector<8x256xf32>
    %160 = arith.addf %158, %159 : vector<8x256xf32>
    %161 = arith.negf %160 : vector<8x256xf32>
    %162 = math.exp %161 : vector<8x256xf32>
    %cst_51 = arith.constant 1.000000e+00 : f32
    %163 = vector.broadcast %cst_51 : f32 to vector<8x256xf32>
    %164 = arith.addf %163, %162 : vector<8x256xf32>
    %165 = arith.divf %163, %164 : vector<8x256xf32>
    %166 = vector.extract_strided_slice %165 {offsets = [0, 0], sizes = [8, 128], strides = [1, 1]} : vector<8x256xf32> to vector<8x128xf32>
    %167 = vector.extract_strided_slice %165 {offsets = [0, 128], sizes = [8, 128], strides = [1, 1]} : vector<8x256xf32> to vector<8x128xf32>
    %168 = vector.extract_strided_slice %156 {offsets = [0, 256], sizes = [8, 128], strides = [1, 1]} : vector<8x384xf32> to vector<8x128xf32>
    %169 = vector.extract_strided_slice %157 {offsets = [0, 256], sizes = [8, 128], strides = [1, 1]} : vector<8x384xf32> to vector<8x128xf32>
    %170 = arith.addf %169, %10 : vector<8x128xf32>
    %171 = arith.mulf %166, %170 : vector<8x128xf32>
    %172 = arith.addf %168, %171 : vector<8x128xf32>
    %173 = math.tanh %172 : vector<8x128xf32>
    %cst_52 = arith.constant 1.000000e+00 : f32
    %174 = vector.broadcast %cst_52 : f32 to vector<8x128xf32>
    %175 = arith.subf %174, %167 : vector<8x128xf32>
    %176 = arith.mulf %175, %173 : vector<8x128xf32>
    %177 = arith.mulf %167, %154 : vector<8x128xf32>
    %178 = arith.addf %176, %177 : vector<8x128xf32>
    %c48_53 = arith.constant 48 : index
    %c0_54 = arith.constant 0 : index
    %179 = vector.load %arg8[%c48_53, %c0_54] : memref<128x128xf32, #tpu.memory_space<vmem>>, vector<8x128xf32>
    tpu.vector_store %arg8[%c48_53, %c0_54], %178 {strides = array<i32>} : memref<128x128xf32, #tpu.memory_space<vmem>>, vector<8x128xf32>,
    %c56 = arith.constant 56 : index
    %c0_55 = arith.constant 0 : index
    %180 = vector.load %arg9[%c56, %c0_55] : memref<128x384xf32, #tpu.memory_space<vmem>>, vector<8x384xf32>
    %cst_56 = arith.constant dense<0.000000e+00> : vector<8x384xf32>
    %181 = tpu.matmul %178, %7, %cst_56 {dimension_numbers = #tpu.dot_dimension_numbers<[1], [0], [0], [1], [0, 0, 1, 1], [], []>} : vector<8x128xf32>, vector<128x384xf32>, vector<8x384xf32> -> vector<8x384xf32>
    %182 = vector.extract_strided_slice %180 {offsets = [0, 0], sizes = [8, 256], strides = [1, 1]} : vector<8x384xf32> to vector<8x256xf32>
    %183 = vector.extract_strided_slice %181 {offsets = [0, 0], sizes = [8, 256], strides = [1, 1]} : vector<8x384xf32> to vector<8x256xf32>
    %184 = arith.addf %182, %183 : vector<8x256xf32>
    %185 = arith.negf %184 : vector<8x256xf32>
    %186 = math.exp %185 : vector<8x256xf32>
    %cst_57 = arith.constant 1.000000e+00 : f32
    %187 = vector.broadcast %cst_57 : f32 to vector<8x256xf32>
    %188 = arith.addf %187, %186 : vector<8x256xf32>
    %189 = arith.divf %187, %188 : vector<8x256xf32>
    %190 = vector.extract_strided_slice %189 {offsets = [0, 0], sizes = [8, 128], strides = [1, 1]} : vector<8x256xf32> to vector<8x128xf32>
    %191 = vector.extract_strided_slice %189 {offsets = [0, 128], sizes = [8, 128], strides = [1, 1]} : vector<8x256xf32> to vector<8x128xf32>
    %192 = vector.extract_strided_slice %180 {offsets = [0, 256], sizes = [8, 128], strides = [1, 1]} : vector<8x384xf32> to vector<8x128xf32>
    %193 = vector.extract_strided_slice %181 {offsets = [0, 256], sizes = [8, 128], strides = [1, 1]} : vector<8x384xf32> to vector<8x128xf32>
    %194 = arith.addf %193, %10 : vector<8x128xf32>
    %195 = arith.mulf %190, %194 : vector<8x128xf32>
    %196 = arith.addf %192, %195 : vector<8x128xf32>
    %197 = math.tanh %196 : vector<8x128xf32>
    %cst_58 = arith.constant 1.000000e+00 : f32
    %198 = vector.broadcast %cst_58 : f32 to vector<8x128xf32>
    %199 = arith.subf %198, %191 : vector<8x128xf32>
    %200 = arith.mulf %199, %197 : vector<8x128xf32>
    %201 = arith.mulf %191, %178 : vector<8x128xf32>
    %202 = arith.addf %200, %201 : vector<8x128xf32>
    %c56_59 = arith.constant 56 : index
    %c0_60 = arith.constant 0 : index
    %203 = vector.load %arg8[%c56_59, %c0_60] : memref<128x128xf32, #tpu.memory_space<vmem>>, vector<8x128xf32>
    tpu.vector_store %arg8[%c56_59, %c0_60], %202 {strides = array<i32>} : memref<128x128xf32, #tpu.memory_space<vmem>>, vector<8x128xf32>,
    %c64 = arith.constant 64 : index
    %c0_61 = arith.constant 0 : index
    %204 = vector.load %arg9[%c64, %c0_61] : memref<128x384xf32, #tpu.memory_space<vmem>>, vector<8x384xf32>
    %cst_62 = arith.constant dense<0.000000e+00> : vector<8x384xf32>
    %205 = tpu.matmul %202, %7, %cst_62 {dimension_numbers = #tpu.dot_dimension_numbers<[1], [0], [0], [1], [0, 0, 1, 1], [], []>} : vector<8x128xf32>, vector<128x384xf32>, vector<8x384xf32> -> vector<8x384xf32>
    %206 = vector.extract_strided_slice %204 {offsets = [0, 0], sizes = [8, 256], strides = [1, 1]} : vector<8x384xf32> to vector<8x256xf32>
    %207 = vector.extract_strided_slice %205 {offsets = [0, 0], sizes = [8, 256], strides = [1, 1]} : vector<8x384xf32> to vector<8x256xf32>
    %208 = arith.addf %206, %207 : vector<8x256xf32>
    %209 = arith.negf %208 : vector<8x256xf32>
    %210 = math.exp %209 : vector<8x256xf32>
    %cst_63 = arith.constant 1.000000e+00 : f32
    %211 = vector.broadcast %cst_63 : f32 to vector<8x256xf32>
    %212 = arith.addf %211, %210 : vector<8x256xf32>
    %213 = arith.divf %211, %212 : vector<8x256xf32>
    %214 = vector.extract_strided_slice %213 {offsets = [0, 0], sizes = [8, 128], strides = [1, 1]} : vector<8x256xf32> to vector<8x128xf32>
    %215 = vector.extract_strided_slice %213 {offsets = [0, 128], sizes = [8, 128], strides = [1, 1]} : vector<8x256xf32> to vector<8x128xf32>
    %216 = vector.extract_strided_slice %204 {offsets = [0, 256], sizes = [8, 128], strides = [1, 1]} : vector<8x384xf32> to vector<8x128xf32>
    %217 = vector.extract_strided_slice %205 {offsets = [0, 256], sizes = [8, 128], strides = [1, 1]} : vector<8x384xf32> to vector<8x128xf32>
    %218 = arith.addf %217, %10 : vector<8x128xf32>
    %219 = arith.mulf %214, %218 : vector<8x128xf32>
    %220 = arith.addf %216, %219 : vector<8x128xf32>
    %221 = math.tanh %220 : vector<8x128xf32>
    %cst_64 = arith.constant 1.000000e+00 : f32
    %222 = vector.broadcast %cst_64 : f32 to vector<8x128xf32>
    %223 = arith.subf %222, %215 : vector<8x128xf32>
    %224 = arith.mulf %223, %221 : vector<8x128xf32>
    %225 = arith.mulf %215, %202 : vector<8x128xf32>
    %226 = arith.addf %224, %225 : vector<8x128xf32>
    %c64_65 = arith.constant 64 : index
    %c0_66 = arith.constant 0 : index
    %227 = vector.load %arg8[%c64_65, %c0_66] : memref<128x128xf32, #tpu.memory_space<vmem>>, vector<8x128xf32>
    tpu.vector_store %arg8[%c64_65, %c0_66], %226 {strides = array<i32>} : memref<128x128xf32, #tpu.memory_space<vmem>>, vector<8x128xf32>,
    %c72 = arith.constant 72 : index
    %c0_67 = arith.constant 0 : index
    %228 = vector.load %arg9[%c72, %c0_67] : memref<128x384xf32, #tpu.memory_space<vmem>>, vector<8x384xf32>
    %cst_68 = arith.constant dense<0.000000e+00> : vector<8x384xf32>
    %229 = tpu.matmul %226, %7, %cst_68 {dimension_numbers = #tpu.dot_dimension_numbers<[1], [0], [0], [1], [0, 0, 1, 1], [], []>} : vector<8x128xf32>, vector<128x384xf32>, vector<8x384xf32> -> vector<8x384xf32>
    %230 = vector.extract_strided_slice %228 {offsets = [0, 0], sizes = [8, 256], strides = [1, 1]} : vector<8x384xf32> to vector<8x256xf32>
    %231 = vector.extract_strided_slice %229 {offsets = [0, 0], sizes = [8, 256], strides = [1, 1]} : vector<8x384xf32> to vector<8x256xf32>
    %232 = arith.addf %230, %231 : vector<8x256xf32>
    %233 = arith.negf %232 : vector<8x256xf32>
    %234 = math.exp %233 : vector<8x256xf32>
    %cst_69 = arith.constant 1.000000e+00 : f32
    %235 = vector.broadcast %cst_69 : f32 to vector<8x256xf32>
    %236 = arith.addf %235, %234 : vector<8x256xf32>
    %237 = arith.divf %235, %236 : vector<8x256xf32>
    %238 = vector.extract_strided_slice %237 {offsets = [0, 0], sizes = [8, 128], strides = [1, 1]} : vector<8x256xf32> to vector<8x128xf32>
    %239 = vector.extract_strided_slice %237 {offsets = [0, 128], sizes = [8, 128], strides = [1, 1]} : vector<8x256xf32> to vector<8x128xf32>
    %240 = vector.extract_strided_slice %228 {offsets = [0, 256], sizes = [8, 128], strides = [1, 1]} : vector<8x384xf32> to vector<8x128xf32>
    %241 = vector.extract_strided_slice %229 {offsets = [0, 256], sizes = [8, 128], strides = [1, 1]} : vector<8x384xf32> to vector<8x128xf32>
    %242 = arith.addf %241, %10 : vector<8x128xf32>
    %243 = arith.mulf %238, %242 : vector<8x128xf32>
    %244 = arith.addf %240, %243 : vector<8x128xf32>
    %245 = math.tanh %244 : vector<8x128xf32>
    %cst_70 = arith.constant 1.000000e+00 : f32
    %246 = vector.broadcast %cst_70 : f32 to vector<8x128xf32>
    %247 = arith.subf %246, %239 : vector<8x128xf32>
    %248 = arith.mulf %247, %245 : vector<8x128xf32>
    %249 = arith.mulf %239, %226 : vector<8x128xf32>
    %250 = arith.addf %248, %249 : vector<8x128xf32>
    %c72_71 = arith.constant 72 : index
    %c0_72 = arith.constant 0 : index
    %251 = vector.load %arg8[%c72_71, %c0_72] : memref<128x128xf32, #tpu.memory_space<vmem>>, vector<8x128xf32>
    tpu.vector_store %arg8[%c72_71, %c0_72], %250 {strides = array<i32>} : memref<128x128xf32, #tpu.memory_space<vmem>>, vector<8x128xf32>,
    %c80 = arith.constant 80 : index
    %c0_73 = arith.constant 0 : index
    %252 = vector.load %arg9[%c80, %c0_73] : memref<128x384xf32, #tpu.memory_space<vmem>>, vector<8x384xf32>
    %cst_74 = arith.constant dense<0.000000e+00> : vector<8x384xf32>
    %253 = tpu.matmul %250, %7, %cst_74 {dimension_numbers = #tpu.dot_dimension_numbers<[1], [0], [0], [1], [0, 0, 1, 1], [], []>} : vector<8x128xf32>, vector<128x384xf32>, vector<8x384xf32> -> vector<8x384xf32>
    %254 = vector.extract_strided_slice %252 {offsets = [0, 0], sizes = [8, 256], strides = [1, 1]} : vector<8x384xf32> to vector<8x256xf32>
    %255 = vector.extract_strided_slice %253 {offsets = [0, 0], sizes = [8, 256], strides = [1, 1]} : vector<8x384xf32> to vector<8x256xf32>
    %256 = arith.addf %254, %255 : vector<8x256xf32>
    %257 = arith.negf %256 : vector<8x256xf32>
    %258 = math.exp %257 : vector<8x256xf32>
    %cst_75 = arith.constant 1.000000e+00 : f32
    %259 = vector.broadcast %cst_75 : f32 to vector<8x256xf32>
    %260 = arith.addf %259, %258 : vector<8x256xf32>
    %261 = arith.divf %259, %260 : vector<8x256xf32>
    %262 = vector.extract_strided_slice %261 {offsets = [0, 0], sizes = [8, 128], strides = [1, 1]} : vector<8x256xf32> to vector<8x128xf32>
    %263 = vector.extract_strided_slice %261 {offsets = [0, 128], sizes = [8, 128], strides = [1, 1]} : vector<8x256xf32> to vector<8x128xf32>
    %264 = vector.extract_strided_slice %252 {offsets = [0, 256], sizes = [8, 128], strides = [1, 1]} : vector<8x384xf32> to vector<8x128xf32>
    %265 = vector.extract_strided_slice %253 {offsets = [0, 256], sizes = [8, 128], strides = [1, 1]} : vector<8x384xf32> to vector<8x128xf32>
    %266 = arith.addf %265, %10 : vector<8x128xf32>
    %267 = arith.mulf %262, %266 : vector<8x128xf32>
    %268 = arith.addf %264, %267 : vector<8x128xf32>
    %269 = math.tanh %268 : vector<8x128xf32>
    %cst_76 = arith.constant 1.000000e+00 : f32
    %270 = vector.broadcast %cst_76 : f32 to vector<8x128xf32>
    %271 = arith.subf %270, %263 : vector<8x128xf32>
    %272 = arith.mulf %271, %269 : vector<8x128xf32>
    %273 = arith.mulf %263, %250 : vector<8x128xf32>
    %274 = arith.addf %272, %273 : vector<8x128xf32>
    %c80_77 = arith.constant 80 : index
    %c0_78 = arith.constant 0 : index
    %275 = vector.load %arg8[%c80_77, %c0_78] : memref<128x128xf32, #tpu.memory_space<vmem>>, vector<8x128xf32>
    tpu.vector_store %arg8[%c80_77, %c0_78], %274 {strides = array<i32>} : memref<128x128xf32, #tpu.memory_space<vmem>>, vector<8x128xf32>,
    %c88 = arith.constant 88 : index
    %c0_79 = arith.constant 0 : index
    %276 = vector.load %arg9[%c88, %c0_79] : memref<128x384xf32, #tpu.memory_space<vmem>>, vector<8x384xf32>
    %cst_80 = arith.constant dense<0.000000e+00> : vector<8x384xf32>
    %277 = tpu.matmul %274, %7, %cst_80 {dimension_numbers = #tpu.dot_dimension_numbers<[1], [0], [0], [1], [0, 0, 1, 1], [], []>} : vector<8x128xf32>, vector<128x384xf32>, vector<8x384xf32> -> vector<8x384xf32>
    %278 = vector.extract_strided_slice %276 {offsets = [0, 0], sizes = [8, 256], strides = [1, 1]} : vector<8x384xf32> to vector<8x256xf32>
    %279 = vector.extract_strided_slice %277 {offsets = [0, 0], sizes = [8, 256], strides = [1, 1]} : vector<8x384xf32> to vector<8x256xf32>
    %280 = arith.addf %278, %279 : vector<8x256xf32>
    %281 = arith.negf %280 : vector<8x256xf32>
    %282 = math.exp %281 : vector<8x256xf32>
    %cst_81 = arith.constant 1.000000e+00 : f32
    %283 = vector.broadcast %cst_81 : f32 to vector<8x256xf32>
    %284 = arith.addf %283, %282 : vector<8x256xf32>
    %285 = arith.divf %283, %284 : vector<8x256xf32>
    %286 = vector.extract_strided_slice %285 {offsets = [0, 0], sizes = [8, 128], strides = [1, 1]} : vector<8x256xf32> to vector<8x128xf32>
    %287 = vector.extract_strided_slice %285 {offsets = [0, 128], sizes = [8, 128], strides = [1, 1]} : vector<8x256xf32> to vector<8x128xf32>
    %288 = vector.extract_strided_slice %276 {offsets = [0, 256], sizes = [8, 128], strides = [1, 1]} : vector<8x384xf32> to vector<8x128xf32>
    %289 = vector.extract_strided_slice %277 {offsets = [0, 256], sizes = [8, 128], strides = [1, 1]} : vector<8x384xf32> to vector<8x128xf32>
    %290 = arith.addf %289, %10 : vector<8x128xf32>
    %291 = arith.mulf %286, %290 : vector<8x128xf32>
    %292 = arith.addf %288, %291 : vector<8x128xf32>
    %293 = math.tanh %292 : vector<8x128xf32>
    %cst_82 = arith.constant 1.000000e+00 : f32
    %294 = vector.broadcast %cst_82 : f32 to vector<8x128xf32>
    %295 = arith.subf %294, %287 : vector<8x128xf32>
    %296 = arith.mulf %295, %293 : vector<8x128xf32>
    %297 = arith.mulf %287, %274 : vector<8x128xf32>
    %298 = arith.addf %296, %297 : vector<8x128xf32>
    %c88_83 = arith.constant 88 : index
    %c0_84 = arith.constant 0 : index
    %299 = vector.load %arg8[%c88_83, %c0_84] : memref<128x128xf32, #tpu.memory_space<vmem>>, vector<8x128xf32>
    tpu.vector_store %arg8[%c88_83, %c0_84], %298 {strides = array<i32>} : memref<128x128xf32, #tpu.memory_space<vmem>>, vector<8x128xf32>,
    %c96 = arith.constant 96 : index
    %c0_85 = arith.constant 0 : index
    %300 = vector.load %arg9[%c96, %c0_85] : memref<128x384xf32, #tpu.memory_space<vmem>>, vector<8x384xf32>
    %cst_86 = arith.constant dense<0.000000e+00> : vector<8x384xf32>
    %301 = tpu.matmul %298, %7, %cst_86 {dimension_numbers = #tpu.dot_dimension_numbers<[1], [0], [0], [1], [0, 0, 1, 1], [], []>} : vector<8x128xf32>, vector<128x384xf32>, vector<8x384xf32> -> vector<8x384xf32>
    %302 = vector.extract_strided_slice %300 {offsets = [0, 0], sizes = [8, 256], strides = [1, 1]} : vector<8x384xf32> to vector<8x256xf32>
    %303 = vector.extract_strided_slice %301 {offsets = [0, 0], sizes = [8, 256], strides = [1, 1]} : vector<8x384xf32> to vector<8x256xf32>
    %304 = arith.addf %302, %303 : vector<8x256xf32>
    %305 = arith.negf %304 : vector<8x256xf32>
    %306 = math.exp %305 : vector<8x256xf32>
    %cst_87 = arith.constant 1.000000e+00 : f32
    %307 = vector.broadcast %cst_87 : f32 to vector<8x256xf32>
    %308 = arith.addf %307, %306 : vector<8x256xf32>
    %309 = arith.divf %307, %308 : vector<8x256xf32>
    %310 = vector.extract_strided_slice %309 {offsets = [0, 0], sizes = [8, 128], strides = [1, 1]} : vector<8x256xf32> to vector<8x128xf32>
    %311 = vector.extract_strided_slice %309 {offsets = [0, 128], sizes = [8, 128], strides = [1, 1]} : vector<8x256xf32> to vector<8x128xf32>
    %312 = vector.extract_strided_slice %300 {offsets = [0, 256], sizes = [8, 128], strides = [1, 1]} : vector<8x384xf32> to vector<8x128xf32>
    %313 = vector.extract_strided_slice %301 {offsets = [0, 256], sizes = [8, 128], strides = [1, 1]} : vector<8x384xf32> to vector<8x128xf32>
    %314 = arith.addf %313, %10 : vector<8x128xf32>
    %315 = arith.mulf %310, %314 : vector<8x128xf32>
    %316 = arith.addf %312, %315 : vector<8x128xf32>
    %317 = math.tanh %316 : vector<8x128xf32>
    %cst_88 = arith.constant 1.000000e+00 : f32
    %318 = vector.broadcast %cst_88 : f32 to vector<8x128xf32>
    %319 = arith.subf %318, %311 : vector<8x128xf32>
    %320 = arith.mulf %319, %317 : vector<8x128xf32>
    %321 = arith.mulf %311, %298 : vector<8x128xf32>
    %322 = arith.addf %320, %321 : vector<8x128xf32>
    %c96_89 = arith.constant 96 : index
    %c0_90 = arith.constant 0 : index
    %323 = vector.load %arg8[%c96_89, %c0_90] : memref<128x128xf32, #tpu.memory_space<vmem>>, vector<8x128xf32>
    tpu.vector_store %arg8[%c96_89, %c0_90], %322 {strides = array<i32>} : memref<128x128xf32, #tpu.memory_space<vmem>>, vector<8x128xf32>,
    %c104 = arith.constant 104 : index
    %c0_91 = arith.constant 0 : index
    %324 = vector.load %arg9[%c104, %c0_91] : memref<128x384xf32, #tpu.memory_space<vmem>>, vector<8x384xf32>
    %cst_92 = arith.constant dense<0.000000e+00> : vector<8x384xf32>
    %325 = tpu.matmul %322, %7, %cst_92 {dimension_numbers = #tpu.dot_dimension_numbers<[1], [0], [0], [1], [0, 0, 1, 1], [], []>} : vector<8x128xf32>, vector<128x384xf32>, vector<8x384xf32> -> vector<8x384xf32>
    %326 = vector.extract_strided_slice %324 {offsets = [0, 0], sizes = [8, 256], strides = [1, 1]} : vector<8x384xf32> to vector<8x256xf32>
    %327 = vector.extract_strided_slice %325 {offsets = [0, 0], sizes = [8, 256], strides = [1, 1]} : vector<8x384xf32> to vector<8x256xf32>
    %328 = arith.addf %326, %327 : vector<8x256xf32>
    %329 = arith.negf %328 : vector<8x256xf32>
    %330 = math.exp %329 : vector<8x256xf32>
    %cst_93 = arith.constant 1.000000e+00 : f32
    %331 = vector.broadcast %cst_93 : f32 to vector<8x256xf32>
    %332 = arith.addf %331, %330 : vector<8x256xf32>
    %333 = arith.divf %331, %332 : vector<8x256xf32>
    %334 = vector.extract_strided_slice %333 {offsets = [0, 0], sizes = [8, 128], strides = [1, 1]} : vector<8x256xf32> to vector<8x128xf32>
    %335 = vector.extract_strided_slice %333 {offsets = [0, 128], sizes = [8, 128], strides = [1, 1]} : vector<8x256xf32> to vector<8x128xf32>
    %336 = vector.extract_strided_slice %324 {offsets = [0, 256], sizes = [8, 128], strides = [1, 1]} : vector<8x384xf32> to vector<8x128xf32>
    %337 = vector.extract_strided_slice %325 {offsets = [0, 256], sizes = [8, 128], strides = [1, 1]} : vector<8x384xf32> to vector<8x128xf32>
    %338 = arith.addf %337, %10 : vector<8x128xf32>
    %339 = arith.mulf %334, %338 : vector<8x128xf32>
    %340 = arith.addf %336, %339 : vector<8x128xf32>
    %341 = math.tanh %340 : vector<8x128xf32>
    %cst_94 = arith.constant 1.000000e+00 : f32
    %342 = vector.broadcast %cst_94 : f32 to vector<8x128xf32>
    %343 = arith.subf %342, %335 : vector<8x128xf32>
    %344 = arith.mulf %343, %341 : vector<8x128xf32>
    %345 = arith.mulf %335, %322 : vector<8x128xf32>
    %346 = arith.addf %344, %345 : vector<8x128xf32>
    %c104_95 = arith.constant 104 : index
    %c0_96 = arith.constant 0 : index
    %347 = vector.load %arg8[%c104_95, %c0_96] : memref<128x128xf32, #tpu.memory_space<vmem>>, vector<8x128xf32>
    tpu.vector_store %arg8[%c104_95, %c0_96], %346 {strides = array<i32>} : memref<128x128xf32, #tpu.memory_space<vmem>>, vector<8x128xf32>,
    %c112 = arith.constant 112 : index
    %c0_97 = arith.constant 0 : index
    %348 = vector.load %arg9[%c112, %c0_97] : memref<128x384xf32, #tpu.memory_space<vmem>>, vector<8x384xf32>
    %cst_98 = arith.constant dense<0.000000e+00> : vector<8x384xf32>
    %349 = tpu.matmul %346, %7, %cst_98 {dimension_numbers = #tpu.dot_dimension_numbers<[1], [0], [0], [1], [0, 0, 1, 1], [], []>} : vector<8x128xf32>, vector<128x384xf32>, vector<8x384xf32> -> vector<8x384xf32>
    %350 = vector.extract_strided_slice %348 {offsets = [0, 0], sizes = [8, 256], strides = [1, 1]} : vector<8x384xf32> to vector<8x256xf32>
    %351 = vector.extract_strided_slice %349 {offsets = [0, 0], sizes = [8, 256], strides = [1, 1]} : vector<8x384xf32> to vector<8x256xf32>
    %352 = arith.addf %350, %351 : vector<8x256xf32>
    %353 = arith.negf %352 : vector<8x256xf32>
    %354 = math.exp %353 : vector<8x256xf32>
    %cst_99 = arith.constant 1.000000e+00 : f32
    %355 = vector.broadcast %cst_99 : f32 to vector<8x256xf32>
    %356 = arith.addf %355, %354 : vector<8x256xf32>
    %357 = arith.divf %355, %356 : vector<8x256xf32>
    %358 = vector.extract_strided_slice %357 {offsets = [0, 0], sizes = [8, 128], strides = [1, 1]} : vector<8x256xf32> to vector<8x128xf32>
    %359 = vector.extract_strided_slice %357 {offsets = [0, 128], sizes = [8, 128], strides = [1, 1]} : vector<8x256xf32> to vector<8x128xf32>
    %360 = vector.extract_strided_slice %348 {offsets = [0, 256], sizes = [8, 128], strides = [1, 1]} : vector<8x384xf32> to vector<8x128xf32>
    %361 = vector.extract_strided_slice %349 {offsets = [0, 256], sizes = [8, 128], strides = [1, 1]} : vector<8x384xf32> to vector<8x128xf32>
    %362 = arith.addf %361, %10 : vector<8x128xf32>
    %363 = arith.mulf %358, %362 : vector<8x128xf32>
    %364 = arith.addf %360, %363 : vector<8x128xf32>
    %365 = math.tanh %364 : vector<8x128xf32>
    %cst_100 = arith.constant 1.000000e+00 : f32
    %366 = vector.broadcast %cst_100 : f32 to vector<8x128xf32>
    %367 = arith.subf %366, %359 : vector<8x128xf32>
    %368 = arith.mulf %367, %365 : vector<8x128xf32>
    %369 = arith.mulf %359, %346 : vector<8x128xf32>
    %370 = arith.addf %368, %369 : vector<8x128xf32>
    %c112_101 = arith.constant 112 : index
    %c0_102 = arith.constant 0 : index
    %371 = vector.load %arg8[%c112_101, %c0_102] : memref<128x128xf32, #tpu.memory_space<vmem>>, vector<8x128xf32>
    tpu.vector_store %arg8[%c112_101, %c0_102], %370 {strides = array<i32>} : memref<128x128xf32, #tpu.memory_space<vmem>>, vector<8x128xf32>,
    %c120 = arith.constant 120 : index
    %c0_103 = arith.constant 0 : index
    %372 = vector.load %arg9[%c120, %c0_103] : memref<128x384xf32, #tpu.memory_space<vmem>>, vector<8x384xf32>
    %cst_104 = arith.constant dense<0.000000e+00> : vector<8x384xf32>
    %373 = tpu.matmul %370, %7, %cst_104 {dimension_numbers = #tpu.dot_dimension_numbers<[1], [0], [0], [1], [0, 0, 1, 1], [], []>} : vector<8x128xf32>, vector<128x384xf32>, vector<8x384xf32> -> vector<8x384xf32>
    %374 = vector.extract_strided_slice %372 {offsets = [0, 0], sizes = [8, 256], strides = [1, 1]} : vector<8x384xf32> to vector<8x256xf32>
    %375 = vector.extract_strided_slice %373 {offsets = [0, 0], sizes = [8, 256], strides = [1, 1]} : vector<8x384xf32> to vector<8x256xf32>
    %376 = arith.addf %374, %375 : vector<8x256xf32>
    %377 = arith.negf %376 : vector<8x256xf32>
    %378 = math.exp %377 : vector<8x256xf32>
    %cst_105 = arith.constant 1.000000e+00 : f32
    %379 = vector.broadcast %cst_105 : f32 to vector<8x256xf32>
    %380 = arith.addf %379, %378 : vector<8x256xf32>
    %381 = arith.divf %379, %380 : vector<8x256xf32>
    %382 = vector.extract_strided_slice %381 {offsets = [0, 0], sizes = [8, 128], strides = [1, 1]} : vector<8x256xf32> to vector<8x128xf32>
    %383 = vector.extract_strided_slice %381 {offsets = [0, 128], sizes = [8, 128], strides = [1, 1]} : vector<8x256xf32> to vector<8x128xf32>
    %384 = vector.extract_strided_slice %372 {offsets = [0, 256], sizes = [8, 128], strides = [1, 1]} : vector<8x384xf32> to vector<8x128xf32>
    %385 = vector.extract_strided_slice %373 {offsets = [0, 256], sizes = [8, 128], strides = [1, 1]} : vector<8x384xf32> to vector<8x128xf32>
    %386 = arith.addf %385, %10 : vector<8x128xf32>
    %387 = arith.mulf %382, %386 : vector<8x128xf32>
    %388 = arith.addf %384, %387 : vector<8x128xf32>
    %389 = math.tanh %388 : vector<8x128xf32>
    %cst_106 = arith.constant 1.000000e+00 : f32
    %390 = vector.broadcast %cst_106 : f32 to vector<8x128xf32>
    %391 = arith.subf %390, %383 : vector<8x128xf32>
    %392 = arith.mulf %391, %389 : vector<8x128xf32>
    %393 = arith.mulf %383, %370 : vector<8x128xf32>
    %394 = arith.addf %392, %393 : vector<8x128xf32>
    %c120_107 = arith.constant 120 : index
    %c0_108 = arith.constant 0 : index
    %395 = vector.load %arg8[%c120_107, %c0_108] : memref<128x128xf32, #tpu.memory_space<vmem>>, vector<8x128xf32>
    tpu.vector_store %arg8[%c120_107, %c0_108], %394 {strides = array<i32>} : memref<128x128xf32, #tpu.memory_space<vmem>>, vector<8x128xf32>,
    %c0_109 = arith.constant 0 : index
    %c0_110 = arith.constant 0 : index
    %396 = vector.load %arg8[%c0_109, %c0_110] : memref<128x128xf32, #tpu.memory_space<vmem>>, vector<128x128xf32>
    %c0_111 = arith.constant 0 : index
    %c0_112 = arith.constant 0 : index
    %397 = vector.load %arg5[%c0_111, %c0_112] : memref<128x128xf32, #tpu.memory_space<vmem>>, vector<128x128xf32>
    %cst_113 = arith.constant dense<0.000000e+00> : vector<128x128xf32>
    %398 = tpu.matmul %396, %397, %cst_113 {dimension_numbers = #tpu.dot_dimension_numbers<[1], [0], [0], [1], [0, 0, 1, 1], [], []>} : vector<128x128xf32>, vector<128x128xf32>, vector<128x128xf32> -> vector<128x128xf32>
    %c0_114 = arith.constant 0 : index
    %c0_115 = arith.constant 0 : index
    %399 = vector.load %arg6[%c0_114, %c0_115] : memref<1x128xf32, #tpu.memory_space<vmem>>, vector<1x128xf32>
    %400 = vector.broadcast %399 : vector<1x128xf32> to vector<128x128xf32>
    %401 = arith.addf %398, %400 : vector<128x128xf32>
    %c0_116 = arith.constant 0 : index
    %c0_117 = arith.constant 0 : index
    %402 = vector.load %arg0[%c0_116, %c0_117] : memref<128x128xf32, #tpu.memory_space<vmem>>, vector<128x1xf32>
    %403 = vector.broadcast %402 : vector<128x1xf32> to vector<128x128xf32>
    %404 = arith.addf %401, %403 : vector<128x128xf32>
    %c0_118 = arith.constant 0 : index
    %c0_119 = arith.constant 0 : index
    %405 = vector.load %arg7[%c0_118, %c0_119] : memref<128x128xf32, #tpu.memory_space<vmem>>, vector<128x128xf32>
    tpu.vector_store %arg7[%c0_118, %c0_119], %404 {strides = array<i32>} : memref<128x128xf32, #tpu.memory_space<vmem>>, vector<128x128xf32>,
    return
  }
}

</mosaic_0001>

<bundles_post_ra>
// kernel: tpu_custom_call.1
= control target key start
LH: loop header
LB: loop body
LE: loop exit
PB: predicated region body
PF: predicated region fallthrough
CT: control target
= control target key end

     0   :  { %14 = vsyncpa [#allocation4], 0  ;;  %s6893_s0 = inlined_call_operand.hbm [shape: f32[128,128], index: 0, kind: input, shape index: {}]   ;;  %s6894_s1 = inlined_call_operand.hbm [shape: f32[128,384], index: 1, kind: input, shape index: {}]   ;;  %s6895_s2 = inlined_call_operand.hbm [shape: f32[128,384], index: 2, kind: input, shape index: {}]   ;;  %s6896_s3 = inlined_call_operand.vmem [shape: f32[1,384], index: 3, kind: input, shape index: {}]   ;;  %s6897_s4 = inlined_call_operand.vmem [shape: f32[1,128], index: 4, kind: input, shape index: {}]   ;;  %s6898_s5 = inlined_call_operand.hbm [shape: f32[128,128], index: 5, kind: input, shape index: {}]   ;;  %s6899_s6 = inlined_call_operand.vmem [shape: f32[1,128], index: 6, kind: input, shape index: {}]   ;;  %s6900_s7 = inlined_call_operand.hbm [shape: f32[128,128], index: 7, kind: output, shape index: {0}]   ;;  %s6901_s8 = inlined_call_operand.hbm [shape: f32[128,128], index: 8, kind: output, shape index: {1}]  }
   0x1   :  { %15 = vsyncpa [#allocation7], 0 }
   0x2   :  { %16 = vsyncpa [#allocation10], 0 }
   0x3   :  { %17 = vsyncpa [#allocation5], 0 }
   0x4   :  { %18 = vsyncpa [#allocation13], 0  ;;  %s5039_s27 = smov [#allocation6]  }
   0x5   :  { %s36_s28 = sshll.u32 %s5039_s27, 4  ;;  %s37_s28 = int_to_ptr.vmem [resolvable:$true] %s36_s28 }
   0x6   :  { %s4917_s29 = scalar_lea.vmem %s37_s28, 6144  ;;  %p4922_p1 = scmp.lt.s32.totalorder %s37_s28, %s37_s28 }
   0x7   :  { %p4918_p0 = scmp.ne.s32.totalorder %s37_s28, %s4917_s29  ;;  %p4923_p2 = scmp.lt.s32.totalorder %s4917_s29, %s4917_s29 }
   0x9   :  { %p4924_p3 = por %p4923_p2, %p4922_p1 }
   0xb   :  { %p4925_p4 = pnand %p4924_p3, %p4918_p0 }
   0xd   :  { %4928 = shalt.err (!%p4925_p4)
}
   0xe   :  { %s5040_s30 = smov 384   ;;  %s5041_s9 = smov 24  }
   0xf   :  { %42 = dma.hbm_to_vmem [thread:$0]  %s6894_s1, 6144, %s37_s28, [#allocation7], %s5040_s30, %s5040_s30, %s5041_s9  }
  0x10   :  { %s5042_s12 = smov [#allocation3]  }
  0x11   :  { %s24_s13 = sshll.u32 %s5042_s12, 4  ;;  %s25_s13 = int_to_ptr.vmem [resolvable:$true] %s24_s13 }
  0x12   :  { %s4937_s14 = scalar_lea.vmem %s25_s13, 2048  ;;  %p4942_p6 = scmp.lt.s32.totalorder %s25_s13, %s25_s13 }
  0x13   :  { %p4938_p5 = scmp.ne.s32.totalorder %s25_s13, %s4937_s14  ;;  %p4943_p7 = scmp.lt.s32.totalorder %s4937_s14, %s4937_s14 }
  0x15   :  { %p4944_p8 = por %p4943_p7, %p4942_p6 }
  0x17   :  { %p4945_p9 = pnand %p4944_p8, %p4938_p5 }
  0x19   :  { %4948 = shalt.err (!%p4945_p9)
}
  0x1a   :  { %s5043_s15 = smov 128   ;;  %s5044_s16 = smov 8  }
  0x1b   :  { %30 = dma.hbm_to_vmem [thread:$0]  %s6893_s0, 2048, %s25_s13, [#allocation4], %s5043_s15, %s5043_s15, %s5044_s16  }
  0x1c   :  { %s5045_s1 = smov [#allocation8]   ;;  %s5046_s20 = smov [#allocation9]  }
  0x1d   :  { %s48_s19 = sshll.u32 %s5045_s1, 4  ;;  %s64_s21 = sshll.u32 %s5046_s20, 4  ;;  %s49_s19 = int_to_ptr.vmem [resolvable:$true] %s48_s19  ;;  %s65_s21 = int_to_ptr.vmem [resolvable:$true] %s64_s21 }
  0x1e   :  { %s4957_s22 = scalar_lea.vmem %s49_s19, 6144  ;;  %p4962_p11 = scmp.lt.s32.totalorder %s49_s19, %s49_s19 }
  0x1f   :  { %p4958_p10 = scmp.ne.s32.totalorder %s49_s19, %s4957_s22  ;;  %p4963_p12 = scmp.lt.s32.totalorder %s4957_s22, %s4957_s22 }
  0x21   :  { %p4964_p13 = por %p4963_p12, %p4962_p11 }
  0x23   :  { %p4965_p0 = pnand %p4964_p13, %p4958_p10 }
  0x25   :  { %4968 = shalt.err (!%p4965_p0)
}
  0x26   :  { %54 = dma.hbm_to_vmem [thread:$0]  %s6895_s2, 6144, %s49_s19, [#allocation7], %s5040_s30, %s5040_s30, %s5041_s9  }
  0x27   :  { %s4977_s0 = scalar_lea.vmem %s65_s21, 2048  ;;  %p4982_p2 = scmp.lt.s32.totalorder %s65_s21, %s65_s21 }
  0x28   :  { %p4978_p1 = scmp.ne.s32.totalorder %s65_s21, %s4977_s0  ;;  %p4983_p3 = scmp.lt.s32.totalorder %s4977_s0, %s4977_s0 }
  0x2a   :  { %p4984_p4 = por %p4983_p3, %p4982_p2 }
  0x2c   :  { %p4985_p5 = pnand %p4984_p4, %p4978_p1 }
  0x2e   :  { %4988 = shalt.err (!%p4985_p5)
}
  0x2f   :  { %70 = dma.hbm_to_vmem [thread:$0]  %s6898_s5, 2048, %s65_s21, [#allocation10], %s5043_s15, %s5043_s15, %s5044_s16  }
  0x30   :  { %5029 = dma.done.wait [#allocation4], 2048  }
  0x31   :  { %5030 = vsyncadd [#allocation4], 4294965248 }
  0x32   :  { %5031 = dma.done.wait [#allocation7], 12288  }
  0x33   :  { %5032 = vsyncadd [#allocation7], 4294955008 }
  0x34   :  { %5033 = dma.done.wait [#allocation10], 2048  }
  0x35   :  { %5034 = vsyncadd [#allocation10], 4294965248  ;;  %v6902_v0 = vmov 0.0   ;;  %v147_v1 = vld [vmem:[#allocation6 + $0x170] sm:$0xff]  ;;  %v148_v2 = vld [vmem:[#allocation6 + $0x178] sm:$0xff]  ;;  %vm5048_vm0 = vmmov 0  }
  0x36   :  { %230 = vmatprep.mubr.f32.mxu0 %v6902_v0  ;;  %v146_v3 = vld [vmem:[#allocation6 + $0x168] sm:$0xff]  ;;  %166 = vmatprep.subr.mxu0 %v147_v1  ;;  %v144_v4 = vld [vmem:[#allocation6 + $0x158] sm:$0xff]  ;;  %v145_v5 = vld [vmem:[#allocation6 + $0x160] sm:$0xff] }
  0x37   :  { %3964 = vmatprep.subr.mxu1 %v148_v2  ;;  %v143_v6 = vld [vmem:[#allocation6 + $0x150] sm:$0xff]  ;;  %167 = vmatpush1.msra.mxu0 %v146_v3  ;;  %v141_v7 = vld [vmem:[#allocation6 + $0x140] sm:$0xff]  ;;  %v142_v8 = vld [vmem:[#allocation6 + $0x148] sm:$0xff] }
  0x38   :  { %3965 = vmatpush3.msra.mxu1 %v148_v2  ;;  %168 = vmatprep.subr.mxu0 %v144_v4  ;;  %v140_v9 = vld [vmem:[#allocation6 + $0x138] sm:$0xff]  ;;  %v138_v10 = vld [vmem:[#allocation6 + $0x128] sm:$0xff]  ;;  %v139_v11 = vld [vmem:[#allocation6 + $0x130] sm:$0xff] }
  0x39   :  { %3966 = vmatprep.subr.mxu1 %v145_v5  ;;  %169 = vmatpush1.msra.mxu0 %v143_v6  ;;  %v137_v12 = vld [vmem:[#allocation6 + $0x120] sm:$0xff]  ;;  %v135_v13 = vld [vmem:[#allocation6 + $0x110] sm:$0xff]  ;;  %v136_v14 = vld [vmem:[#allocation6 + $0x118] sm:$0xff] }
  0x3a   :  { %3967 = vmatpush3.msra.mxu1 %v145_v5  ;;  %170 = vmatprep.subr.mxu0 %v141_v7  ;;  %v134_v15 = vld [vmem:[#allocation6 + $0x108] sm:$0xff]  ;;  %v132_v16 = vld [vmem:[#allocation6 + $0xf8] sm:$0xff]  ;;  %v133_v17 = vld [vmem:[#allocation6 + $0x100] sm:$0xff] }
  0x3b   :  { %3968 = vmatprep.subr.mxu1 %v142_v8  ;;  %171 = vmatpush1.msra.mxu0 %v140_v9  ;;  %v131_v18 = vld [vmem:[#allocation6 + $0xf0] sm:$0xff]  ;;  %v129_v19 = vld [vmem:[#allocation6 + $0xe0] sm:$0xff]  ;;  %v130_v20 = vld [vmem:[#allocation6 + $0xe8] sm:$0xff] }
  0x3c   :  { %3969 = vmatpush3.msra.mxu1 %v142_v8  ;;  %172 = vmatprep.subr.mxu0 %v138_v10  ;;  %v128_v21 = vld [vmem:[#allocation6 + $0xd8] sm:$0xff]  ;;  %v126_v22 = vld [vmem:[#allocation6 + $0xc8] sm:$0xff]  ;;  %v127_v23 = vld [vmem:[#allocation6 + $0xd0] sm:$0xff] }
  0x3d   :  { %3970 = vmatprep.subr.mxu1 %v139_v11  ;;  %173 = vmatpush1.msra.mxu0 %v137_v12  ;;  %v125_v24 = vld [vmem:[#allocation6 + $0xc0] sm:$0xff]  ;;  %v123_v25 = vld [vmem:[#allocation6 + $0xb0] sm:$0xff]  ;;  %v124_v26 = vld [vmem:[#allocation6 + $0xb8] sm:$0xff] }
  0x3e   :  { %3971 = vmatpush3.msra.mxu1 %v139_v11  ;;  %174 = vmatprep.subr.mxu0 %v135_v13  ;;  %v122_v27 = vld [vmem:[#allocation6 + $0xa8] sm:$0xff]  ;;  %v120_v28 = vld [vmem:[#allocation6 + $0x98] sm:$0xff]  ;;  %v121_v29 = vld [vmem:[#allocation6 + $0xa0] sm:$0xff] }
  0x3f   :  { %3972 = vmatprep.subr.mxu1 %v136_v14  ;;  %175 = vmatpush1.msra.mxu0 %v134_v15  ;;  %v119_v30 = vld [vmem:[#allocation6 + $0x90] sm:$0xff]  ;;  %v117_v31 = vld [vmem:[#allocation6 + $0x80] sm:$0xff]  ;;  %v118_v32 = vld [vmem:[#allocation6 + $0x88] sm:$0xff] }
  0x40   :  { %3973 = vmatpush3.msra.mxu1 %v136_v14  ;;  %176 = vmatprep.subr.mxu0 %v132_v16  ;;  %v116_v33 = vld [vmem:[#allocation6 + $0x78] sm:$0xff]  ;;  %v114_v34 = vld [vmem:[#allocation6 + $0x68] sm:$0xff]  ;;  %v115_v35 = vld [vmem:[#allocation6 + $0x70] sm:$0xff] }
  0x41   :  { %3974 = vmatprep.subr.mxu1 %v133_v17  ;;  %177 = vmatpush1.msra.mxu0 %v131_v18  ;;  %v113_v36 = vld [vmem:[#allocation6 + $0x60] sm:$0xff]  ;;  %v111_v37 = vld [vmem:[#allocation6 + $0x50] sm:$0xff]  ;;  %v112_v38 = vld [vmem:[#allocation6 + $0x58] sm:$0xff] }
  0x42   :  { %3975 = vmatpush3.msra.mxu1 %v133_v17  ;;  %178 = vmatprep.subr.mxu0 %v129_v19  ;;  %v110_v39 = vld [vmem:[#allocation6 + $0x48] sm:$0xff]  ;;  %v108_v40 = vld [vmem:[#allocation6 + $0x38] sm:$0xff]  ;;  %v109_v41 = vld [vmem:[#allocation6 + $0x40] sm:$0xff] }
  0x43   :  { %3976 = vmatprep.subr.mxu1 %v130_v20  ;;  %179 = vmatpush1.msra.mxu0 %v128_v21  ;;  %v107_v42 = vld [vmem:[#allocation6 + $0x30] sm:$0xff]  ;;  %v105_v43 = vld [vmem:[#allocation6 + $0x20] sm:$0xff]  ;;  %v106_v44 = vld [vmem:[#allocation6 + $0x28] sm:$0xff] }
  0x44   :  { %3977 = vmatpush3.msra.mxu1 %v130_v20  ;;  %180 = vmatprep.subr.mxu0 %v126_v22  ;;  %v104_v45 = vld [vmem:[#allocation6 + $0x18] sm:$0xff]  ;;  %v102_v46 = vld [vmem:[#allocation6 + $0x8] sm:$0xff]  ;;  %v103_v47 = vld [vmem:[#allocation6 + $0x10] sm:$0xff] }
  0x45   :  { %3978 = vmatprep.subr.mxu1 %v127_v23  ;;  %181 = vmatpush1.msra.mxu0 %v125_v24  ;;  %v101_v48 = vld [vmem:[#allocation6] sm:$0xff]  ;;  %v86_v50 = vld [vmem:[#allocation3 + $0x8] sm:$0xff]  ;;  %v5122_v51 = vld [vmem:[#allocation8 + $0x170] sm:$0xff] }
  0x46   :  { %3979 = vmatpush3.msra.mxu1 %v127_v23  ;;  %182 = vmatprep.subr.mxu0 %v123_v25  ;;  %v85_v49 = vld [vmem:[#allocation3] sm:$0xff]  ;;  %6951 = vst [vmem:[#allocation19_spill] sm:$0xff] %v5122_v51  ;;  %v5124_v52 = vld [vmem:[#allocation8 + $0x168] sm:$0xff]  ;;  %v5126_v53 = vld [vmem:[#allocation8 + $0x178] sm:$0xff] }
  0x47   :  { %3980 = vmatprep.subr.mxu1 %v124_v26  ;;  %183 = vmatpush1.msra.mxu0 %v122_v27  ;;  %v5128_v54 = vld [vmem:[#allocation8 + $0x158] sm:$0xff]  ;;  %v87_v55 = vld [vmem:[#allocation3 + $0x10] sm:$0xff]  ;;  %v5137_v58 = vld [vmem:[#allocation8 + $0x140] sm:$0xff] }
  0x48   :  { %3981 = vmatpush3.msra.mxu1 %v124_v26  ;;  %184 = vmatprep.subr.mxu0 %v120_v28  ;;  %v5133_v56 = vld [vmem:[#allocation8 + $0x150] sm:$0xff]  ;;  %v88_v57 = vld [vmem:[#allocation3 + $0x18] sm:$0xff]  ;;  %v5143_v60 = vld [vmem:[#allocation8 + $0x160] sm:$0xff] }
  0x49   :  { %3982 = vmatprep.subr.mxu1 %v121_v29  ;;  %185 = vmatpush1.msra.mxu0 %v119_v30  ;;  %v5140_v59 = vld [vmem:[#allocation8 + $0x138] sm:$0xff]  ;;  %v5145_v61 = vld [vmem:[#allocation8 + $0x128] sm:$0xff]  ;;  %v89_v62 = vld [vmem:[#allocation3 + $0x20] sm:$0xff] }
  0x4a   :  { %3983 = vmatpush3.msra.mxu1 %v121_v29  ;;  %186 = vmatprep.subr.mxu0 %v117_v31  ;;  %v5150_v63 = vld [vmem:[#allocation8 + $0x120] sm:$0xff]  ;;  %v90_v1 = vld [vmem:[#allocation3 + $0x28] sm:$0xff]  ;;  %v5154_v2 = vld [vmem:[#allocation8 + $0x110] sm:$0xff] }
  0x4b   :  { %3984 = vmatprep.subr.mxu1 %v118_v32  ;;  %187 = vmatpush1.msra.mxu0 %v116_v33  ;;  %v5157_v3 = vld [vmem:[#allocation8 + $0x108] sm:$0xff]  ;;  %v5162_v5 = vld [vmem:[#allocation8 + $0xf8] sm:$0xff]  ;;  %v91_v6 = vld [vmem:[#allocation3 + $0x30] sm:$0xff] }
  0x4c   :  { %3985 = vmatpush3.msra.mxu1 %v118_v32  ;;  %188 = vmatprep.subr.mxu0 %v114_v34  ;;  %v5160_v4 = vld [vmem:[#allocation8 + $0x148] sm:$0xff]  ;;  %v5167_v7 = vld [vmem:[#allocation8 + $0xf0] sm:$0xff]  ;;  %v5171_v8 = vld [vmem:[#allocation3 + $0x38] sm:$0xff] }
  0x4d   :  { %3986 = vmatprep.subr.mxu1 %v115_v35  ;;  %189 = vmatpush1.msra.mxu0 %v113_v36  ;;  %v5173_v9 = vld [vmem:[#allocation8 + $0xe0] sm:$0xff]  ;;  %v5176_v10 = vld [vmem:[#allocation8 + $0xd8] sm:$0xff]  ;;  %v5179_v11 = vld [vmem:[#allocation8 + $0x130] sm:$0xff] }
  0x4e   :  { %3987 = vmatpush3.msra.mxu1 %v115_v35  ;;  %190 = vmatprep.subr.mxu0 %v111_v37  ;;  %v5181_v12 = vld [vmem:[#allocation8 + $0xc8] sm:$0xff]  ;;  %v5185_v13 = vld [vmem:[#allocation3 + $0x40] sm:$0xff]  ;;  %v5195_v16 = vld [vmem:[#allocation8 + $0xb0] sm:$0xff] }
  0x4f   :  { %3988 = vmatprep.subr.mxu1 %v112_v38  ;;  %191 = vmatpush1.msra.mxu0 %v110_v39  ;;  %v5189_v14 = vld [vmem:[#allocation8 + $0xc0] sm:$0xff]  ;;  %v5193_v15 = vld [vmem:[#allocation3 + $0x48] sm:$0xff]  ;;  %v5202_v18 = vld [vmem:[#allocation8 + $0x118] sm:$0xff] }
  0x50   :  { %3989 = vmatpush3.msra.mxu1 %v112_v38  ;;  %192 = vmatprep.subr.mxu0 %v108_v40  ;;  %v5199_v17 = vld [vmem:[#allocation8 + $0xa8] sm:$0xff]  ;;  %v5204_v19 = vld [vmem:[#allocation8 + $0x98] sm:$0xff]  ;;  %v5208_v20 = vld [vmem:[#allocation3 + $0x50] sm:$0xff] }
  0x51   :  { %3990 = vmatprep.subr.mxu1 %v109_v41  ;;  %193 = vmatpush1.msra.mxu0 %v107_v42  ;;  %v5212_v21 = vld [vmem:[#allocation8 + $0x90] sm:$0xff]  ;;  %v5216_v22 = vld [vmem:[#allocation3 + $0x58] sm:$0xff]  ;;  %v5218_v23 = vld [vmem:[#allocation8 + $0x80] sm:$0xff] }
  0x52   :  { %3991 = vmatpush3.msra.mxu1 %v109_v41  ;;  %194 = vmatprep.subr.mxu0 %v105_v43  ;;  %v5222_v24 = vld [vmem:[#allocation8 + $0x78] sm:$0xff]  ;;  %v5225_v25 = vld [vmem:[#allocation8 + $0x100] sm:$0xff]  ;;  %v5227_v26 = vld [vmem:[#allocation8 + $0x68] sm:$0xff] }
  0x53   :  { %3992 = vmatprep.subr.mxu1 %v106_v44  ;;  %195 = vmatpush1.msra.mxu0 %v104_v45  ;;  %v5231_v27 = vld [vmem:[#allocation3 + $0x60] sm:$0xff]  ;;  %v5239_v29 = vld [vmem:[#allocation3 + $0x68] sm:$0xff]  ;;  %v5241_v30 = vld [vmem:[#allocation8 + $0x50] sm:$0xff] }
  0x54   :  { %3993 = vmatpush3.msra.mxu1 %v106_v44  ;;  %196 = vmatprep.subr.mxu0 %v102_v46  ;;  %v5235_v28 = vld [vmem:[#allocation8 + $0x60] sm:$0xff]  ;;  %v5245_v31 = vld [vmem:[#allocation8 + $0x48] sm:$0xff]  ;;  %v5250_v33 = vld [vmem:[#allocation8 + $0x38] sm:$0xff] }
  0x55   :  { %3994 = vmatprep.subr.mxu1 %v103_v47  ;;  %197 = vmatpush1.msra.mxu0 %v101_v48  ;;  %v5248_v32 = vld [vmem:[#allocation8 + $0xe8] sm:$0xff]  ;;  %v5254_v34 = vld [vmem:[#allocation3 + $0x70] sm:$0xff]  ;;  %v5262_v36 = vld [vmem:[#allocation3 + $0x78] sm:$0xff] }
  0x56   :  { %3995 = vmatpush3.msra.mxu1 %v103_v47  ;;  %3996 = vmatprep.mubr.f32.mxu1 %v85_v49  ;;  %v5258_v35 = vld [vmem:[#allocation8 + $0x30] sm:$0xff]  ;;  %v5264_v37 = vld [vmem:[#allocation8 + $0x20] sm:$0xff]  ;;  %v5268_v38 = vld [vmem:[#allocation8 + $0x18] sm:$0xff] }
  0x57   :  { %231 = vmatmul.mubr.f32.vlgmr.msra.gmra.mxu0 %v85_v49  ;;  %3997 = vmatmul.mubr.f32.vlgmr.msra.gmra.mxu1 %v86_v50  ;;  %6952 = vst [vmem:[#allocation20_spill] sm:$0xff] %v5268_v38  ;;  %v5272_v39 = vld [vmem:[#allocation8 + $0xd0] sm:$0xff]  ;;  %v5274_v40 = vld [vmem:[#allocation8 + $0x8] sm:$0xff]  ;;  %v5278_v41 = vld [vmem:[#allocation8] sm:$0xff] }
  0x58   :  { %578 = vmatprep.subr.mxu1 %v5122_v51  ;;  %4020 = vmatprep.subr.mxu0 %v6902_v0  ;;  %6953 = vst [vmem:[#allocation21_spill] sm:$0xff] %v5274_v40  ;;  %6954 = vst [vmem:[#allocation22_spill] sm:$0xff] %v5278_v41  ;;  %v5286_v42 = vld [vmem:[#allocation8 + $0xb8] sm:$0xff]  ;;  %v5294_v43 = vld [vmem:[#allocation8 + $0xa0] sm:$0xff] }
  0x59   :  { %579 = vmatpush1.msra.mxu1 %v5124_v52  ;;  %4021 = vmatpush3.msra.mxu0 %v5126_v53  ;;  %v5299_v44 = vld [vmem:[#allocation8 + $0x88] sm:$0xff]  ;;  %v5305_v45 = vld [vmem:[#allocation8 + $0x70] sm:$0xff]  ;;  %v5312_v46 = vld [vmem:[#allocation8 + $0x58] sm:$0xff] }
  0x5a   :  { %580 = vmatprep.subr.mxu1 %v5128_v54  ;;  %236 = vmatprep.mubr.f32.mxu0 %v6902_v0  ;;  %v5317_v47 = vld [vmem:[#allocation8 + $0x40] sm:$0xff]  ;;  %v5324_v48 = vld [vmem:[#allocation8 + $0x28] sm:$0xff]  ;;  %v5329_v49 = vld [vmem:[#allocation8 + $0x10] sm:$0xff] }
  0x5b   :  { %3999 = vmatprep.mubr.f32.mxu1 %v87_v55  ;;  %581 = vmatpush1.msra.mxu1 %v5133_v56  ;;  %6955 = vst [vmem:[#allocation23_spill] sm:$0xff] %v5324_v48  ;;  %6956 = vst [vmem:[#allocation24_spill] sm:$0xff] %v5329_v49 }
  0x5c   :  { %237 = vmatmul.mubr.f32.gmra.mxu0 %v86_v50  ;;  %4000 = vmatmul.mubr.f32.gmra.mxu1 %v88_v57  ;;  %v151_v50 = vlaneseq }
  0x5d   :  { %582 = vmatprep.subr.mxu1 %v5137_v58  ;;  %4022 = vmatprep.subr.mxu0 %v6902_v0 }
  0x5e   :  { %583 = vmatpush1.msra.mxu1 %v5140_v59  ;;  %4023 = vmatpush3.msra.mxu0 %v5143_v60 }
  0x5f   :  { %584 = vmatprep.subr.mxu1 %v5145_v61  ;;  %242 = vmatprep.mubr.f32.mxu0 %v6902_v0 }
  0x60   :  { %4002 = vmatprep.mubr.f32.mxu1 %v89_v62  ;;  %585 = vmatpush1.msra.mxu1 %v5150_v63 }
  0x61   :  { %243 = vmatmul.mubr.f32.gmra.mxu0 %v87_v55  ;;  %4003 = vmatmul.mubr.f32.gmra.mxu1 %v90_v1  ;;  %v152_v55 = vshrl.u32 %v151_v50, 7 }
  0x62   :  { %586 = vmatprep.subr.mxu1 %v5154_v2  ;;  %4024 = vmatprep.subr.mxu0 %v6902_v0 }
  0x63   :  { %587 = vmatpush1.msra.mxu1 %v5157_v3  ;;  %4025 = vmatpush3.msra.mxu0 %v5160_v4 }
  0x64   :  { %588 = vmatprep.subr.mxu1 %v5162_v5  ;;  %248 = vmatprep.mubr.f32.mxu0 %v6902_v0 }
  0x65   :  { %4005 = vmatprep.mubr.f32.mxu1 %v91_v6  ;;  %589 = vmatpush1.msra.mxu1 %v5167_v7 }
  0x66   :  { %249 = vmatmul.mubr.f32.gmra.mxu0 %v88_v57  ;;  %4006 = vmatmul.mubr.f32.gmra.mxu1 %v5171_v8  ;;  %v161_v57 = vsub.s32 2, %v152_v55 }
  0x67   :  { %590 = vmatprep.subr.mxu1 %v5173_v9  ;;  %4026 = vmatprep.subr.mxu0 %v6902_v0 }
  0x68   :  { %591 = vmatpush1.msra.mxu1 %v5176_v10  ;;  %4027 = vmatpush3.msra.mxu0 %v5179_v11 }
  0x69   :  { %592 = vmatprep.subr.mxu1 %v5181_v12  ;;  %254 = vmatprep.mubr.f32.mxu0 %v6902_v0 }
  0x6a   :  { %4008 = vmatprep.mubr.f32.mxu1 %v5185_v13  ;;  %593 = vmatpush1.msra.mxu1 %v5189_v14 }
  0x6b   :  { %255 = vmatmul.mubr.f32.gmra.mxu0 %v89_v62  ;;  %4009 = vmatmul.mubr.f32.gmra.mxu1 %v5193_v15  ;;  %v149_v62 = vld [vmem:[%s6896_s3] sm:$0x7] }
  0x6c   :  { %594 = vmatprep.subr.mxu1 %v5195_v16  ;;  %4028 = vmatprep.subr.mxu0 %v6902_v0 }
  0x6d   :  { %595 = vmatpush1.msra.mxu1 %v5199_v17  ;;  %4029 = vmatpush3.msra.mxu0 %v5202_v18 }
  0x6e   :  { %596 = vmatprep.subr.mxu1 %v5204_v19  ;;  %260 = vmatprep.mubr.f32.mxu0 %v6902_v0 }
  0x6f   :  { %4011 = vmatprep.mubr.f32.mxu1 %v5208_v20  ;;  %597 = vmatpush1.msra.mxu1 %v5212_v21 }
  0x70   :  { %261 = vmatmul.mubr.f32.gmra.mxu0 %v90_v1  ;;  %4012 = vmatmul.mubr.f32.gmra.mxu1 %v5216_v22  ;;  %v5410_v1 = vrot.slane %v149_v62, %v161_v57 }
  0x71   :  { %598 = vmatprep.subr.mxu1 %v5218_v23  ;;  %4030 = vmatprep.subr.mxu0 %v6902_v0 }
  0x72   :  { %599 = vmatpush1.msra.mxu1 %v5222_v24  ;;  %4031 = vmatpush3.msra.mxu0 %v5225_v25 }
  0x73   :  { %600 = vmatprep.subr.mxu1 %v5227_v26  ;;  %266 = vmatprep.mubr.f32.mxu0 %v6902_v0 }
  0x74   :  { %4014 = vmatprep.mubr.f32.mxu1 %v5231_v27  ;;  %601 = vmatpush1.msra.mxu1 %v5235_v28 }
  0x75   :  { %267 = vmatmul.mubr.f32.gmra.mxu0 %v91_v6  ;;  %4015 = vmatmul.mubr.f32.gmra.mxu1 %v5239_v29 }
  0x76   :  { %602 = vmatprep.subr.mxu1 %v5241_v30  ;;  %4032 = vmatprep.subr.mxu0 %v6902_v0 }
  0x77   :  { %603 = vmatpush1.msra.mxu1 %v5245_v31  ;;  %4033 = vmatpush3.msra.mxu0 %v5248_v32 }
  0x78   :  { %604 = vmatprep.subr.mxu1 %v5250_v33  ;;  %272 = vmatprep.mubr.f32.mxu0 %v6902_v0 }
  0x79   :  { %4017 = vmatprep.mubr.f32.mxu1 %v5254_v34  ;;  %605 = vmatpush1.msra.mxu1 %v5258_v35 }
  0x7a   :  { %273 = vmatmul.mubr.f32.gmra.mxu0 %v5171_v8  ;;  %4018 = vmatmul.mubr.f32.gmra.mxu1 %v5262_v36 }
  0x7b   :  { %606 = vmatprep.subr.mxu1 %v5264_v37  ;;  %4034 = vmatprep.subr.mxu0 %v6902_v0 }
  0x7c   :  { %607 = vmatpush1.msra.mxu1 %v5268_v38  ;;  %4035 = vmatpush3.msra.mxu0 %v5272_v39 }
  0x7d   :  { %608 = vmatprep.subr.mxu1 %v5274_v40  ;;  %278 = vmatprep.mubr.f32.mxu0 %v6902_v0 }
  0x7e   :  { %609 = vmatpush1.msra.mxu1 %v5278_v41  ;;  %642 = vmatprep.mubr.f32.mxu1 %v6902_v0 }
  0x7f   :  { %279 = vmatmul.mubr.f32.gmra.mxu0 %v5185_v13  ;;  %643 = vmatmul.mubr.f32.vlgmr.msra.gmra.mxu1 %v6902_v0 }
  0x80   :  { %4036 = vmatprep.subr.mxu0 %v6902_v0  ;;  %284 = vmatprep.mubr.f32.mxu0 %v6902_v0 }
  0x81   :  { %4037 = vmatpush3.msra.mxu0 %v5286_v42  ;;  %745 = vmatprep.subr.mxu1 %v5122_v51 }
  0x82   :  { %4038 = vmatprep.subr.mxu0 %v6902_v0  ;;  %746 = vmatpush1.msra.mxu1 %v5124_v52 }
  0x83   :  { %285 = vmatmul.mubr.f32.gmra.mxu0 %v5193_v15  ;;  %747 = vmatprep.subr.mxu1 %v5128_v54 }
  0x84   :  { %4039 = vmatpush3.msra.mxu0 %v5294_v43  ;;  %290 = vmatprep.mubr.f32.mxu0 %v6902_v0 }
  0x85   :  { %4040 = vmatprep.subr.mxu0 %v6902_v0  ;;  %748 = vmatpush1.msra.mxu1 %v5133_v56 }
  0x86   :  { %4041 = vmatpush3.msra.mxu0 %v5299_v44  ;;  %749 = vmatprep.subr.mxu1 %v5137_v58 }
  0x87   :  { %291 = vmatmul.mubr.f32.gmra.mxu0 %v5208_v20  ;;  %4042 = vmatprep.subr.mxu0 %v6902_v0 }
  0x88   :  { %296 = vmatprep.mubr.f32.mxu0 %v6902_v0  ;;  %4043 = vmatpush3.msra.mxu0 %v5305_v45 }
  0x89   :  { %4044 = vmatprep.subr.mxu0 %v6902_v0  ;;  %750 = vmatpush1.msra.mxu1 %v5140_v59 }
  0x8a   :  { %4045 = vmatpush3.msra.mxu0 %v5312_v46  ;;  %751 = vmatprep.subr.mxu1 %v5145_v61 }
  0x8b   :  { %297 = vmatmul.mubr.f32.gmra.mxu0 %v5216_v22  ;;  %4046 = vmatprep.subr.mxu0 %v6902_v0 }
  0x8c   :  { %302 = vmatprep.mubr.f32.mxu0 %v6902_v0  ;;  %4047 = vmatpush3.msra.mxu0 %v5317_v47 }
  0x8d   :  { %4048 = vmatprep.subr.mxu0 %v6902_v0  ;;  %752 = vmatpush1.msra.mxu1 %v5150_v63 }
  0x8e   :  { %4049 = vmatpush3.msra.mxu0 %v5324_v48  ;;  %753 = vmatprep.subr.mxu1 %v5154_v2 }
  0x8f   :  { %303 = vmatmul.mubr.f32.gmra.mxu0 %v5231_v27  ;;  %4050 = vmatprep.subr.mxu0 %v6902_v0 }
  0x90   :  { %308 = vmatprep.mubr.f32.mxu0 %v6902_v0  ;;  %4051 = vmatpush3.msra.mxu0 %v5329_v49 }
  0x91   :  { %4055 = vmatprep.subr.mxu0 %v6902_v0  ;;  %754 = vmatpush1.msra.mxu1 %v5157_v3 }
  0x92   :  { %809 = vmatprep.mubr.f32.mxu1 %v6902_v0  ;;  %755 = vmatprep.subr.mxu1 %v5162_v5 }
  0x93   :  { %309 = vmatmul.mubr.f32.gmra.mxu0 %v5239_v29  ;;  %756 = vmatpush1.msra.mxu1 %v5167_v7 }
  0x94   :  { %314 = vmatprep.mubr.f32.mxu0 %v6902_v0  ;;  %757 = vmatprep.subr.mxu1 %v5173_v9 }
  0x95   :  { %758 = vmatpush1.msra.mxu1 %v5176_v10 }
  0x96   :  { %759 = vmatprep.subr.mxu1 %v5181_v12 }
  0x97   :  { %315 = vmatmul.mubr.f32.gmra.mxu0 %v5254_v34  ;;  %760 = vmatpush1.msra.mxu1 %v5189_v14 }
  0x98   :  { %320 = vmatprep.mubr.f32.mxu0 %v6902_v0  ;;  %761 = vmatprep.subr.mxu1 %v5195_v16 }
  0x99   :  { %762 = vmatpush1.msra.mxu1 %v5199_v17 }
  0x9a   :  { %763 = vmatprep.subr.mxu1 %v5204_v19 }
  0x9b   :  { %321 = vmatmul.mubr.f32.gmra.mxu0 %v5262_v36  ;;  %764 = vmatpush1.msra.mxu1 %v5212_v21 }
  0x9c   :  { %4052 = vmatprep.mubr.msk.f32.mxu0 %vm5048_vm0, %v6902_v0  ;;  %765 = vmatprep.subr.mxu1 %v5218_v23 }
  0x9d   :  { %766 = vmatpush1.msra.mxu1 %v5222_v24 }
  0x9e   :  { %767 = vmatprep.subr.mxu1 %v5227_v26 }
  0x9f   :  { %4053 = vmatmul.mubr.f32.vlgmr.msra.gmra.mxu0 %v6902_v0  ;;  %768 = vmatpush1.msra.mxu1 %v5235_v28 }
  0xa0   :  { %4056 = vmatpush3.msra.mxu0 %v5126_v53  ;;  %769 = vmatprep.subr.mxu1 %v5241_v30 }
  0xa1   :  { %4057 = vmatprep.subr.mxu0 %v6902_v0  ;;  %770 = vmatpush1.msra.mxu1 %v5245_v31 }
  0xa2   :  { %4058 = vmatpush3.msra.mxu0 %v5143_v60  ;;  %771 = vmatprep.subr.mxu1 %v5250_v33 }
  0xa3   :  { %4059 = vmatprep.subr.mxu0 %v6902_v0  ;;  %772 = vmatpush1.msra.mxu1 %v5258_v35 }
  0xa4   :  { %4060 = vmatpush3.msra.mxu0 %v5160_v4  ;;  %773 = vmatprep.subr.mxu1 %v5264_v37 }
  0xa5   :  { %4061 = vmatprep.subr.mxu0 %v6902_v0  ;;  %774 = vmatpush1.msra.mxu1 %v5268_v38 }
  0xa6   :  { %4062 = vmatpush3.msra.mxu0 %v5179_v11  ;;  %775 = vmatprep.subr.mxu1 %v5274_v40 }
  0xa7   :  { %4063 = vmatprep.subr.mxu0 %v6902_v0  ;;  %776 = vmatpush1.msra.mxu1 %v5278_v41 }
  0xa8   :  { %4064 = vmatpush3.msra.mxu0 %v5202_v18  ;;  %4087 = vmatprep.mubr.msk.f32.mxu0 %vm5048_vm0, %v6902_v0 }
  0xa9   :  { %4065 = vmatprep.subr.mxu0 %v6902_v0  ;;  %912 = vmatprep.subr.mxu1 %v5122_v51 }
  0xaa   :  { %4066 = vmatpush3.msra.mxu0 %v5225_v25 }
  0xab   :  { %4067 = vmatprep.subr.mxu0 %v6902_v0 }
  0xac   :  { %4068 = vmatpush3.msra.mxu0 %v5248_v32 }
  0xad   :  { %4069 = vmatprep.subr.mxu0 %v6902_v0 }
  0xae   :  { %4070 = vmatpush3.msra.mxu0 %v5272_v39 }
  0xaf   :  { %4071 = vmatprep.subr.mxu0 %v6902_v0 }
  0xb0   :  { %4072 = vmatpush3.msra.mxu0 %v5286_v42 }
  0xb1   :  { %4073 = vmatprep.subr.mxu0 %v6902_v0 }
  0xb2   :  { %4074 = vmatpush3.msra.mxu0 %v5294_v43 }
  0xb3   :  { %4075 = vmatprep.subr.mxu0 %v6902_v0 }
  0xb4   :  { %4076 = vmatpush3.msra.mxu0 %v5299_v44 }
  0xb5   :  { %4077 = vmatprep.subr.mxu0 %v6902_v0 }
  0xb6   :  { %4078 = vmatpush3.msra.mxu0 %v5305_v45 }
  0xb7   :  { %4079 = vmatprep.subr.mxu0 %v6902_v0 }
  0xb8   :  { %4080 = vmatpush3.msra.mxu0 %v5312_v46 }
  0xb9   :  { %4081 = vmatprep.subr.mxu0 %v6902_v0 }
  0xba   :  { %4082 = vmatpush3.msra.mxu0 %v5317_v47 }
  0xbb   :  { %4083 = vmatprep.subr.mxu0 %v6902_v0 }
  0xbc   :  { %4084 = vmatpush3.msra.mxu0 %v5324_v48 }
  0xbd   :  { %4085 = vmatprep.subr.mxu0 %v6902_v0 }
  0xbe   :  { %4086 = vmatpush3.msra.mxu0 %v5329_v49 }
  0xbf   :  { %4090 = vmatprep.subr.mxu0 %v6902_v0 }
 0x117   :  { %v232_v6 = vpop.f32.mrf.mxu0  ;;  %v3998_v8 = vpop.f32.mrf.mxu1 }
 0x118   :  { %v5413_v13 = vadd.f32 %v3998_v8, %v5410_v1 }
 0x119   :  { %v234_v15 = vpop.f32.mrf.mxu0  ;;  %v5415_v20 = vpop.f32.mrf.mxu1 }
 0x11a   :  { %6957 = vst [vmem:[#allocation25_spill] sm:$0xff] %v5413_v13 }
 0x11c   :  { %v5417_v22 = vpop.f32.mrf.mxu0  ;;  %v4001_v27 = vpop.f32.mrf.mxu1 }
 0x11d   :  { %6958 = vst [vmem:[#allocation26_spill] sm:$0xff] %v5417_v22  ;;  %v5420_v29 = vadd.f32 %v4001_v27, %v5410_v1 }
 0x11e   :  { %v5422_v34 = vpop.f32.mrf.mxu0  ;;  %v403_v36 = vpop.f32.mrf.mxu1 }
 0x11f   :  { %6959 = vst [vmem:[#allocation27_spill] sm:$0xff] %v5420_v29  ;;  %6960 = vst [vmem:[#allocation28_spill] sm:$0xff] %v5422_v34  ;;  %v5425_v50 = vadd.f32 %v403_v36, %v5410_v1 }
 0x121   :  { %6961 = vst [vmem:[#allocation29_spill] sm:$0xff] %v5425_v50  ;;  %v5427_v57 = vpop.f32.mrf.mxu0  ;;  %v4004_v0 = vpop.f32.mrf.mxu1 }
 0x122   :  { %6962 = vst [vmem:[#allocation30_spill] sm:$0xff] %v5427_v57  ;;  %v5430_v8 = vadd.f32 %v4004_v0, %v5410_v1 }
 0x123   :  { %v5432_v13 = vpop.f32.mrf.mxu0  ;;  %v413_v51 = vpop.f32.mrf.mxu1 }
 0x124   :  { %6963 = vst [vmem:[#allocation31_spill] sm:$0xff] %v5430_v8  ;;  %6964 = vst [vmem:[#allocation32_spill] sm:$0xff] %v5432_v13  ;;  %v5435_v22 = vadd.f32 %v413_v51, %v5410_v1 }
 0x126   :  { %6965 = vst [vmem:[#allocation33_spill] sm:$0xff] %v5435_v22  ;;  %v5437_v27 = vpop.f32.mrf.mxu0  ;;  %v4007_v29 = vpop.f32.mrf.mxu1 }
 0x127   :  { %6966 = vst [vmem:[#allocation34_spill] sm:$0xff] %v5437_v27  ;;  %v5440_v34 = vadd.f32 %v4007_v29, %v5410_v1 }
 0x128   :  { %v5442_v36 = vpop.f32.mrf.mxu0  ;;  %v423_v50 = vpop.f32.mrf.mxu1 }
 0x129   :  { %6967 = vst [vmem:[#allocation35_spill] sm:$0xff] %v5440_v34  ;;  %6968 = vst [vmem:[#allocation36_spill] sm:$0xff] %v5442_v36  ;;  %v5445_v57 = vadd.f32 %v423_v50, %v5410_v1 }
 0x12b   :  { %6969 = vst [vmem:[#allocation37_spill] sm:$0xff] %v5445_v57  ;;  %v5447_v0 = vpop.f32.mrf.mxu0  ;;  %v4010_v8 = vpop.f32.mrf.mxu1 }
 0x12c   :  { %6970 = vst [vmem:[#allocation38_spill] sm:$0xff] %v5447_v0  ;;  %v5450_v13 = vadd.f32 %v4010_v8, %v5410_v1 }
 0x12d   :  { %v5452_v51 = vpop.f32.mrf.mxu0  ;;  %v433_v22 = vpop.f32.mrf.mxu1 }
 0x12e   :  { %6971 = vst [vmem:[#allocation39_spill] sm:$0xff] %v5450_v13  ;;  %6972 = vst [vmem:[#allocation40_spill] sm:$0xff] %v5452_v51  ;;  %v5455_v27 = vadd.f32 %v433_v22, %v5410_v1  ;;  %v153_v51 = vsub.s32 0, %v152_v55 }
 0x130   :  { %6973 = vst [vmem:[#allocation41_spill] sm:$0xff] %v5455_v27  ;;  %v5457_v29 = vpop.f32.mrf.mxu0  ;;  %v4013_v34 = vpop.f32.mrf.mxu1 }
 0x131   :  { %6974 = vst [vmem:[#allocation42_spill] sm:$0xff] %v5457_v29  ;;  %v5460_v36 = vadd.f32 %v4013_v34, %v5410_v1 }
 0x132   :  { %v5462_v50 = vpop.f32.mrf.mxu0  ;;  %v443_v57 = vpop.f32.mrf.mxu1 }
 0x133   :  { %6975 = vst [vmem:[#allocation43_spill] sm:$0xff] %v5460_v36  ;;  %6976 = vst [vmem:[#allocation44_spill] sm:$0xff] %v5462_v50  ;;  %v5465_v0 = vadd.f32 %v443_v57, %v5410_v1  ;;  %v5479_v36 = vrot.slane %v149_v62, %v153_v51 }
 0x135   :  { %6977 = vst [vmem:[#allocation45_spill] sm:$0xff] %v5465_v0  ;;  %v5467_v8 = vpop.f32.mrf.mxu0  ;;  %v4016_v13 = vpop.f32.mrf.mxu1  ;;  %6983 = vst [vmem:[#allocation51_spill] sm:$0xff] %v5479_v36 }
 0x136   :  { %6978 = vst [vmem:[#allocation46_spill] sm:$0xff] %v5467_v8  ;;  %v5470_v49 = vadd.f32 %v4016_v13, %v5410_v1  ;;  %v157_v8 = vsub.s32 1, %v152_v55 }
 0x137   :  { %v5472_v22 = vpop.f32.mrf.mxu0  ;;  %v453_v27 = vpop.f32.mrf.mxu1 }
 0x138   :  { %6979 = vst [vmem:[#allocation47_spill] sm:$0xff] %v5470_v49  ;;  %6980 = vst [vmem:[#allocation48_spill] sm:$0xff] %v5472_v22  ;;  %v5475_v29 = vadd.f32 %v453_v27, %v5410_v1  ;;  %v233_v49 = vadd.f32 %v232_v6, %v5479_v36 }
 0x13a   :  { %6981 = vst [vmem:[#allocation49_spill] sm:$0xff] %v5475_v29  ;;  %v5477_v34 = vpop.f32.mrf.mxu0  ;;  %v4019_v50 = vpop.f32.mrf.mxu1  ;;  %v5492_v29 = vrot.slane %v149_v62, %v157_v8 }
 0x13b   :  { %6982 = vst [vmem:[#allocation50_spill] sm:$0xff] %v5477_v34  ;;  %v5482_v57 = vadd.f32 %v4019_v50, %v5410_v1 }
 0x13c   :  { %v5484_v0 = vpop.f32.mrf.mxu0  ;;  %v463_v41 = vpop.f32.mrf.mxu1  ;;  %v235_v55 = vadd.f32 %v234_v15, %v5492_v29 }
 0x13d   :  { %6984 = vst [vmem:[#allocation52_spill] sm:$0xff] %v5482_v57  ;;  %6985 = vst [vmem:[#allocation53_spill] sm:$0xff] %v5484_v0  ;;  %v5487_v13 = vadd.f32 %v463_v41, %v5410_v1 }
 0x13f   :  { %6986 = vst [vmem:[#allocation54_spill] sm:$0xff] %v5487_v13  ;;  %v5490_v22 = vpop.f32.mrf.mxu0  ;;  %v644_v27 = vpop.f32.mrf.mxu1 }
 0x140   :  { %6987 = vst [vmem:[#allocation55_spill] sm:$0xff] %v5490_v22  ;;  %v719_v51 = vadd.f32 %v644_v27, %v233_v49 }
 0x141   :  { %v5494_v34 = vpop.f32.mrf.mxu0  ;;  %v646_v57 = vpop.f32.mrf.mxu1 }
 0x142   :  { %6988 = vst [vmem:[#allocation56_spill] sm:$0xff] %v5494_v34  ;;  %v3595_v40 = vmul.f32 -1.442695, %v719_v51  ;;  %v720_v41 = vadd.f32 %v646_v57, %v235_v55 }
 0x143   :  { %v5496_v50 = vpop.f32.mrf.mxu0 }
 0x144   :  { %6989 = vst [vmem:[#allocation57_spill] sm:$0xff] %v5496_v50  ;;  %4651 = vpow2.f32 %v3595_v40  ;;  %v3596_v22 = vmul.f32 -1.442695, %v720_v41 }
 0x145   :  { %v5499_v0 = vpop.f32.mrf.mxu0 }
 0x146   :  { %6990 = vst [vmem:[#allocation58_spill] sm:$0xff] %v5499_v0  ;;  %4653 = vpow2.f32 %v3596_v22  ;;  %v5528_v22 = vld [vmem:[%s6897_s4] ss:$0 sm:$0xff] }
 0x147   :  { %v5501_v13 = vpop.f32.mrf.mxu0 }
 0x148   :  { %6991 = vst [vmem:[#allocation59_spill] sm:$0xff] %v5501_v13 }
 0x149   :  { %v5503_v6 = vpop.f32.mrf.mxu0 }
 0x14a   :  { %6992 = vst [vmem:[#allocation60_spill] sm:$0xff] %v5503_v6 }
 0x14b   :  { %v5505_v62 = vpop.f32.mrf.mxu0 }
 0x14c   :  { %6993 = vst [vmem:[#allocation61_spill] sm:$0xff] %v5505_v62 }
 0x14d   :  { %v5507_v49 = vpop.f32.mrf.mxu0 }
 0x14e   :  { %6994 = vst [vmem:[#allocation62_spill] sm:$0xff] %v5507_v49 }
 0x14f   :  { %v5509_v8 = vpop.f32.mrf.mxu0 }
 0x150   :  { %6995 = vst [vmem:[#allocation63_spill] sm:$0xff] %v5509_v8 }
 0x151   :  { %v5511_v27 = vpop.f32.mrf.mxu0  ;;  %v4652_v51 = vpop.eup %4651 }
 0x152   :  { %6996 = vst [vmem:[#allocation64_spill] sm:$0xff] %v5511_v27  ;;  %v727_v15 = vadd.f32 1.0, %v4652_v51 }
 0x153   :  { %v5513_v40 = vpop.f32.mrf.mxu0  ;;  %v4654_v62 = vpop.eup %4653 }
 0x154   :  { %6997 = vst [vmem:[#allocation65_spill] sm:$0xff] %v5513_v40  ;;  %4655 = vrcp.f32 %v727_v15  ;;  %v728_v51 = vadd.f32 1.0, %v4654_v62 }
 0x155   :  { %v5515_v57 = vpop.f32.mrf.mxu0 }
 0x156   :  { %6998 = vst [vmem:[#allocation66_spill] sm:$0xff] %v5515_v57  ;;  %4657 = vrcp.f32 %v728_v51 }
 0x157   :  { %v5517_v55 = vpop.f32.mrf.mxu0 }
 0x158   :  { %6999 = vst [vmem:[#allocation67_spill] sm:$0xff] %v5517_v55  ;;  %v394_v55 = vadd.f32 %v5415_v20, %v5410_v1  ;;  %v7003_v1 = vmov 0.0   ;;  %v7004_v20 = vld [vmem:[#allocation21_spill] sm:$0xff] }
 0x159   :  { %v5519_v6 = vpop.f32.mrf.mxu0 }
 0x15a   :  { %7000 = vst [vmem:[#allocation68_spill] sm:$0xff] %v5519_v6 }
 0x15b   :  { %v5521_v41 = vpop.f32.mrf.mxu0 }
 0x15c   :  { %7001 = vst [vmem:[#allocation69_spill] sm:$0xff] %v5521_v41 }
 0x15d   :  { %v5523_v49 = vpop.f32.mrf.mxu0 }
 0x15e   :  { %7002 = vst [vmem:[#allocation70_spill] sm:$0xff] %v5523_v49 }
 0x15f   :  { %v715_v27 = vpop.f32.mrf.mxu0 }
 0x160   :  { %v733_v15 = vadd.f32 %v5528_v22, %v715_v27 }
 0x161   :  { %v4054_v40 = vpop.f32.mrf.mxu0  ;;  %v4656_v57 = vpop.eup %4655 }
 0x162   :  { %v734_v6 = vmul.f32 %v4656_v57, %v733_v15 }
 0x163   :  { %v4658_v8 = vpop.eup %4657 }
 0x164   :  { %v735_v41 = vadd.f32 %v734_v6, %v394_v55  ;;  %v737_v49 = vsub.f32 1.0, %v4658_v8  ;;  %v739_v50 = vmul.f32 0.0, %v4658_v8  ;;  %v7008_v6 = vld [vmem:[#allocation26_spill] sm:$0xff] }
 0x165   :  { %v239_v62 = vadd.f32 %v7008_v6, %v5479_v36 }
 0x166   :  { %4659 = vtanh.f32 %v735_v41  ;;  %v7009_v41 = vld [vmem:[#allocation28_spill] sm:$0xff] }
 0x167   :  { %v241_v51 = vadd.f32 %v7009_v41, %v5492_v29 }
 0x173   :  { %v4660_v13 = vpop.eup %4659 }
 0x174   :  { %v738_v0 = vmul.f32 %v4660_v13, %v737_v49  ;;  %v7006_v13 = vld [vmem:[#allocation24_spill] sm:$0xff] }
 0x176   :  { %v5533_v34 = vadd.f32 %v739_v50, %v738_v0  ;;  %v7005_v0 = vld [vmem:[#allocation22_spill] sm:$0xff]  ;;  %v7007_v50 = vld [vmem:[#allocation19_spill] sm:$0xff] }
 0x178   :  { %741 = vst [vmem:[#allocation12] sm:$0xff] %v5533_v34  ;;  %810 = vmatmul.mubr.f32.vlgmr.msra.gmra.mxu1 %v5533_v34  ;;  %4088 = vmatmul.mubr.f32.vlgmr.msra.gmra.mxu0 %v5533_v34 }
 0x179   :  { %913 = vmatpush1.msra.mxu1 %v5124_v52  ;;  %4091 = vmatpush3.msra.mxu0 %v5126_v53 }
 0x17a   :  { %914 = vmatprep.subr.mxu1 %v5128_v54  ;;  %4092 = vmatprep.subr.mxu0 %v7003_v1 }
 0x17b   :  { %915 = vmatpush1.msra.mxu1 %v5133_v56  ;;  %4093 = vmatpush3.msra.mxu0 %v5143_v60 }
 0x17c   :  { %916 = vmatprep.subr.mxu1 %v5137_v58  ;;  %4094 = vmatprep.subr.mxu0 %v7003_v1 }
 0x17d   :  { %917 = vmatpush1.msra.mxu1 %v5140_v59  ;;  %4095 = vmatpush3.msra.mxu0 %v5160_v4 }
 0x17e   :  { %918 = vmatprep.subr.mxu1 %v5145_v61  ;;  %4096 = vmatprep.subr.mxu0 %v7003_v1 }
 0x17f   :  { %919 = vmatpush1.msra.mxu1 %v5150_v63  ;;  %4097 = vmatpush3.msra.mxu0 %v5179_v11 }
 0x180   :  { %920 = vmatprep.subr.mxu1 %v5154_v2  ;;  %4098 = vmatprep.subr.mxu0 %v7003_v1 }
 0x181   :  { %921 = vmatpush1.msra.mxu1 %v5157_v3  ;;  %4099 = vmatpush3.msra.mxu0 %v5202_v18 }
 0x182   :  { %922 = vmatprep.subr.mxu1 %v5162_v5  ;;  %4100 = vmatprep.subr.mxu0 %v7003_v1 }
 0x183   :  { %923 = vmatpush1.msra.mxu1 %v5167_v7  ;;  %4101 = vmatpush3.msra.mxu0 %v5225_v25 }
 0x184   :  { %924 = vmatprep.subr.mxu1 %v5173_v9  ;;  %4102 = vmatprep.subr.mxu0 %v7003_v1 }
 0x185   :  { %925 = vmatpush1.msra.mxu1 %v5176_v10  ;;  %4103 = vmatpush3.msra.mxu0 %v5248_v32 }
 0x186   :  { %926 = vmatprep.subr.mxu1 %v5181_v12  ;;  %4104 = vmatprep.subr.mxu0 %v7003_v1 }
 0x187   :  { %927 = vmatpush1.msra.mxu1 %v5189_v14  ;;  %4105 = vmatpush3.msra.mxu0 %v5272_v39 }
 0x188   :  { %928 = vmatprep.subr.mxu1 %v5195_v16  ;;  %4106 = vmatprep.subr.mxu0 %v7003_v1 }
 0x189   :  { %929 = vmatpush1.msra.mxu1 %v5199_v17  ;;  %4107 = vmatpush3.msra.mxu0 %v5286_v42 }
 0x18a   :  { %930 = vmatprep.subr.mxu1 %v5204_v19  ;;  %4108 = vmatprep.subr.mxu0 %v7003_v1 }
 0x18b   :  { %931 = vmatpush1.msra.mxu1 %v5212_v21  ;;  %4109 = vmatpush3.msra.mxu0 %v5294_v43 }
 0x18c   :  { %932 = vmatprep.subr.mxu1 %v5218_v23  ;;  %4110 = vmatprep.subr.mxu0 %v7003_v1 }
 0x18d   :  { %933 = vmatpush1.msra.mxu1 %v5222_v24  ;;  %4111 = vmatpush3.msra.mxu0 %v5299_v44 }
 0x18e   :  { %934 = vmatprep.subr.mxu1 %v5227_v26  ;;  %4112 = vmatprep.subr.mxu0 %v7003_v1 }
 0x18f   :  { %935 = vmatpush1.msra.mxu1 %v5235_v28  ;;  %4113 = vmatpush3.msra.mxu0 %v5305_v45 }
 0x190   :  { %936 = vmatprep.subr.mxu1 %v5241_v30  ;;  %4114 = vmatprep.subr.mxu0 %v7003_v1 }
 0x191   :  { %937 = vmatpush1.msra.mxu1 %v5245_v31  ;;  %4115 = vmatpush3.msra.mxu0 %v5312_v46 }
 0x192   :  { %938 = vmatprep.subr.mxu1 %v5250_v33  ;;  %4116 = vmatprep.subr.mxu0 %v7003_v1 }
 0x193   :  { %939 = vmatpush1.msra.mxu1 %v5258_v35  ;;  %4117 = vmatpush3.msra.mxu0 %v5317_v47 }
 0x194   :  { %940 = vmatprep.subr.mxu1 %v5264_v37  ;;  %4118 = vmatprep.subr.mxu0 %v7003_v1 }
 0x195   :  { %941 = vmatpush1.msra.mxu1 %v5268_v38  ;;  %4119 = vmatpush3.msra.mxu0 %v5324_v48 }
 0x196   :  { %942 = vmatprep.subr.mxu1 %v7004_v20  ;;  %4120 = vmatprep.subr.mxu0 %v7003_v1 }
 0x197   :  { %943 = vmatpush1.msra.mxu1 %v7005_v0  ;;  %976 = vmatprep.mubr.f32.mxu1 %v7003_v1 }
 0x198   :  { %4121 = vmatpush3.msra.mxu0 %v7006_v13  ;;  %4122 = vmatprep.mubr.msk.f32.mxu0 %vm5048_vm0, %v7003_v1 }
 0x199   :  { %1079 = vmatprep.subr.mxu1 %v7007_v50  ;;  %4125 = vmatprep.subr.mxu0 %v7003_v1 }
 0x238   :  { %v811_v49 = vpop.f32.mrf.mxu1  ;;  %v882_v8 = vpop.f32.mrf.mxu0 }
 0x239   :  { %v886_v27 = vadd.f32 %v811_v49, %v239_v62  ;;  %v900_v6 = vadd.f32 %v5528_v22, %v882_v8  ;;  %v7010_v62 = vld [vmem:[#allocation25_spill] sm:$0xff] }
 0x23a   :  { %v4089_v40 = vpop.f32.mrf.mxu0  ;;  %v813_v55 = vpop.f32.mrf.mxu1 }
 0x23b   :  { %v3597_v57 = vmul.f32 -1.442695, %v886_v27  ;;  %v887_v15 = vadd.f32 %v813_v55, %v241_v51  ;;  %v7020_v51 = vld [vmem:[#allocation29_spill] sm:$0xff] }
 0x23d   :  { %4661 = vpow2.f32 %v3597_v57  ;;  %v3598_v13 = vmul.f32 -1.442695, %v887_v15 }
 0x23f   :  { %4663 = vpow2.f32 %v3598_v13 }
 0x24a   :  { %v4662_v0 = vpop.eup %4661 }
 0x24b   :  { %v894_v50 = vadd.f32 1.0, %v4662_v0 }
 0x24c   :  { %v4664_v20 = vpop.eup %4663 }
 0x24d   :  { %4665 = vrcp.f32 %v894_v50  ;;  %v895_v48 = vadd.f32 1.0, %v4664_v20 }
 0x24f   :  { %4667 = vrcp.f32 %v895_v48 }
 0x25a   :  { %v4666_v36 = vpop.eup %4665 }
 0x25b   :  { %v901_v38 = vmul.f32 %v4666_v36, %v900_v6 }
 0x25c   :  { %v4668_v27 = vpop.eup %4667 }
 0x25d   :  { %v902_v49 = vadd.f32 %v901_v38, %v7010_v62  ;;  %v904_v40 = vsub.f32 1.0, %v4668_v27  ;;  %v906_v55 = vmul.f32 %v4668_v27, %v5533_v34 }
 0x25f   :  { %4669 = vtanh.f32 %v902_v49 }
 0x26c   :  { %v4670_v41 = vpop.eup %4669 }
 0x26d   :  { %v905_v57 = vmul.f32 %v4670_v41, %v904_v40  ;;  %v5698_v41 = vld [vmem:[#allocation8 + $0x168] sm:$0xff] }
 0x26f   :  { %v5612_v13 = vadd.f32 %v906_v55, %v905_v57  ;;  %v5701_v57 = vld [vmem:[#allocation8 + $0x178] sm:$0xff] }
 0x270   :  { %v5704_v55 = vld [vmem:[#allocation8 + $0x158] sm:$0xff] }
 0x271   :  { %908 = vst [vmem:[#allocation12 + $0x8] sm:$0xff] %v5612_v13  ;;  %977 = vmatmul.mubr.f32.vlgmr.msra.gmra.mxu1 %v5612_v13  ;;  %4123 = vmatmul.mubr.f32.vlgmr.msra.gmra.mxu0 %v5612_v13 }
 0x272   :  { %1080 = vmatpush1.msra.mxu1 %v5124_v52  ;;  %4126 = vmatpush3.msra.mxu0 %v5126_v53  ;;  %v7011_v52 = vld [vmem:[#allocation20_spill] sm:$0xff]  ;;  %v7012_v53 = vld [vmem:[#allocation23_spill] sm:$0xff] }
 0x273   :  { %1081 = vmatprep.subr.mxu1 %v5128_v54  ;;  %4127 = vmatprep.subr.mxu0 %v7003_v1  ;;  %v7013_v54 = vld [vmem:[#allocation21_spill] sm:$0xff] }
 0x274   :  { %1082 = vmatpush1.msra.mxu1 %v5133_v56  ;;  %4128 = vmatpush3.msra.mxu0 %v5143_v60  ;;  %v7014_v56 = vld [vmem:[#allocation22_spill] sm:$0xff]  ;;  %v7017_v60 = vld [vmem:[#allocation51_spill] sm:$0xff] }
 0x275   :  { %1083 = vmatprep.subr.mxu1 %v5137_v58  ;;  %4129 = vmatprep.subr.mxu0 %v7003_v1  ;;  %v7015_v58 = vld [vmem:[#allocation24_spill] sm:$0xff] }
 0x276   :  { %1084 = vmatpush1.msra.mxu1 %v5140_v59  ;;  %4130 = vmatpush3.msra.mxu0 %v5160_v4  ;;  %v5682_v59 = vld [vmem:[#allocation8 + $0x170] sm:$0xff] }
 0x277   :  { %1085 = vmatprep.subr.mxu1 %v5145_v61  ;;  %4131 = vmatprep.subr.mxu0 %v7003_v1  ;;  %7016 = vst [vmem:[#allocation19_spill] sm:$0xff] %v5682_v59  ;;  %v7018_v61 = vld [vmem:[#allocation30_spill] sm:$0xff] }
 0x278   :  { %1086 = vmatpush1.msra.mxu1 %v5150_v63  ;;  %4132 = vmatpush3.msra.mxu0 %v5179_v11  ;;  %v245_v63 = vadd.f32 %v7018_v61, %v7017_v60  ;;  %v5711_v61 = vld [vmem:[#allocation8 + $0x160] sm:$0xff] }
 0x279   :  { %1087 = vmatprep.subr.mxu1 %v5154_v2  ;;  %4133 = vmatprep.subr.mxu0 %v7003_v1 }
 0x27a   :  { %1088 = vmatpush1.msra.mxu1 %v5157_v3  ;;  %4134 = vmatpush3.msra.mxu0 %v5202_v18 }
 0x27b   :  { %1089 = vmatprep.subr.mxu1 %v5162_v5  ;;  %4135 = vmatprep.subr.mxu0 %v7003_v1 }
 0x27c   :  { %1090 = vmatpush1.msra.mxu1 %v5167_v7  ;;  %4136 = vmatpush3.msra.mxu0 %v5225_v25 }
 0x27d   :  { %1091 = vmatprep.subr.mxu1 %v5173_v9  ;;  %4137 = vmatprep.subr.mxu0 %v7003_v1 }
 0x27e   :  { %1092 = vmatpush1.msra.mxu1 %v5176_v10  ;;  %4138 = vmatpush3.msra.mxu0 %v5248_v32  ;;  %v7019_v10 = vld [vmem:[#allocation32_spill] sm:$0xff] }
 0x27f   :  { %1093 = vmatprep.subr.mxu1 %v5181_v12  ;;  %4139 = vmatprep.subr.mxu0 %v7003_v1  ;;  %v247_v12 = vadd.f32 %v7019_v10, %v5492_v29  ;;  %v5740_v10 = vld [vmem:[#allocation8 + $0xf8] sm:$0xff] }
 0x280   :  { %1094 = vmatpush1.msra.mxu1 %v5189_v14  ;;  %4140 = vmatpush3.msra.mxu0 %v5272_v39 }
 0x281   :  { %1095 = vmatprep.subr.mxu1 %v5195_v16  ;;  %4141 = vmatprep.subr.mxu0 %v7003_v1 }
 0x282   :  { %1096 = vmatpush1.msra.mxu1 %v5199_v17  ;;  %4142 = vmatpush3.msra.mxu0 %v5286_v42 }
 0x283   :  { %1097 = vmatprep.subr.mxu1 %v5204_v19  ;;  %4143 = vmatprep.subr.mxu0 %v7003_v1 }
 0x284   :  { %1098 = vmatpush1.msra.mxu1 %v5212_v21  ;;  %4144 = vmatpush3.msra.mxu0 %v5294_v43 }
 0x285   :  { %1099 = vmatprep.subr.mxu1 %v5218_v23  ;;  %4145 = vmatprep.subr.mxu0 %v7003_v1 }
 0x286   :  { %1100 = vmatpush1.msra.mxu1 %v5222_v24  ;;  %4146 = vmatpush3.msra.mxu0 %v5299_v44 }
 0x287   :  { %1101 = vmatprep.subr.mxu1 %v5227_v26  ;;  %4147 = vmatprep.subr.mxu0 %v7003_v1 }
 0x288   :  { %1102 = vmatpush1.msra.mxu1 %v5235_v28  ;;  %4148 = vmatpush3.msra.mxu0 %v5305_v45 }
 0x289   :  { %1103 = vmatprep.subr.mxu1 %v5241_v30  ;;  %4149 = vmatprep.subr.mxu0 %v7003_v1 }
 0x28a   :  { %1104 = vmatpush1.msra.mxu1 %v5245_v31  ;;  %4150 = vmatpush3.msra.mxu0 %v5312_v46 }
 0x28b   :  { %1105 = vmatprep.subr.mxu1 %v5250_v33  ;;  %4151 = vmatprep.subr.mxu0 %v7003_v1 }
 0x28c   :  { %1106 = vmatpush1.msra.mxu1 %v5258_v35  ;;  %4152 = vmatpush3.msra.mxu0 %v5317_v47 }
 0x28d   :  { %1107 = vmatprep.subr.mxu1 %v5264_v37  ;;  %4153 = vmatprep.subr.mxu0 %v7003_v1 }
 0x28e   :  { %1108 = vmatpush1.msra.mxu1 %v7011_v52  ;;  %4154 = vmatpush3.msra.mxu0 %v7012_v53 }
 0x28f   :  { %1109 = vmatprep.subr.mxu1 %v7013_v54  ;;  %4155 = vmatprep.subr.mxu0 %v7003_v1 }
 0x290   :  { %1110 = vmatpush1.msra.mxu1 %v7014_v56  ;;  %1143 = vmatprep.mubr.f32.mxu1 %v7003_v1 }
 0x291   :  { %4156 = vmatpush3.msra.mxu0 %v7015_v58  ;;  %4157 = vmatprep.mubr.msk.f32.mxu0 %vm5048_vm0, %v7003_v1 }
 0x292   :  { %1246 = vmatprep.subr.mxu1 %v5682_v59  ;;  %4160 = vmatprep.subr.mxu0 %v7003_v1 }
 0x331   :  { %v978_v2 = vpop.f32.mrf.mxu1  ;;  %v1049_v3 = vpop.f32.mrf.mxu0 }
 0x332   :  { %v1053_v4 = vadd.f32 %v978_v2, %v245_v63  ;;  %v1067_v20 = vadd.f32 %v5528_v22, %v1049_v3  ;;  %v5714_v63 = vld [vmem:[#allocation8 + $0x140] sm:$0xff]  ;;  %v5718_v2 = vld [vmem:[#allocation8 + $0x138] sm:$0xff]  ;;  %v5721_v3 = vld [vmem:[#allocation8 + $0x148] sm:$0xff] }
 0x333   :  { %v4124_v5 = vpop.f32.mrf.mxu0  ;;  %v980_v9 = vpop.f32.mrf.mxu1 }
 0x334   :  { %v3599_v7 = vmul.f32 -1.442695, %v1053_v4  ;;  %v1054_v14 = vadd.f32 %v980_v9, %v247_v12  ;;  %v5724_v4 = vld [vmem:[#allocation8 + $0x128] sm:$0xff]  ;;  %v5728_v5 = vld [vmem:[#allocation8 + $0x120] sm:$0xff]  ;;  %v5744_v12 = vld [vmem:[#allocation8 + $0xf0] sm:$0xff] }
 0x335   :  { %v5736_v9 = vld [vmem:[#allocation8 + $0x108] sm:$0xff] }
 0x336   :  { %4671 = vpow2.f32 %v3599_v7  ;;  %v3600_v16 = vmul.f32 -1.442695, %v1054_v14  ;;  %v5732_v7 = vld [vmem:[#allocation8 + $0x110] sm:$0xff]  ;;  %v5752_v14 = vld [vmem:[#allocation8 + $0xd8] sm:$0xff] }
 0x338   :  { %4673 = vpow2.f32 %v3600_v16  ;;  %v5760_v16 = vld [vmem:[#allocation8 + $0xc0] sm:$0xff] }
 0x343   :  { %v4672_v38 = vpop.eup %4671 }
 0x344   :  { %v1061_v48 = vadd.f32 1.0, %v4672_v38 }
 0x345   :  { %v4674_v36 = vpop.eup %4673 }
 0x346   :  { %4675 = vrcp.f32 %v1061_v48  ;;  %v1062_v34 = vadd.f32 1.0, %v4674_v36  ;;  %v5828_v36 = vld [vmem:[#allocation8 + $0x130] sm:$0xff] }
 0x348   :  { %4677 = vrcp.f32 %v1062_v34  ;;  %v5834_v34 = vld [vmem:[#allocation8 + $0x118] sm:$0xff] }
 0x353   :  { %v4676_v0 = vpop.eup %4675 }
 0x354   :  { %v1068_v8 = vmul.f32 %v4676_v0, %v1067_v20  ;;  %v5840_v20 = vld [vmem:[#allocation8 + $0x100] sm:$0xff]  ;;  %v5846_v0 = vld [vmem:[#allocation8 + $0xe8] sm:$0xff] }
 0x355   :  { %v4678_v50 = vpop.eup %4677 }
 0x356   :  { %v1069_v15 = vadd.f32 %v1068_v8, %v7020_v51  ;;  %v1071_v6 = vsub.f32 1.0, %v4678_v50  ;;  %v1073_v27 = vmul.f32 %v4678_v50, %v5612_v13  ;;  %v5708_v13 = vld [vmem:[#allocation8 + $0x150] sm:$0xff]  ;;  %v5857_v51 = vld [vmem:[#allocation8 + $0xa8] sm:$0xff]  ;;  %v5863_v50 = vld [vmem:[#allocation8 + $0x98] sm:$0xff] }
 0x357   :  { %v5852_v8 = vld [vmem:[#allocation8 + $0xd0] sm:$0xff] }
 0x358   :  { %4679 = vtanh.f32 %v1069_v15  ;;  %v5860_v15 = vld [vmem:[#allocation8 + $0xb8] sm:$0xff] }
 0x365   :  { %v4680_v62 = vpop.eup %4679 }
 0x366   :  { %v1072_v49 = vmul.f32 %v4680_v62, %v1071_v6  ;;  %v5867_v6 = vld [vmem:[#allocation8 + $0x90] sm:$0xff]  ;;  %v5870_v62 = vld [vmem:[#allocation8 + $0xa0] sm:$0xff] }
 0x368   :  { %v5693_v40 = vadd.f32 %v1073_v27, %v1072_v49  ;;  %v5873_v49 = vld [vmem:[#allocation8 + $0x80] sm:$0xff]  ;;  %v5877_v27 = vld [vmem:[#allocation8 + $0x78] sm:$0xff] }
 0x36a   :  { %1075 = vst [vmem:[#allocation12 + $0x10] sm:$0xff] %v5693_v40  ;;  %1144 = vmatmul.mubr.f32.vlgmr.msra.gmra.mxu1 %v5693_v40  ;;  %4158 = vmatmul.mubr.f32.vlgmr.msra.gmra.mxu0 %v5693_v40 }
 0x36b   :  { %1247 = vmatpush1.msra.mxu1 %v5698_v41  ;;  %4161 = vmatpush3.msra.mxu0 %v5701_v57 }
 0x36c   :  { %1248 = vmatprep.subr.mxu1 %v5704_v55  ;;  %4162 = vmatprep.subr.mxu0 %v7003_v1 }
 0x36d   :  { %1249 = vmatpush1.msra.mxu1 %v5708_v13  ;;  %4163 = vmatpush3.msra.mxu0 %v5711_v61 }
 0x36e   :  { %1250 = vmatprep.subr.mxu1 %v5714_v63  ;;  %4164 = vmatprep.subr.mxu0 %v7003_v1 }
 0x36f   :  { %1251 = vmatpush1.msra.mxu1 %v5718_v2  ;;  %4165 = vmatpush3.msra.mxu0 %v5721_v3 }
 0x370   :  { %1252 = vmatprep.subr.mxu1 %v5724_v4  ;;  %4166 = vmatprep.subr.mxu0 %v7003_v1 }
 0x371   :  { %1253 = vmatpush1.msra.mxu1 %v5728_v5  ;;  %4167 = vmatpush3.msra.mxu0 %v5179_v11  ;;  %v5748_v11 = vld [vmem:[#allocation8 + $0xe0] sm:$0xff] }
 0x372   :  { %1254 = vmatprep.subr.mxu1 %v5732_v7  ;;  %4168 = vmatprep.subr.mxu0 %v7003_v1 }
 0x373   :  { %1255 = vmatpush1.msra.mxu1 %v5736_v9  ;;  %4169 = vmatpush3.msra.mxu0 %v5202_v18  ;;  %v5756_v18 = vld [vmem:[#allocation8 + $0xc8] sm:$0xff] }
 0x374   :  { %1256 = vmatprep.subr.mxu1 %v5740_v10  ;;  %4170 = vmatprep.subr.mxu0 %v7003_v1 }
 0x375   :  { %1257 = vmatpush1.msra.mxu1 %v5744_v12  ;;  %4171 = vmatpush3.msra.mxu0 %v5225_v25  ;;  %v5764_v25 = vld [vmem:[#allocation8 + $0xb0] sm:$0xff] }
 0x376   :  { %1258 = vmatprep.subr.mxu1 %v5748_v11  ;;  %4172 = vmatprep.subr.mxu0 %v7003_v1 }
 0x377   :  { %1259 = vmatpush1.msra.mxu1 %v5752_v14  ;;  %4173 = vmatpush3.msra.mxu0 %v5248_v32 }
 0x378   :  { %1260 = vmatprep.subr.mxu1 %v5756_v18  ;;  %4174 = vmatprep.subr.mxu0 %v7003_v1 }
 0x379   :  { %1261 = vmatpush1.msra.mxu1 %v5760_v16  ;;  %4175 = vmatpush3.msra.mxu0 %v5272_v39 }
 0x37a   :  { %1262 = vmatprep.subr.mxu1 %v5764_v25  ;;  %4176 = vmatprep.subr.mxu0 %v7003_v1 }
 0x37b   :  { %1263 = vmatpush1.msra.mxu1 %v5199_v17  ;;  %4177 = vmatpush3.msra.mxu0 %v5286_v42  ;;  %v7021_v17 = vld [vmem:[#allocation34_spill] sm:$0xff] }
 0x37c   :  { %1264 = vmatprep.subr.mxu1 %v5204_v19  ;;  %4178 = vmatprep.subr.mxu0 %v7003_v1  ;;  %v251_v19 = vadd.f32 %v7021_v17, %v7017_v60  ;;  %v5883_v17 = vld [vmem:[#allocation8 + $0x68] sm:$0xff] }
 0x37d   :  { %1265 = vmatpush1.msra.mxu1 %v5212_v21  ;;  %4179 = vmatpush3.msra.mxu0 %v5294_v43 }
 0x37e   :  { %1266 = vmatprep.subr.mxu1 %v5218_v23  ;;  %4180 = vmatprep.subr.mxu0 %v7003_v1 }
 0x37f   :  { %1267 = vmatpush1.msra.mxu1 %v5222_v24  ;;  %4181 = vmatpush3.msra.mxu0 %v5299_v44 }
 0x380   :  { %1268 = vmatprep.subr.mxu1 %v5227_v26  ;;  %4182 = vmatprep.subr.mxu0 %v7003_v1 }
 0x381   :  { %1269 = vmatpush1.msra.mxu1 %v5235_v28  ;;  %4183 = vmatpush3.msra.mxu0 %v5305_v45 }
 0x382   :  { %1270 = vmatprep.subr.mxu1 %v5241_v30  ;;  %4184 = vmatprep.subr.mxu0 %v7003_v1 }
 0x383   :  { %1271 = vmatpush1.msra.mxu1 %v5245_v31  ;;  %4185 = vmatpush3.msra.mxu0 %v5312_v46  ;;  %v7022_v31 = vld [vmem:[#allocation36_spill] sm:$0xff] }
 0x384   :  { %1272 = vmatprep.subr.mxu1 %v5250_v33  ;;  %4186 = vmatprep.subr.mxu0 %v7003_v1  ;;  %v253_v32 = vadd.f32 %v7022_v31, %v5492_v29  ;;  %v5910_v31 = vld [vmem:[#allocation8 + $0x40] sm:$0xff] }
 0x385   :  { %1273 = vmatpush1.msra.mxu1 %v5258_v35  ;;  %4187 = vmatpush3.msra.mxu0 %v5317_v47  ;;  %v7023_v47 = vld [vmem:[#allocation27_spill] sm:$0xff] }
 0x386   :  { %1274 = vmatprep.subr.mxu1 %v5264_v37  ;;  %4188 = vmatprep.subr.mxu0 %v7003_v1 }
 0x387   :  { %1275 = vmatpush1.msra.mxu1 %v7011_v52  ;;  %4189 = vmatpush3.msra.mxu0 %v7012_v53 }
 0x388   :  { %1276 = vmatprep.subr.mxu1 %v7013_v54  ;;  %4190 = vmatprep.subr.mxu0 %v7003_v1 }
 0x389   :  { %1277 = vmatpush1.msra.mxu1 %v7014_v56  ;;  %1310 = vmatprep.mubr.f32.mxu1 %v7003_v1 }
 0x38a   :  { %4191 = vmatpush3.msra.mxu0 %v7015_v58  ;;  %4192 = vmatprep.mubr.msk.f32.mxu0 %vm5048_vm0, %v7003_v1 }
 0x38b   :  { %1413 = vmatprep.subr.mxu1 %v5682_v59  ;;  %4195 = vmatprep.subr.mxu0 %v7003_v1 }
 0x42a   :  { %v1145_v21 = vpop.f32.mrf.mxu1  ;;  %v1216_v23 = vpop.f32.mrf.mxu0 }
 0x42b   :  { %v1220_v24 = vadd.f32 %v1145_v21, %v251_v19  ;;  %v1234_v44 = vadd.f32 %v5528_v22, %v1216_v23  ;;  %v5887_v19 = vld [vmem:[#allocation8 + $0x60] sm:$0xff]  ;;  %v5890_v21 = vld [vmem:[#allocation8 + $0x70] sm:$0xff] }
 0x42c   :  { %v4159_v26 = vpop.f32.mrf.mxu0  ;;  %v1147_v30 = vpop.f32.mrf.mxu1  ;;  %v5893_v23 = vld [vmem:[#allocation8 + $0x50] sm:$0xff] }
 0x42d   :  { %v3601_v28 = vmul.f32 -1.442695, %v1220_v24  ;;  %v1221_v33 = vadd.f32 %v1147_v30, %v253_v32  ;;  %v5897_v24 = vld [vmem:[#allocation8 + $0x48] sm:$0xff]  ;;  %v5900_v26 = vld [vmem:[#allocation8 + $0x58] sm:$0xff]  ;;  %v5907_v30 = vld [vmem:[#allocation8 + $0x30] sm:$0xff] }
 0x42e   :  { %v5913_v32 = vld [vmem:[#allocation8 + $0x20] sm:$0xff] }
 0x42f   :  { %4681 = vpow2.f32 %v3601_v28  ;;  %v3602_v35 = vmul.f32 -1.442695, %v1221_v33  ;;  %v5903_v28 = vld [vmem:[#allocation8 + $0x38] sm:$0xff] }
 0x430   :  { %v5917_v33 = vld [vmem:[#allocation8 + $0x18] sm:$0xff] }
 0x431   :  { %4683 = vpow2.f32 %v3602_v35  ;;  %7024 = vst [vmem:[#allocation26_spill] sm:$0xff] %v5917_v33  ;;  %v5920_v35 = vld [vmem:[#allocation8 + $0x28] sm:$0xff] }
 0x432   :  { %7025 = vst [vmem:[#allocation28_spill] sm:$0xff] %v5920_v35 }
 0x43c   :  { %v4682_v37 = vpop.eup %4681 }
 0x43d   :  { %v1228_v39 = vadd.f32 1.0, %v4682_v37  ;;  %v5923_v37 = vld [vmem:[#allocation8 + $0x8] sm:$0xff] }
 0x43e   :  { %v4684_v42 = vpop.eup %4683  ;;  %7026 = vst [vmem:[#allocation25_spill] sm:$0xff] %v5923_v37 }
 0x43f   :  { %4685 = vrcp.f32 %v1228_v39  ;;  %v1229_v43 = vadd.f32 1.0, %v4684_v42  ;;  %v5927_v39 = vld [vmem:[#allocation8] sm:$0xff]  ;;  %v5931_v42 = vld [vmem:[#allocation8 + $0x10] sm:$0xff] }
 0x440   :  { %7027 = vst [vmem:[#allocation20_spill] sm:$0xff] %v5927_v39  ;;  %7028 = vst [vmem:[#allocation23_spill] sm:$0xff] %v5931_v42 }
 0x441   :  { %4687 = vrcp.f32 %v1229_v43  ;;  %v7029_v43 = vld [vmem:[#allocation38_spill] sm:$0xff] }
 0x44c   :  { %v4686_v45 = vpop.eup %4685 }
 0x44d   :  { %v1235_v46 = vmul.f32 %v4686_v45, %v1234_v44  ;;  %v257_v44 = vadd.f32 %v7029_v43, %v7017_v60 }
 0x44e   :  { %v4688_v53 = vpop.eup %4687 }
 0x44f   :  { %v1236_v52 = vadd.f32 %v1235_v46, %v7023_v47  ;;  %v1238_v54 = vsub.f32 1.0, %v4688_v53  ;;  %v1240_v38 = vmul.f32 %v4688_v53, %v5693_v40  ;;  %v5880_v40 = vld [vmem:[#allocation8 + $0x88] sm:$0xff] }
 0x451   :  { %4689 = vtanh.f32 %v1236_v52 }
 0x45e   :  { %v4690_v56 = vpop.eup %4689 }
 0x45f   :  { %v1239_v58 = vmul.f32 %v4690_v56, %v1238_v54  ;;  %v7030_v56 = vld [vmem:[#allocation40_spill] sm:$0xff] }
 0x461   :  { %v5810_v48 = vadd.f32 %v1240_v38, %v1239_v58  ;;  %v259_v58 = vadd.f32 %v7030_v56, %v5492_v29 }
 0x463   :  { %1242 = vst [vmem:[#allocation12 + $0x18] sm:$0xff] %v5810_v48  ;;  %1311 = vmatmul.mubr.f32.vlgmr.msra.gmra.mxu1 %v5810_v48  ;;  %4193 = vmatmul.mubr.f32.vlgmr.msra.gmra.mxu0 %v5810_v48 }
 0x464   :  { %1414 = vmatpush1.msra.mxu1 %v5698_v41  ;;  %4196 = vmatpush3.msra.mxu0 %v5701_v57 }
 0x465   :  { %1415 = vmatprep.subr.mxu1 %v5704_v55  ;;  %4197 = vmatprep.subr.mxu0 %v7003_v1 }
 0x466   :  { %1416 = vmatpush1.msra.mxu1 %v5708_v13  ;;  %4198 = vmatpush3.msra.mxu0 %v5711_v61 }
 0x467   :  { %1417 = vmatprep.subr.mxu1 %v5714_v63  ;;  %4199 = vmatprep.subr.mxu0 %v7003_v1 }
 0x468   :  { %1418 = vmatpush1.msra.mxu1 %v5718_v2  ;;  %4200 = vmatpush3.msra.mxu0 %v5721_v3 }
 0x469   :  { %1419 = vmatprep.subr.mxu1 %v5724_v4  ;;  %4201 = vmatprep.subr.mxu0 %v7003_v1 }
 0x46a   :  { %1420 = vmatpush1.msra.mxu1 %v5728_v5  ;;  %4202 = vmatpush3.msra.mxu0 %v5828_v36 }
 0x46b   :  { %1421 = vmatprep.subr.mxu1 %v5732_v7  ;;  %4203 = vmatprep.subr.mxu0 %v7003_v1 }
 0x46c   :  { %1422 = vmatpush1.msra.mxu1 %v5736_v9  ;;  %4204 = vmatpush3.msra.mxu0 %v5834_v34 }
 0x46d   :  { %1423 = vmatprep.subr.mxu1 %v5740_v10  ;;  %4205 = vmatprep.subr.mxu0 %v7003_v1 }
 0x46e   :  { %1424 = vmatpush1.msra.mxu1 %v5744_v12  ;;  %4206 = vmatpush3.msra.mxu0 %v5840_v20 }
 0x46f   :  { %1425 = vmatprep.subr.mxu1 %v5748_v11  ;;  %4207 = vmatprep.subr.mxu0 %v7003_v1 }
 0x470   :  { %1426 = vmatpush1.msra.mxu1 %v5752_v14  ;;  %4208 = vmatpush3.msra.mxu0 %v5846_v0 }
 0x471   :  { %1427 = vmatprep.subr.mxu1 %v5756_v18  ;;  %4209 = vmatprep.subr.mxu0 %v7003_v1 }
 0x472   :  { %1428 = vmatpush1.msra.mxu1 %v5760_v16  ;;  %4210 = vmatpush3.msra.mxu0 %v5852_v8 }
 0x473   :  { %1429 = vmatprep.subr.mxu1 %v5764_v25  ;;  %4211 = vmatprep.subr.mxu0 %v7003_v1 }
 0x474   :  { %1430 = vmatpush1.msra.mxu1 %v5857_v51  ;;  %4212 = vmatpush3.msra.mxu0 %v5860_v15 }
 0x475   :  { %1431 = vmatprep.subr.mxu1 %v5863_v50  ;;  %4213 = vmatprep.subr.mxu0 %v7003_v1 }
 0x476   :  { %1432 = vmatpush1.msra.mxu1 %v5867_v6  ;;  %4214 = vmatpush3.msra.mxu0 %v5870_v62 }
 0x477   :  { %1433 = vmatprep.subr.mxu1 %v5873_v49  ;;  %4215 = vmatprep.subr.mxu0 %v7003_v1 }
 0x478   :  { %1434 = vmatpush1.msra.mxu1 %v5877_v27  ;;  %4216 = vmatpush3.msra.mxu0 %v5880_v40 }
 0x479   :  { %1435 = vmatprep.subr.mxu1 %v5883_v17  ;;  %4217 = vmatprep.subr.mxu0 %v7003_v1 }
 0x47a   :  { %1436 = vmatpush1.msra.mxu1 %v5887_v19  ;;  %4218 = vmatpush3.msra.mxu0 %v5890_v21 }
 0x47b   :  { %1437 = vmatprep.subr.mxu1 %v5893_v23  ;;  %4219 = vmatprep.subr.mxu0 %v7003_v1 }
 0x47c   :  { %1438 = vmatpush1.msra.mxu1 %v5897_v24  ;;  %4220 = vmatpush3.msra.mxu0 %v5900_v26 }
 0x47d   :  { %1439 = vmatprep.subr.mxu1 %v5903_v28  ;;  %4221 = vmatprep.subr.mxu0 %v7003_v1 }
 0x47e   :  { %1440 = vmatpush1.msra.mxu1 %v5907_v30  ;;  %4222 = vmatpush3.msra.mxu0 %v5910_v31 }
 0x47f   :  { %1441 = vmatprep.subr.mxu1 %v5913_v32  ;;  %4223 = vmatprep.subr.mxu0 %v7003_v1 }
 0x480   :  { %1442 = vmatpush1.msra.mxu1 %v5917_v33  ;;  %4224 = vmatpush3.msra.mxu0 %v5920_v35 }
 0x481   :  { %1443 = vmatprep.subr.mxu1 %v5923_v37  ;;  %4225 = vmatprep.subr.mxu0 %v7003_v1 }
 0x482   :  { %1444 = vmatpush1.msra.mxu1 %v5927_v39  ;;  %1477 = vmatprep.mubr.f32.mxu1 %v7003_v1 }
 0x483   :  { %4226 = vmatpush3.msra.mxu0 %v5931_v42  ;;  %4227 = vmatprep.mubr.msk.f32.mxu0 %vm5048_vm0, %v7003_v1 }
 0x484   :  { %1580 = vmatprep.subr.mxu1 %v5682_v59  ;;  %4230 = vmatprep.subr.mxu0 %v7003_v1 }
 0x523   :  { %v1312_v45 = vpop.f32.mrf.mxu1  ;;  %v1383_v46 = vpop.f32.mrf.mxu0 }
 0x524   :  { %v1387_v47 = vadd.f32 %v1312_v45, %v257_v44  ;;  %v1401_v43 = vadd.f32 %v5528_v22, %v1383_v46  ;;  %v7031_v44 = vld [vmem:[#allocation33_spill] sm:$0xff]  ;;  %v7039_v46 = vld [vmem:[#allocation42_spill] sm:$0xff] }
 0x525   :  { %v4194_v52 = vpop.f32.mrf.mxu0  ;;  %v1314_v54 = vpop.f32.mrf.mxu1 }
 0x526   :  { %v3603_v53 = vmul.f32 -1.442695, %v1387_v47  ;;  %v1388_v38 = vadd.f32 %v1314_v54, %v259_v58 }
 0x528   :  { %4691 = vpow2.f32 %v3603_v53  ;;  %v3604_v42 = vmul.f32 -1.442695, %v1388_v38 }
 0x52a   :  { %4693 = vpow2.f32 %v3604_v42 }
 0x535   :  { %v4692_v39 = vpop.eup %4691 }
 0x536   :  { %v1395_v59 = vadd.f32 1.0, %v4692_v39  ;;  %v7038_v39 = vld [vmem:[#allocation51_spill] sm:$0xff] }
 0x537   :  { %v4694_v37 = vpop.eup %4693  ;;  %v263_v58 = vadd.f32 %v7039_v46, %v7038_v39 }
 0x538   :  { %4695 = vrcp.f32 %v1395_v59  ;;  %v1396_v35 = vadd.f32 1.0, %v4694_v37  ;;  %v7032_v59 = vld [vmem:[#allocation26_spill] sm:$0xff]  ;;  %v7037_v37 = vld [vmem:[#allocation19_spill] sm:$0xff] }
 0x53a   :  { %4697 = vrcp.f32 %v1396_v35  ;;  %v7036_v35 = vld [vmem:[#allocation23_spill] sm:$0xff] }
 0x545   :  { %v4696_v60 = vpop.eup %4695 }
 0x546   :  { %v1402_v33 = vmul.f32 %v4696_v60, %v1401_v43  ;;  %v7033_v60 = vld [vmem:[#allocation28_spill] sm:$0xff] }
 0x547   :  { %v4698_v47 = vpop.eup %4697 }
 0x548   :  { %v1403_v45 = vadd.f32 %v1402_v33, %v7031_v44  ;;  %v1405_v52 = vsub.f32 1.0, %v4698_v47  ;;  %v1407_v54 = vmul.f32 %v4698_v47, %v5810_v48  ;;  %v7034_v48 = vld [vmem:[#allocation25_spill] sm:$0xff]  ;;  %v7035_v33 = vld [vmem:[#allocation20_spill] sm:$0xff] }
 0x54a   :  { %4699 = vtanh.f32 %v1403_v45 }
 0x557   :  { %v4700_v56 = vpop.eup %4699 }
 0x558   :  { %v1406_v53 = vmul.f32 %v4700_v56, %v1405_v52  ;;  %v7040_v56 = vld [vmem:[#allocation44_spill] sm:$0xff] }
 0x55a   :  { %v5945_v42 = vadd.f32 %v1407_v54, %v1406_v53  ;;  %v265_v53 = vadd.f32 %v7040_v56, %v5492_v29 }
 0x55c   :  { %1409 = vst [vmem:[#allocation12 + $0x20] sm:$0xff] %v5945_v42  ;;  %1478 = vmatmul.mubr.f32.vlgmr.msra.gmra.mxu1 %v5945_v42  ;;  %4228 = vmatmul.mubr.f32.vlgmr.msra.gmra.mxu0 %v5945_v42 }
 0x55d   :  { %1581 = vmatpush1.msra.mxu1 %v5698_v41  ;;  %4231 = vmatpush3.msra.mxu0 %v5701_v57 }
 0x55e   :  { %1582 = vmatprep.subr.mxu1 %v5704_v55  ;;  %4232 = vmatprep.subr.mxu0 %v7003_v1 }
 0x55f   :  { %1583 = vmatpush1.msra.mxu1 %v5708_v13  ;;  %4233 = vmatpush3.msra.mxu0 %v5711_v61 }
 0x560   :  { %1584 = vmatprep.subr.mxu1 %v5714_v63  ;;  %4234 = vmatprep.subr.mxu0 %v7003_v1 }
 0x561   :  { %1585 = vmatpush1.msra.mxu1 %v5718_v2  ;;  %4235 = vmatpush3.msra.mxu0 %v5721_v3 }
 0x562   :  { %1586 = vmatprep.subr.mxu1 %v5724_v4  ;;  %4236 = vmatprep.subr.mxu0 %v7003_v1 }
 0x563   :  { %1587 = vmatpush1.msra.mxu1 %v5728_v5  ;;  %4237 = vmatpush3.msra.mxu0 %v5828_v36 }
 0x564   :  { %1588 = vmatprep.subr.mxu1 %v5732_v7  ;;  %4238 = vmatprep.subr.mxu0 %v7003_v1 }
 0x565   :  { %1589 = vmatpush1.msra.mxu1 %v5736_v9  ;;  %4239 = vmatpush3.msra.mxu0 %v5834_v34 }
 0x566   :  { %1590 = vmatprep.subr.mxu1 %v5740_v10  ;;  %4240 = vmatprep.subr.mxu0 %v7003_v1 }
 0x567   :  { %1591 = vmatpush1.msra.mxu1 %v5744_v12  ;;  %4241 = vmatpush3.msra.mxu0 %v5840_v20 }
 0x568   :  { %1592 = vmatprep.subr.mxu1 %v5748_v11  ;;  %4242 = vmatprep.subr.mxu0 %v7003_v1 }
 0x569   :  { %1593 = vmatpush1.msra.mxu1 %v5752_v14  ;;  %4243 = vmatpush3.msra.mxu0 %v5846_v0 }
 0x56a   :  { %1594 = vmatprep.subr.mxu1 %v5756_v18  ;;  %4244 = vmatprep.subr.mxu0 %v7003_v1 }
 0x56b   :  { %1595 = vmatpush1.msra.mxu1 %v5760_v16  ;;  %4245 = vmatpush3.msra.mxu0 %v5852_v8 }
 0x56c   :  { %1596 = vmatprep.subr.mxu1 %v5764_v25  ;;  %4246 = vmatprep.subr.mxu0 %v7003_v1 }
 0x56d   :  { %1597 = vmatpush1.msra.mxu1 %v5857_v51  ;;  %4247 = vmatpush3.msra.mxu0 %v5860_v15 }
 0x56e   :  { %1598 = vmatprep.subr.mxu1 %v5863_v50  ;;  %4248 = vmatprep.subr.mxu0 %v7003_v1 }
 0x56f   :  { %1599 = vmatpush1.msra.mxu1 %v5867_v6  ;;  %4249 = vmatpush3.msra.mxu0 %v5870_v62 }
 0x570   :  { %1600 = vmatprep.subr.mxu1 %v5873_v49  ;;  %4250 = vmatprep.subr.mxu0 %v7003_v1 }
 0x571   :  { %1601 = vmatpush1.msra.mxu1 %v5877_v27  ;;  %4251 = vmatpush3.msra.mxu0 %v5880_v40 }
 0x572   :  { %1602 = vmatprep.subr.mxu1 %v5883_v17  ;;  %4252 = vmatprep.subr.mxu0 %v7003_v1 }
 0x573   :  { %1603 = vmatpush1.msra.mxu1 %v5887_v19  ;;  %4253 = vmatpush3.msra.mxu0 %v5890_v21 }
 0x574   :  { %1604 = vmatprep.subr.mxu1 %v5893_v23  ;;  %4254 = vmatprep.subr.mxu0 %v7003_v1 }
 0x575   :  { %1605 = vmatpush1.msra.mxu1 %v5897_v24  ;;  %4255 = vmatpush3.msra.mxu0 %v5900_v26 }
 0x576   :  { %1606 = vmatprep.subr.mxu1 %v5903_v28  ;;  %4256 = vmatprep.subr.mxu0 %v7003_v1 }
 0x577   :  { %1607 = vmatpush1.msra.mxu1 %v5907_v30  ;;  %4257 = vmatpush3.msra.mxu0 %v5910_v31 }
 0x578   :  { %1608 = vmatprep.subr.mxu1 %v5913_v32  ;;  %4258 = vmatprep.subr.mxu0 %v7003_v1 }
 0x579   :  { %1609 = vmatpush1.msra.mxu1 %v7032_v59  ;;  %4259 = vmatpush3.msra.mxu0 %v7033_v60 }
 0x57a   :  { %1610 = vmatprep.subr.mxu1 %v7034_v48  ;;  %4260 = vmatprep.subr.mxu0 %v7003_v1 }
 0x57b   :  { %1611 = vmatpush1.msra.mxu1 %v7035_v33  ;;  %1644 = vmatprep.mubr.f32.mxu1 %v7003_v1 }
 0x57c   :  { %4261 = vmatpush3.msra.mxu0 %v7036_v35  ;;  %4262 = vmatprep.mubr.msk.f32.mxu0 %vm5048_vm0, %v7003_v1 }
 0x57d   :  { %1747 = vmatprep.subr.mxu1 %v7037_v37  ;;  %4265 = vmatprep.subr.mxu0 %v7003_v1 }
 0x61c   :  { %v1479_v38 = vpop.f32.mrf.mxu1  ;;  %v1550_v43 = vpop.f32.mrf.mxu0 }
 0x61d   :  { %v1554_v44 = vadd.f32 %v1479_v38, %v263_v58  ;;  %v1568_v46 = vadd.f32 %v5528_v22, %v1550_v43  ;;  %v7041_v58 = vld [vmem:[#allocation31_spill] sm:$0xff]  ;;  %v7042_v22 = vld [vmem:[#allocation26_spill] sm:$0xff] }
 0x61e   :  { %v4229_v45 = vpop.f32.mrf.mxu0  ;;  %v1481_v52 = vpop.f32.mrf.mxu1 }
 0x61f   :  { %v3605_v47 = vmul.f32 -1.442695, %v1554_v44  ;;  %v1555_v54 = vadd.f32 %v1481_v52, %v265_v53 }
 0x621   :  { %4701 = vpow2.f32 %v3605_v47  ;;  %v3606_v35 = vmul.f32 -1.442695, %v1555_v54 }
 0x623   :  { %4703 = vpow2.f32 %v3606_v35 }
 0x62e   :  { %v4702_v33 = vpop.eup %4701 }
 0x62f   :  { %v1562_v37 = vadd.f32 1.0, %v4702_v33  ;;  %v7047_v33 = vld [vmem:[#allocation19_spill] sm:$0xff] }
 0x630   :  { %v4704_v48 = vpop.eup %4703 }
 0x631   :  { %4705 = vrcp.f32 %v1562_v37  ;;  %v1563_v60 = vadd.f32 1.0, %v4704_v48  ;;  %v7046_v48 = vld [vmem:[#allocation23_spill] sm:$0xff] }
 0x632   :  { %v7048_v37 = vld [vmem:[#allocation51_spill] sm:$0xff] }
 0x633   :  { %4707 = vrcp.f32 %v1563_v60  ;;  %v7045_v60 = vld [vmem:[#allocation20_spill] sm:$0xff] }
 0x63e   :  { %v4706_v39 = vpop.eup %4705 }
 0x63f   :  { %v1569_v59 = vmul.f32 %v4706_v39, %v1568_v46  ;;  %v7049_v39 = vld [vmem:[#allocation46_spill] sm:$0xff] }
 0x640   :  { %v4708_v44 = vpop.eup %4707  ;;  %v269_v43 = vadd.f32 %v7049_v39, %v7048_v37  ;;  %v6103_v39 = vld [vmem:[%s6897_s4] ss:$0 sm:$0xff] }
 0x641   :  { %v1570_v38 = vadd.f32 %v1569_v59, %v7041_v58  ;;  %v1572_v45 = vsub.f32 1.0, %v4708_v44  ;;  %v1574_v52 = vmul.f32 %v4708_v44, %v5945_v42  ;;  %v7043_v42 = vld [vmem:[#allocation28_spill] sm:$0xff]  ;;  %v7044_v59 = vld [vmem:[#allocation25_spill] sm:$0xff] }
 0x643   :  { %4709 = vtanh.f32 %v1570_v38 }
 0x650   :  { %v4710_v56 = vpop.eup %4709 }
 0x651   :  { %v1573_v47 = vmul.f32 %v4710_v56, %v1572_v45  ;;  %v7050_v45 = vld [vmem:[#allocation48_spill] sm:$0xff] }
 0x652   :  { %v271_v56 = vadd.f32 %v7050_v45, %v5492_v29 }
 0x653   :  { %v6024_v35 = vadd.f32 %v1574_v52, %v1573_v47 }
 0x655   :  { %1576 = vst [vmem:[#allocation12 + $0x28] sm:$0xff] %v6024_v35  ;;  %1645 = vmatmul.mubr.f32.vlgmr.msra.gmra.mxu1 %v6024_v35  ;;  %4263 = vmatmul.mubr.f32.vlgmr.msra.gmra.mxu0 %v6024_v35 }
 0x656   :  { %1748 = vmatpush1.msra.mxu1 %v5698_v41  ;;  %4266 = vmatpush3.msra.mxu0 %v5701_v57 }
 0x657   :  { %1749 = vmatprep.subr.mxu1 %v5704_v55  ;;  %4267 = vmatprep.subr.mxu0 %v7003_v1 }
 0x658   :  { %1750 = vmatpush1.msra.mxu1 %v5708_v13  ;;  %4268 = vmatpush3.msra.mxu0 %v5711_v61 }
 0x659   :  { %1751 = vmatprep.subr.mxu1 %v5714_v63  ;;  %4269 = vmatprep.subr.mxu0 %v7003_v1 }
 0x65a   :  { %1752 = vmatpush1.msra.mxu1 %v5718_v2  ;;  %4270 = vmatpush3.msra.mxu0 %v5721_v3 }
 0x65b   :  { %1753 = vmatprep.subr.mxu1 %v5724_v4  ;;  %4271 = vmatprep.subr.mxu0 %v7003_v1 }
 0x65c   :  { %1754 = vmatpush1.msra.mxu1 %v5728_v5  ;;  %4272 = vmatpush3.msra.mxu0 %v5828_v36 }
 0x65d   :  { %1755 = vmatprep.subr.mxu1 %v5732_v7  ;;  %4273 = vmatprep.subr.mxu0 %v7003_v1 }
 0x65e   :  { %1756 = vmatpush1.msra.mxu1 %v5736_v9  ;;  %4274 = vmatpush3.msra.mxu0 %v5834_v34 }
 0x65f   :  { %1757 = vmatprep.subr.mxu1 %v5740_v10  ;;  %4275 = vmatprep.subr.mxu0 %v7003_v1 }
 0x660   :  { %1758 = vmatpush1.msra.mxu1 %v5744_v12  ;;  %4276 = vmatpush3.msra.mxu0 %v5840_v20 }
 0x661   :  { %1759 = vmatprep.subr.mxu1 %v5748_v11  ;;  %4277 = vmatprep.subr.mxu0 %v7003_v1 }
 0x662   :  { %1760 = vmatpush1.msra.mxu1 %v5752_v14  ;;  %4278 = vmatpush3.msra.mxu0 %v5846_v0 }
 0x663   :  { %1761 = vmatprep.subr.mxu1 %v5756_v18  ;;  %4279 = vmatprep.subr.mxu0 %v7003_v1 }
 0x664   :  { %1762 = vmatpush1.msra.mxu1 %v5760_v16  ;;  %4280 = vmatpush3.msra.mxu0 %v5852_v8 }
 0x665   :  { %1763 = vmatprep.subr.mxu1 %v5764_v25  ;;  %4281 = vmatprep.subr.mxu0 %v7003_v1 }
 0x666   :  { %1764 = vmatpush1.msra.mxu1 %v5857_v51  ;;  %4282 = vmatpush3.msra.mxu0 %v5860_v15 }
 0x667   :  { %1765 = vmatprep.subr.mxu1 %v5863_v50  ;;  %4283 = vmatprep.subr.mxu0 %v7003_v1 }
 0x668   :  { %1766 = vmatpush1.msra.mxu1 %v5867_v6  ;;  %4284 = vmatpush3.msra.mxu0 %v5870_v62 }
 0x669   :  { %1767 = vmatprep.subr.mxu1 %v5873_v49  ;;  %4285 = vmatprep.subr.mxu0 %v7003_v1 }
 0x66a   :  { %1768 = vmatpush1.msra.mxu1 %v5877_v27  ;;  %4286 = vmatpush3.msra.mxu0 %v5880_v40 }
 0x66b   :  { %1769 = vmatprep.subr.mxu1 %v5883_v17  ;;  %4287 = vmatprep.subr.mxu0 %v7003_v1 }
 0x66c   :  { %1770 = vmatpush1.msra.mxu1 %v5887_v19  ;;  %4288 = vmatpush3.msra.mxu0 %v5890_v21 }
 0x66d   :  { %1771 = vmatprep.subr.mxu1 %v5893_v23  ;;  %4289 = vmatprep.subr.mxu0 %v7003_v1 }
 0x66e   :  { %1772 = vmatpush1.msra.mxu1 %v5897_v24  ;;  %4290 = vmatpush3.msra.mxu0 %v5900_v26 }
 0x66f   :  { %1773 = vmatprep.subr.mxu1 %v5903_v28  ;;  %4291 = vmatprep.subr.mxu0 %v7003_v1 }
 0x670   :  { %1774 = vmatpush1.msra.mxu1 %v5907_v30  ;;  %4292 = vmatpush3.msra.mxu0 %v5910_v31 }
 0x671   :  { %1775 = vmatprep.subr.mxu1 %v5913_v32  ;;  %4293 = vmatprep.subr.mxu0 %v7003_v1 }
 0x672   :  { %1776 = vmatpush1.msra.mxu1 %v7042_v22  ;;  %4294 = vmatpush3.msra.mxu0 %v7043_v42 }
 0x673   :  { %1777 = vmatprep.subr.mxu1 %v7044_v59  ;;  %4295 = vmatprep.subr.mxu0 %v7003_v1 }
 0x674   :  { %1778 = vmatpush1.msra.mxu1 %v7045_v60  ;;  %1811 = vmatprep.mubr.f32.mxu1 %v7003_v1 }
 0x675   :  { %4296 = vmatpush3.msra.mxu0 %v7046_v48  ;;  %4297 = vmatprep.mubr.msk.f32.mxu0 %vm5048_vm0, %v7003_v1 }
 0x676   :  { %1914 = vmatprep.subr.mxu1 %v7047_v33  ;;  %4300 = vmatprep.subr.mxu0 %v7003_v1 }
 0x715   :  { %v1646_v53 = vpop.f32.mrf.mxu1  ;;  %v1717_v54 = vpop.f32.mrf.mxu0 }
 0x716   :  { %v1721_v46 = vadd.f32 %v1646_v53, %v269_v43  ;;  %v1735_v43 = vadd.f32 %v6103_v39, %v1717_v54  ;;  %v7054_v54 = vld [vmem:[#allocation23_spill] sm:$0xff] }
 0x717   :  { %v4264_v58 = vpop.f32.mrf.mxu0  ;;  %v1648_v44 = vpop.f32.mrf.mxu1 }
 0x718   :  { %v3607_v38 = vmul.f32 -1.442695, %v1721_v46  ;;  %v1722_v47 = vadd.f32 %v1648_v44, %v271_v56  ;;  %v7051_v58 = vld [vmem:[#allocation37_spill] sm:$0xff] }
 0x71a   :  { %4711 = vpow2.f32 %v3607_v38  ;;  %v3608_v52 = vmul.f32 -1.442695, %v1722_v47  ;;  %v7055_v47 = vld [vmem:[#allocation19_spill] sm:$0xff] }
 0x71c   :  { %4713 = vpow2.f32 %v3608_v52  ;;  %v7056_v52 = vld [vmem:[#allocation50_spill] sm:$0xff] }
 0x727   :  { %v4712_v48 = vpop.eup %4711 }
 0x728   :  { %v1729_v33 = vadd.f32 1.0, %v4712_v48 }
 0x729   :  { %v4714_v60 = vpop.eup %4713 }
 0x72a   :  { %4715 = vrcp.f32 %v1729_v33  ;;  %v1730_v59 = vadd.f32 1.0, %v4714_v60 }
 0x72c   :  { %4717 = vrcp.f32 %v1730_v59  ;;  %v7053_v59 = vld [vmem:[#allocation20_spill] sm:$0xff] }
 0x737   :  { %v4716_v53 = vpop.eup %4715 }
 0x738   :  { %v1736_v46 = vmul.f32 %v4716_v53, %v1735_v43  ;;  %v275_v43 = vadd.f32 %v7056_v52, %v7048_v37 }
 0x739   :  { %v4718_v44 = vpop.eup %4717 }
 0x73a   :  { %v1737_v38 = vadd.f32 %v1736_v46, %v7051_v58  ;;  %v1739_v45 = vsub.f32 1.0, %v4718_v44  ;;  %v1741_v33 = vmul.f32 %v4718_v44, %v6024_v35  ;;  %v7052_v35 = vld [vmem:[#allocation25_spill] sm:$0xff] }
 0x73c   :  { %4719 = vtanh.f32 %v1737_v38 }
 0x749   :  { %v4720_v56 = vpop.eup %4719 }
 0x74a   :  { %v1740_v48 = vmul.f32 %v4720_v56, %v1739_v45  ;;  %v7057_v56 = vld [vmem:[#allocation53_spill] sm:$0xff] }
 0x74c   :  { %v6108_v60 = vadd.f32 %v1741_v33, %v1740_v48  ;;  %v277_v48 = vadd.f32 %v7057_v56, %v5492_v29 }
 0x74e   :  { %1743 = vst [vmem:[#allocation12 + $0x30] sm:$0xff] %v6108_v60  ;;  %1812 = vmatmul.mubr.f32.vlgmr.msra.gmra.mxu1 %v6108_v60  ;;  %4298 = vmatmul.mubr.f32.vlgmr.msra.gmra.mxu0 %v6108_v60 }
 0x74f   :  { %1915 = vmatpush1.msra.mxu1 %v5698_v41  ;;  %4301 = vmatpush3.msra.mxu0 %v5701_v57 }
 0x750   :  { %1916 = vmatprep.subr.mxu1 %v5704_v55  ;;  %4302 = vmatprep.subr.mxu0 %v7003_v1 }
 0x751   :  { %1917 = vmatpush1.msra.mxu1 %v5708_v13  ;;  %4303 = vmatpush3.msra.mxu0 %v5711_v61 }
 0x752   :  { %1918 = vmatprep.subr.mxu1 %v5714_v63  ;;  %4304 = vmatprep.subr.mxu0 %v7003_v1 }
 0x753   :  { %1919 = vmatpush1.msra.mxu1 %v5718_v2  ;;  %4305 = vmatpush3.msra.mxu0 %v5721_v3 }
 0x754   :  { %1920 = vmatprep.subr.mxu1 %v5724_v4  ;;  %4306 = vmatprep.subr.mxu0 %v7003_v1 }
 0x755   :  { %1921 = vmatpush1.msra.mxu1 %v5728_v5  ;;  %4307 = vmatpush3.msra.mxu0 %v5828_v36 }
 0x756   :  { %1922 = vmatprep.subr.mxu1 %v5732_v7  ;;  %4308 = vmatprep.subr.mxu0 %v7003_v1 }
 0x757   :  { %1923 = vmatpush1.msra.mxu1 %v5736_v9  ;;  %4309 = vmatpush3.msra.mxu0 %v5834_v34 }
 0x758   :  { %1924 = vmatprep.subr.mxu1 %v5740_v10  ;;  %4310 = vmatprep.subr.mxu0 %v7003_v1 }
 0x759   :  { %1925 = vmatpush1.msra.mxu1 %v5744_v12  ;;  %4311 = vmatpush3.msra.mxu0 %v5840_v20 }
 0x75a   :  { %1926 = vmatprep.subr.mxu1 %v5748_v11  ;;  %4312 = vmatprep.subr.mxu0 %v7003_v1 }
 0x75b   :  { %1927 = vmatpush1.msra.mxu1 %v5752_v14  ;;  %4313 = vmatpush3.msra.mxu0 %v5846_v0 }
 0x75c   :  { %1928 = vmatprep.subr.mxu1 %v5756_v18  ;;  %4314 = vmatprep.subr.mxu0 %v7003_v1 }
 0x75d   :  { %1929 = vmatpush1.msra.mxu1 %v5760_v16  ;;  %4315 = vmatpush3.msra.mxu0 %v5852_v8 }
 0x75e   :  { %1930 = vmatprep.subr.mxu1 %v5764_v25  ;;  %4316 = vmatprep.subr.mxu0 %v7003_v1 }
 0x75f   :  { %1931 = vmatpush1.msra.mxu1 %v5857_v51  ;;  %4317 = vmatpush3.msra.mxu0 %v5860_v15 }
 0x760   :  { %1932 = vmatprep.subr.mxu1 %v5863_v50  ;;  %4318 = vmatprep.subr.mxu0 %v7003_v1 }
 0x761   :  { %1933 = vmatpush1.msra.mxu1 %v5867_v6  ;;  %4319 = vmatpush3.msra.mxu0 %v5870_v62 }
 0x762   :  { %1934 = vmatprep.subr.mxu1 %v5873_v49  ;;  %4320 = vmatprep.subr.mxu0 %v7003_v1 }
 0x763   :  { %1935 = vmatpush1.msra.mxu1 %v5877_v27  ;;  %4321 = vmatpush3.msra.mxu0 %v5880_v40 }
 0x764   :  { %1936 = vmatprep.subr.mxu1 %v5883_v17  ;;  %4322 = vmatprep.subr.mxu0 %v7003_v1 }
 0x765   :  { %1937 = vmatpush1.msra.mxu1 %v5887_v19  ;;  %4323 = vmatpush3.msra.mxu0 %v5890_v21 }
 0x766   :  { %1938 = vmatprep.subr.mxu1 %v5893_v23  ;;  %4324 = vmatprep.subr.mxu0 %v7003_v1 }
 0x767   :  { %1939 = vmatpush1.msra.mxu1 %v5897_v24  ;;  %4325 = vmatpush3.msra.mxu0 %v5900_v26 }
 0x768   :  { %1940 = vmatprep.subr.mxu1 %v5903_v28  ;;  %4326 = vmatprep.subr.mxu0 %v7003_v1 }
 0x769   :  { %1941 = vmatpush1.msra.mxu1 %v5907_v30  ;;  %4327 = vmatpush3.msra.mxu0 %v5910_v31 }
 0x76a   :  { %1942 = vmatprep.subr.mxu1 %v5913_v32  ;;  %4328 = vmatprep.subr.mxu0 %v7003_v1 }
 0x76b   :  { %1943 = vmatpush1.msra.mxu1 %v7042_v22  ;;  %4329 = vmatpush3.msra.mxu0 %v7043_v42 }
 0x76c   :  { %1944 = vmatprep.subr.mxu1 %v7052_v35  ;;  %4330 = vmatprep.subr.mxu0 %v7003_v1 }
 0x76d   :  { %1945 = vmatpush1.msra.mxu1 %v7053_v59  ;;  %1978 = vmatprep.mubr.f32.mxu1 %v7003_v1 }
 0x76e   :  { %4331 = vmatpush3.msra.mxu0 %v7054_v54  ;;  %4332 = vmatprep.mubr.msk.f32.mxu0 %vm5048_vm0, %v7003_v1 }
 0x76f   :  { %2081 = vmatprep.subr.mxu1 %v7055_v47  ;;  %4335 = vmatprep.subr.mxu0 %v7003_v1 }
 0x80e   :  { %v1813_v53 = vpop.f32.mrf.mxu1  ;;  %v1884_v46 = vpop.f32.mrf.mxu0 }
 0x80f   :  { %v1888_v58 = vadd.f32 %v1813_v53, %v275_v43  ;;  %v1902_v52 = vadd.f32 %v6103_v39, %v1884_v46  ;;  %v7058_v43 = vld [vmem:[#allocation35_spill] sm:$0xff] }
 0x810   :  { %v4299_v38 = vpop.f32.mrf.mxu0  ;;  %v1815_v45 = vpop.f32.mrf.mxu1 }
 0x811   :  { %v3609_v44 = vmul.f32 -1.442695, %v1888_v58  ;;  %v1889_v33 = vadd.f32 %v1815_v45, %v277_v48  ;;  %v7068_v48 = vld [vmem:[#allocation41_spill] sm:$0xff] }
 0x813   :  { %4721 = vpow2.f32 %v3609_v44  ;;  %v3610_v54 = vmul.f32 -1.442695, %v1889_v33 }
 0x815   :  { %4723 = vpow2.f32 %v3610_v54 }
 0x820   :  { %v4722_v59 = vpop.eup %4721 }
 0x821   :  { %v1896_v47 = vadd.f32 1.0, %v4722_v59 }
 0x822   :  { %v4724_v35 = vpop.eup %4723 }
 0x823   :  { %4725 = vrcp.f32 %v1896_v47  ;;  %v1897_v42 = vadd.f32 1.0, %v4724_v35 }
 0x825   :  { %4727 = vrcp.f32 %v1897_v42 }
 0x830   :  { %v4726_v37 = vpop.eup %4725 }
 0x831   :  { %v1903_v22 = vmul.f32 %v4726_v37, %v1902_v52 }
 0x832   :  { %v4728_v58 = vpop.eup %4727 }
 0x833   :  { %v1904_v53 = vadd.f32 %v1903_v22, %v7058_v43  ;;  %v1906_v38 = vsub.f32 1.0, %v4728_v58  ;;  %v1908_v45 = vmul.f32 %v4728_v58, %v6108_v60 }
 0x835   :  { %4729 = vtanh.f32 %v1904_v53 }
 0x842   :  { %v4730_v56 = vpop.eup %4729 }
 0x843   :  { %v1907_v44 = vmul.f32 %v4730_v56, %v1906_v38  ;;  %v6273_v56 = vld [vmem:[#allocation8 + $0x168] sm:$0xff] }
 0x845   :  { %v6187_v54 = vadd.f32 %v1908_v45, %v1907_v44  ;;  %v6276_v44 = vld [vmem:[#allocation8 + $0x178] sm:$0xff] }
 0x846   :  { %v6279_v45 = vld [vmem:[#allocation8 + $0x158] sm:$0xff] }
 0x847   :  { %1910 = vst [vmem:[#allocation12 + $0x38] sm:$0xff] %v6187_v54  ;;  %1979 = vmatmul.mubr.f32.vlgmr.msra.gmra.mxu1 %v6187_v54  ;;  %4333 = vmatmul.mubr.f32.vlgmr.msra.gmra.mxu0 %v6187_v54 }
 0x848   :  { %2082 = vmatpush1.msra.mxu1 %v5698_v41  ;;  %4336 = vmatpush3.msra.mxu0 %v5701_v57  ;;  %v7059_v41 = vld [vmem:[#allocation26_spill] sm:$0xff]  ;;  %v7060_v57 = vld [vmem:[#allocation28_spill] sm:$0xff] }
 0x849   :  { %2083 = vmatprep.subr.mxu1 %v5704_v55  ;;  %4337 = vmatprep.subr.mxu0 %v7003_v1  ;;  %v7061_v55 = vld [vmem:[#allocation25_spill] sm:$0xff] }
 0x84a   :  { %2084 = vmatpush1.msra.mxu1 %v5708_v13  ;;  %4338 = vmatpush3.msra.mxu0 %v5711_v61  ;;  %v7062_v13 = vld [vmem:[#allocation20_spill] sm:$0xff]  ;;  %v7063_v61 = vld [vmem:[#allocation23_spill] sm:$0xff] }
 0x84b   :  { %2085 = vmatprep.subr.mxu1 %v5714_v63  ;;  %4339 = vmatprep.subr.mxu0 %v7003_v1  ;;  %v6257_v63 = vld [vmem:[#allocation8 + $0x170] sm:$0xff] }
 0x84c   :  { %2086 = vmatpush1.msra.mxu1 %v5718_v2  ;;  %4340 = vmatpush3.msra.mxu0 %v5721_v3  ;;  %7064 = vst [vmem:[#allocation21_spill] sm:$0xff] %v6257_v63  ;;  %v7065_v2 = vld [vmem:[#allocation51_spill] sm:$0xff] }
 0x84d   :  { %2087 = vmatprep.subr.mxu1 %v5724_v4  ;;  %4341 = vmatprep.subr.mxu0 %v7003_v1  ;;  %v7066_v3 = vld [vmem:[#allocation55_spill] sm:$0xff] }
 0x84e   :  { %2088 = vmatpush1.msra.mxu1 %v5728_v5  ;;  %4342 = vmatpush3.msra.mxu0 %v5828_v36  ;;  %v281_v4 = vadd.f32 %v7066_v3, %v7065_v2  ;;  %v6286_v3 = vld [vmem:[#allocation8 + $0x160] sm:$0xff] }
 0x84f   :  { %2089 = vmatprep.subr.mxu1 %v5732_v7  ;;  %4343 = vmatprep.subr.mxu0 %v7003_v1 }
 0x850   :  { %2090 = vmatpush1.msra.mxu1 %v5736_v9  ;;  %4344 = vmatpush3.msra.mxu0 %v5834_v34 }
 0x851   :  { %2091 = vmatprep.subr.mxu1 %v5740_v10  ;;  %4345 = vmatprep.subr.mxu0 %v7003_v1 }
 0x852   :  { %2092 = vmatpush1.msra.mxu1 %v5744_v12  ;;  %4346 = vmatpush3.msra.mxu0 %v5840_v20 }
 0x853   :  { %2093 = vmatprep.subr.mxu1 %v5748_v11  ;;  %4347 = vmatprep.subr.mxu0 %v7003_v1 }
 0x854   :  { %2094 = vmatpush1.msra.mxu1 %v5752_v14  ;;  %4348 = vmatpush3.msra.mxu0 %v5846_v0  ;;  %v7067_v14 = vld [vmem:[#allocation56_spill] sm:$0xff] }
 0x855   :  { %2095 = vmatprep.subr.mxu1 %v5756_v18  ;;  %4349 = vmatprep.subr.mxu0 %v7003_v1  ;;  %v283_v18 = vadd.f32 %v7067_v14, %v5492_v29  ;;  %v6315_v14 = vld [vmem:[#allocation8 + $0xf8] sm:$0xff] }
 0x856   :  { %2096 = vmatpush1.msra.mxu1 %v5760_v16  ;;  %4350 = vmatpush3.msra.mxu0 %v5852_v8 }
 0x857   :  { %2097 = vmatprep.subr.mxu1 %v5764_v25  ;;  %4351 = vmatprep.subr.mxu0 %v7003_v1 }
 0x858   :  { %2098 = vmatpush1.msra.mxu1 %v5857_v51  ;;  %4352 = vmatpush3.msra.mxu0 %v5860_v15 }
 0x859   :  { %2099 = vmatprep.subr.mxu1 %v5863_v50  ;;  %4353 = vmatprep.subr.mxu0 %v7003_v1 }
 0x85a   :  { %2100 = vmatpush1.msra.mxu1 %v5867_v6  ;;  %4354 = vmatpush3.msra.mxu0 %v5870_v62 }
 0x85b   :  { %2101 = vmatprep.subr.mxu1 %v5873_v49  ;;  %4355 = vmatprep.subr.mxu0 %v7003_v1 }
 0x85c   :  { %2102 = vmatpush1.msra.mxu1 %v5877_v27  ;;  %4356 = vmatpush3.msra.mxu0 %v5880_v40 }
 0x85d   :  { %2103 = vmatprep.subr.mxu1 %v5883_v17  ;;  %4357 = vmatprep.subr.mxu0 %v7003_v1 }
 0x85e   :  { %2104 = vmatpush1.msra.mxu1 %v5887_v19  ;;  %4358 = vmatpush3.msra.mxu0 %v5890_v21 }
 0x85f   :  { %2105 = vmatprep.subr.mxu1 %v5893_v23  ;;  %4359 = vmatprep.subr.mxu0 %v7003_v1 }
 0x860   :  { %2106 = vmatpush1.msra.mxu1 %v5897_v24  ;;  %4360 = vmatpush3.msra.mxu0 %v5900_v26 }
 0x861   :  { %2107 = vmatprep.subr.mxu1 %v5903_v28  ;;  %4361 = vmatprep.subr.mxu0 %v7003_v1 }
 0x862   :  { %2108 = vmatpush1.msra.mxu1 %v5907_v30  ;;  %4362 = vmatpush3.msra.mxu0 %v5910_v31 }
 0x863   :  { %2109 = vmatprep.subr.mxu1 %v5913_v32  ;;  %4363 = vmatprep.subr.mxu0 %v7003_v1 }
 0x864   :  { %2110 = vmatpush1.msra.mxu1 %v7059_v41  ;;  %4364 = vmatpush3.msra.mxu0 %v7060_v57 }
 0x865   :  { %2111 = vmatprep.subr.mxu1 %v7061_v55  ;;  %4365 = vmatprep.subr.mxu0 %v7003_v1 }
 0x866   :  { %2112 = vmatpush1.msra.mxu1 %v7062_v13  ;;  %2145 = vmatprep.mubr.f32.mxu1 %v7003_v1 }
 0x867   :  { %4366 = vmatpush3.msra.mxu0 %v7063_v61  ;;  %4367 = vmatprep.mubr.msk.f32.mxu0 %vm5048_vm0, %v7003_v1 }
 0x868   :  { %2248 = vmatprep.subr.mxu1 %v6257_v63  ;;  %4370 = vmatprep.subr.mxu0 %v7003_v1 }
 0x907   :  { %v1980_v5 = vpop.f32.mrf.mxu1  ;;  %v2051_v7 = vpop.f32.mrf.mxu0 }
 0x908   :  { %v2055_v9 = vadd.f32 %v1980_v5, %v281_v4  ;;  %v2069_v35 = vadd.f32 %v6103_v39, %v2051_v7  ;;  %v6289_v4 = vld [vmem:[#allocation8 + $0x140] sm:$0xff]  ;;  %v6293_v5 = vld [vmem:[#allocation8 + $0x138] sm:$0xff]  ;;  %v6296_v7 = vld [vmem:[#allocation8 + $0x148] sm:$0xff] }
 0x909   :  { %v4334_v10 = vpop.f32.mrf.mxu0  ;;  %v1982_v11 = vpop.f32.mrf.mxu1 }
 0x90a   :  { %v3611_v12 = vmul.f32 -1.442695, %v2055_v9  ;;  %v2056_v16 = vadd.f32 %v1982_v11, %v283_v18  ;;  %v6299_v9 = vld [vmem:[#allocation8 + $0x128] sm:$0xff]  ;;  %v6303_v10 = vld [vmem:[#allocation8 + $0x120] sm:$0xff]  ;;  %v6319_v18 = vld [vmem:[#allocation8 + $0xf0] sm:$0xff] }
 0x90b   :  { %v6311_v11 = vld [vmem:[#allocation8 + $0x108] sm:$0xff] }
 0x90c   :  { %4731 = vpow2.f32 %v3611_v12  ;;  %v3612_v25 = vmul.f32 -1.442695, %v2056_v16  ;;  %v6307_v12 = vld [vmem:[#allocation8 + $0x110] sm:$0xff]  ;;  %v6327_v16 = vld [vmem:[#allocation8 + $0xd8] sm:$0xff] }
 0x90e   :  { %4733 = vpow2.f32 %v3612_v25  ;;  %v6335_v25 = vld [vmem:[#allocation8 + $0xc0] sm:$0xff] }
 0x919   :  { %v4732_v22 = vpop.eup %4731 }
 0x91a   :  { %v2063_v42 = vadd.f32 1.0, %v4732_v22 }
 0x91b   :  { %v4734_v37 = vpop.eup %4733 }
 0x91c   :  { %4735 = vrcp.f32 %v2063_v42  ;;  %v2064_v60 = vadd.f32 1.0, %v4734_v37  ;;  %v6403_v37 = vld [vmem:[#allocation8 + $0x130] sm:$0xff] }
 0x91e   :  { %4737 = vrcp.f32 %v2064_v60  ;;  %v6409_v60 = vld [vmem:[#allocation8 + $0x118] sm:$0xff] }
 0x929   :  { %v4736_v59 = vpop.eup %4735 }
 0x92a   :  { %v2070_v46 = vmul.f32 %v4736_v59, %v2069_v35  ;;  %v6415_v35 = vld [vmem:[#allocation8 + $0x100] sm:$0xff]  ;;  %v6421_v59 = vld [vmem:[#allocation8 + $0xe8] sm:$0xff] }
 0x92b   :  { %v4738_v47 = vpop.eup %4737 }
 0x92c   :  { %v2071_v33 = vadd.f32 %v2070_v46, %v7068_v48  ;;  %v2073_v52 = vsub.f32 1.0, %v4738_v47  ;;  %v2075_v58 = vmul.f32 %v4738_v47, %v6187_v54  ;;  %v6283_v54 = vld [vmem:[#allocation8 + $0x150] sm:$0xff]  ;;  %v6432_v48 = vld [vmem:[#allocation8 + $0xa8] sm:$0xff]  ;;  %v6438_v47 = vld [vmem:[#allocation8 + $0x98] sm:$0xff] }
 0x92d   :  { %v6427_v46 = vld [vmem:[#allocation8 + $0xd0] sm:$0xff] }
 0x92e   :  { %4739 = vtanh.f32 %v2071_v33  ;;  %v6435_v33 = vld [vmem:[#allocation8 + $0xb8] sm:$0xff] }
 0x93b   :  { %v4740_v43 = vpop.eup %4739 }
 0x93c   :  { %v2074_v53 = vmul.f32 %v4740_v43, %v2073_v52  ;;  %v6442_v52 = vld [vmem:[#allocation8 + $0x90] sm:$0xff]  ;;  %v6445_v43 = vld [vmem:[#allocation8 + $0xa0] sm:$0xff] }
 0x93e   :  { %v6268_v38 = vadd.f32 %v2075_v58, %v2074_v53  ;;  %v6448_v53 = vld [vmem:[#allocation8 + $0x80] sm:$0xff]  ;;  %v6452_v58 = vld [vmem:[#allocation8 + $0x78] sm:$0xff] }
 0x940   :  { %2077 = vst [vmem:[#allocation12 + $0x40] sm:$0xff] %v6268_v38  ;;  %2146 = vmatmul.mubr.f32.vlgmr.msra.gmra.mxu1 %v6268_v38  ;;  %4368 = vmatmul.mubr.f32.vlgmr.msra.gmra.mxu0 %v6268_v38 }
 0x941   :  { %2249 = vmatpush1.msra.mxu1 %v6273_v56  ;;  %4371 = vmatpush3.msra.mxu0 %v6276_v44 }
 0x942   :  { %2250 = vmatprep.subr.mxu1 %v6279_v45  ;;  %4372 = vmatprep.subr.mxu0 %v7003_v1 }
 0x943   :  { %2251 = vmatpush1.msra.mxu1 %v6283_v54  ;;  %4373 = vmatpush3.msra.mxu0 %v6286_v3 }
 0x944   :  { %2252 = vmatprep.subr.mxu1 %v6289_v4  ;;  %4374 = vmatprep.subr.mxu0 %v7003_v1 }
 0x945   :  { %2253 = vmatpush1.msra.mxu1 %v6293_v5  ;;  %4375 = vmatpush3.msra.mxu0 %v6296_v7 }
 0x946   :  { %2254 = vmatprep.subr.mxu1 %v6299_v9  ;;  %4376 = vmatprep.subr.mxu0 %v7003_v1 }
 0x947   :  { %2255 = vmatpush1.msra.mxu1 %v6303_v10  ;;  %4377 = vmatpush3.msra.mxu0 %v5828_v36  ;;  %v6323_v36 = vld [vmem:[#allocation8 + $0xe0] sm:$0xff] }
 0x948   :  { %2256 = vmatprep.subr.mxu1 %v6307_v12  ;;  %4378 = vmatprep.subr.mxu0 %v7003_v1 }
 0x949   :  { %2257 = vmatpush1.msra.mxu1 %v6311_v11  ;;  %4379 = vmatpush3.msra.mxu0 %v5834_v34  ;;  %v6331_v34 = vld [vmem:[#allocation8 + $0xc8] sm:$0xff] }
 0x94a   :  { %2258 = vmatprep.subr.mxu1 %v6315_v14  ;;  %4380 = vmatprep.subr.mxu0 %v7003_v1 }
 0x94b   :  { %2259 = vmatpush1.msra.mxu1 %v6319_v18  ;;  %4381 = vmatpush3.msra.mxu0 %v5840_v20  ;;  %v6339_v20 = vld [vmem:[#allocation8 + $0xb0] sm:$0xff] }
 0x94c   :  { %2260 = vmatprep.subr.mxu1 %v6323_v36  ;;  %4382 = vmatprep.subr.mxu0 %v7003_v1 }
 0x94d   :  { %2261 = vmatpush1.msra.mxu1 %v6327_v16  ;;  %4383 = vmatpush3.msra.mxu0 %v5846_v0  ;;  %v7069_v0 = vld [vmem:[#allocation57_spill] sm:$0xff] }
 0x94e   :  { %2262 = vmatprep.subr.mxu1 %v6331_v34  ;;  %4384 = vmatprep.subr.mxu0 %v7003_v1 }
 0x94f   :  { %2263 = vmatpush1.msra.mxu1 %v6335_v25  ;;  %4385 = vmatpush3.msra.mxu0 %v5852_v8  ;;  %v287_v8 = vadd.f32 %v7069_v0, %v7065_v2  ;;  %v6458_v0 = vld [vmem:[#allocation8 + $0x68] sm:$0xff] }
 0x950   :  { %2264 = vmatprep.subr.mxu1 %v6339_v20  ;;  %4386 = vmatprep.subr.mxu0 %v7003_v1 }
 0x951   :  { %2265 = vmatpush1.msra.mxu1 %v5857_v51  ;;  %4387 = vmatpush3.msra.mxu0 %v5860_v15 }
 0x952   :  { %2266 = vmatprep.subr.mxu1 %v5863_v50  ;;  %4388 = vmatprep.subr.mxu0 %v7003_v1 }
 0x953   :  { %2267 = vmatpush1.msra.mxu1 %v5867_v6  ;;  %4389 = vmatpush3.msra.mxu0 %v5870_v62 }
 0x954   :  { %2268 = vmatprep.subr.mxu1 %v5873_v49  ;;  %4390 = vmatprep.subr.mxu0 %v7003_v1 }
 0x955   :  { %2269 = vmatpush1.msra.mxu1 %v5877_v27  ;;  %4391 = vmatpush3.msra.mxu0 %v5880_v40  ;;  %v7070_v27 = vld [vmem:[#allocation58_spill] sm:$0xff] }
 0x956   :  { %2270 = vmatprep.subr.mxu1 %v5883_v17  ;;  %4392 = vmatprep.subr.mxu0 %v7003_v1  ;;  %v289_v40 = vadd.f32 %v7070_v27, %v5492_v29  ;;  %v6485_v27 = vld [vmem:[#allocation8 + $0x40] sm:$0xff] }
 0x957   :  { %2271 = vmatpush1.msra.mxu1 %v5887_v19  ;;  %4393 = vmatpush3.msra.mxu0 %v5890_v21 }
 0x958   :  { %2272 = vmatprep.subr.mxu1 %v5893_v23  ;;  %4394 = vmatprep.subr.mxu0 %v7003_v1 }
 0x959   :  { %2273 = vmatpush1.msra.mxu1 %v5897_v24  ;;  %4395 = vmatpush3.msra.mxu0 %v5900_v26 }
 0x95a   :  { %2274 = vmatprep.subr.mxu1 %v5903_v28  ;;  %4396 = vmatprep.subr.mxu0 %v7003_v1 }
 0x95b   :  { %2275 = vmatpush1.msra.mxu1 %v5907_v30  ;;  %4397 = vmatpush3.msra.mxu0 %v5910_v31 }
 0x95c   :  { %2276 = vmatprep.subr.mxu1 %v5913_v32  ;;  %4398 = vmatprep.subr.mxu0 %v7003_v1  ;;  %v7071_v32 = vld [vmem:[#allocation39_spill] sm:$0xff] }
 0x95d   :  { %2277 = vmatpush1.msra.mxu1 %v7059_v41  ;;  %4399 = vmatpush3.msra.mxu0 %v7060_v57 }
 0x95e   :  { %2278 = vmatprep.subr.mxu1 %v7061_v55  ;;  %4400 = vmatprep.subr.mxu0 %v7003_v1 }
 0x95f   :  { %2279 = vmatpush1.msra.mxu1 %v7062_v13  ;;  %2312 = vmatprep.mubr.f32.mxu1 %v7003_v1 }
 0x960   :  { %4401 = vmatpush3.msra.mxu0 %v7063_v61  ;;  %4402 = vmatprep.mubr.msk.f32.mxu0 %vm5048_vm0, %v7003_v1 }
 0x961   :  { %2415 = vmatprep.subr.mxu1 %v6257_v63  ;;  %4405 = vmatprep.subr.mxu0 %v7003_v1 }
 0xa00   :  { %v2147_v51 = vpop.f32.mrf.mxu1  ;;  %v2218_v15 = vpop.f32.mrf.mxu0 }
 0xa01   :  { %v2222_v50 = vadd.f32 %v2147_v51, %v287_v8  ;;  %v2236_v28 = vadd.f32 %v6103_v39, %v2218_v15  ;;  %v6462_v8 = vld [vmem:[#allocation8 + $0x60] sm:$0xff]  ;;  %v6465_v51 = vld [vmem:[#allocation8 + $0x70] sm:$0xff] }
 0xa02   :  { %v4369_v6 = vpop.f32.mrf.mxu0  ;;  %v2149_v49 = vpop.f32.mrf.mxu1  ;;  %v6468_v15 = vld [vmem:[#allocation8 + $0x50] sm:$0xff] }
 0xa03   :  { %v3613_v62 = vmul.f32 -1.442695, %v2222_v50  ;;  %v2223_v17 = vadd.f32 %v2149_v49, %v289_v40  ;;  %v6472_v50 = vld [vmem:[#allocation8 + $0x48] sm:$0xff]  ;;  %v6475_v6 = vld [vmem:[#allocation8 + $0x58] sm:$0xff]  ;;  %v6482_v49 = vld [vmem:[#allocation8 + $0x30] sm:$0xff] }
 0xa04   :  { %v6488_v40 = vld [vmem:[#allocation8 + $0x20] sm:$0xff] }
 0xa05   :  { %4741 = vpow2.f32 %v3613_v62  ;;  %v3614_v19 = vmul.f32 -1.442695, %v2223_v17  ;;  %v6478_v62 = vld [vmem:[#allocation8 + $0x38] sm:$0xff] }
 0xa06   :  { %v6492_v17 = vld [vmem:[#allocation8 + $0x18] sm:$0xff] }
 0xa07   :  { %4743 = vpow2.f32 %v3614_v19  ;;  %7072 = vst [vmem:[#allocation22_spill] sm:$0xff] %v6492_v17  ;;  %v6495_v19 = vld [vmem:[#allocation8 + $0x28] sm:$0xff] }
 0xa08   :  { %7073 = vst [vmem:[#allocation24_spill] sm:$0xff] %v6495_v19 }
 0xa12   :  { %v4742_v21 = vpop.eup %4741 }
 0xa13   :  { %v2230_v23 = vadd.f32 1.0, %v4742_v21  ;;  %v6498_v21 = vld [vmem:[#allocation8 + $0x8] sm:$0xff] }
 0xa14   :  { %v4744_v24 = vpop.eup %4743  ;;  %7074 = vst [vmem:[#allocation30_spill] sm:$0xff] %v6498_v21 }
 0xa15   :  { %4745 = vrcp.f32 %v2230_v23  ;;  %v2231_v26 = vadd.f32 1.0, %v4744_v24  ;;  %v6502_v23 = vld [vmem:[#allocation8] sm:$0xff]  ;;  %v6506_v24 = vld [vmem:[#allocation8 + $0x10] sm:$0xff] }
 0xa16   :  { %7075 = vst [vmem:[#allocation32_spill] sm:$0xff] %v6502_v23  ;;  %7076 = vst [vmem:[#allocation29_spill] sm:$0xff] %v6506_v24 }
 0xa17   :  { %4747 = vrcp.f32 %v2231_v26  ;;  %v7077_v26 = vld [vmem:[#allocation59_spill] sm:$0xff] }
 0xa22   :  { %v4746_v30 = vpop.eup %4745 }
 0xa23   :  { %v2237_v31 = vmul.f32 %v4746_v30, %v2236_v28  ;;  %v293_v28 = vadd.f32 %v7077_v26, %v7065_v2 }
 0xa24   :  { %v4748_v57 = vpop.eup %4747 }
 0xa25   :  { %v2238_v41 = vadd.f32 %v2237_v31, %v7071_v32  ;;  %v2240_v55 = vsub.f32 1.0, %v4748_v57  ;;  %v2242_v22 = vmul.f32 %v4748_v57, %v6268_v38  ;;  %v6455_v38 = vld [vmem:[#allocation8 + $0x88] sm:$0xff] }
 0xa27   :  { %4749 = vtanh.f32 %v2238_v41 }
 0xa34   :  { %v4750_v13 = vpop.eup %4749 }
 0xa35   :  { %v2241_v61 = vmul.f32 %v4750_v13, %v2240_v55  ;;  %v7078_v13 = vld [vmem:[#allocation60_spill] sm:$0xff] }
 0xa37   :  { %v6385_v42 = vadd.f32 %v2242_v22, %v2241_v61  ;;  %v295_v61 = vadd.f32 %v7078_v13, %v5492_v29 }
 0xa39   :  { %2244 = vst [vmem:[#allocation12 + $0x48] sm:$0xff] %v6385_v42  ;;  %2313 = vmatmul.mubr.f32.vlgmr.msra.gmra.mxu1 %v6385_v42  ;;  %4403 = vmatmul.mubr.f32.vlgmr.msra.gmra.mxu0 %v6385_v42 }
 0xa3a   :  { %2416 = vmatpush1.msra.mxu1 %v6273_v56  ;;  %4406 = vmatpush3.msra.mxu0 %v6276_v44 }
 0xa3b   :  { %2417 = vmatprep.subr.mxu1 %v6279_v45  ;;  %4407 = vmatprep.subr.mxu0 %v7003_v1 }
 0xa3c   :  { %2418 = vmatpush1.msra.mxu1 %v6283_v54  ;;  %4408 = vmatpush3.msra.mxu0 %v6286_v3 }
 0xa3d   :  { %2419 = vmatprep.subr.mxu1 %v6289_v4  ;;  %4409 = vmatprep.subr.mxu0 %v7003_v1 }
 0xa3e   :  { %2420 = vmatpush1.msra.mxu1 %v6293_v5  ;;  %4410 = vmatpush3.msra.mxu0 %v6296_v7 }
 0xa3f   :  { %2421 = vmatprep.subr.mxu1 %v6299_v9  ;;  %4411 = vmatprep.subr.mxu0 %v7003_v1 }
 0xa40   :  { %2422 = vmatpush1.msra.mxu1 %v6303_v10  ;;  %4412 = vmatpush3.msra.mxu0 %v6403_v37 }
 0xa41   :  { %2423 = vmatprep.subr.mxu1 %v6307_v12  ;;  %4413 = vmatprep.subr.mxu0 %v7003_v1 }
 0xa42   :  { %2424 = vmatpush1.msra.mxu1 %v6311_v11  ;;  %4414 = vmatpush3.msra.mxu0 %v6409_v60 }
 0xa43   :  { %2425 = vmatprep.subr.mxu1 %v6315_v14  ;;  %4415 = vmatprep.subr.mxu0 %v7003_v1 }
 0xa44   :  { %2426 = vmatpush1.msra.mxu1 %v6319_v18  ;;  %4416 = vmatpush3.msra.mxu0 %v6415_v35 }
 0xa45   :  { %2427 = vmatprep.subr.mxu1 %v6323_v36  ;;  %4417 = vmatprep.subr.mxu0 %v7003_v1 }
 0xa46   :  { %2428 = vmatpush1.msra.mxu1 %v6327_v16  ;;  %4418 = vmatpush3.msra.mxu0 %v6421_v59 }
 0xa47   :  { %2429 = vmatprep.subr.mxu1 %v6331_v34  ;;  %4419 = vmatprep.subr.mxu0 %v7003_v1 }
 0xa48   :  { %2430 = vmatpush1.msra.mxu1 %v6335_v25  ;;  %4420 = vmatpush3.msra.mxu0 %v6427_v46 }
 0xa49   :  { %2431 = vmatprep.subr.mxu1 %v6339_v20  ;;  %4421 = vmatprep.subr.mxu0 %v7003_v1 }
 0xa4a   :  { %2432 = vmatpush1.msra.mxu1 %v6432_v48  ;;  %4422 = vmatpush3.msra.mxu0 %v6435_v33 }
 0xa4b   :  { %2433 = vmatprep.subr.mxu1 %v6438_v47  ;;  %4423 = vmatprep.subr.mxu0 %v7003_v1 }
 0xa4c   :  { %2434 = vmatpush1.msra.mxu1 %v6442_v52  ;;  %4424 = vmatpush3.msra.mxu0 %v6445_v43 }
 0xa4d   :  { %2435 = vmatprep.subr.mxu1 %v6448_v53  ;;  %4425 = vmatprep.subr.mxu0 %v7003_v1 }
 0xa4e   :  { %2436 = vmatpush1.msra.mxu1 %v6452_v58  ;;  %4426 = vmatpush3.msra.mxu0 %v6455_v38 }
 0xa4f   :  { %2437 = vmatprep.subr.mxu1 %v6458_v0  ;;  %4427 = vmatprep.subr.mxu0 %v7003_v1 }
 0xa50   :  { %2438 = vmatpush1.msra.mxu1 %v6462_v8  ;;  %4428 = vmatpush3.msra.mxu0 %v6465_v51 }
 0xa51   :  { %2439 = vmatprep.subr.mxu1 %v6468_v15  ;;  %4429 = vmatprep.subr.mxu0 %v7003_v1 }
 0xa52   :  { %2440 = vmatpush1.msra.mxu1 %v6472_v50  ;;  %4430 = vmatpush3.msra.mxu0 %v6475_v6 }
 0xa53   :  { %2441 = vmatprep.subr.mxu1 %v6478_v62  ;;  %4431 = vmatprep.subr.mxu0 %v7003_v1 }
 0xa54   :  { %2442 = vmatpush1.msra.mxu1 %v6482_v49  ;;  %4432 = vmatpush3.msra.mxu0 %v6485_v27 }
 0xa55   :  { %2443 = vmatprep.subr.mxu1 %v6488_v40  ;;  %4433 = vmatprep.subr.mxu0 %v7003_v1 }
 0xa56   :  { %2444 = vmatpush1.msra.mxu1 %v6492_v17  ;;  %4434 = vmatpush3.msra.mxu0 %v6495_v19 }
 0xa57   :  { %2445 = vmatprep.subr.mxu1 %v6498_v21  ;;  %4435 = vmatprep.subr.mxu0 %v7003_v1 }
 0xa58   :  { %2446 = vmatpush1.msra.mxu1 %v6502_v23  ;;  %2479 = vmatprep.mubr.f32.mxu1 %v7003_v1 }
 0xa59   :  { %4436 = vmatpush3.msra.mxu0 %v6506_v24  ;;  %4437 = vmatprep.mubr.msk.f32.mxu0 %vm5048_vm0, %v7003_v1 }
 0xa5a   :  { %2582 = vmatprep.subr.mxu1 %v6257_v63  ;;  %4440 = vmatprep.subr.mxu0 %v7003_v1 }
 0xaf9   :  { %v2314_v30 = vpop.f32.mrf.mxu1  ;;  %v2385_v31 = vpop.f32.mrf.mxu0 }
 0xafa   :  { %v2389_v32 = vadd.f32 %v2314_v30, %v293_v28  ;;  %v2403_v26 = vadd.f32 %v6103_v39, %v2385_v31  ;;  %v7079_v28 = vld [vmem:[#allocation45_spill] sm:$0xff] }
 0xafb   :  { %v4404_v41 = vpop.f32.mrf.mxu0  ;;  %v2316_v55 = vpop.f32.mrf.mxu1  ;;  %v7088_v31 = vld [vmem:[#allocation61_spill] sm:$0xff] }
 0xafc   :  { %v3615_v57 = vmul.f32 -1.442695, %v2389_v32  ;;  %v2390_v22 = vadd.f32 %v2316_v55, %v295_v61 }
 0xafe   :  { %4751 = vpow2.f32 %v3615_v57  ;;  %v3616_v24 = vmul.f32 -1.442695, %v2390_v22 }
 0xb00   :  { %4753 = vpow2.f32 %v3616_v24 }
 0xb0b   :  { %v4752_v23 = vpop.eup %4751 }
 0xb0c   :  { %v2397_v63 = vadd.f32 1.0, %v4752_v23  ;;  %v7087_v23 = vld [vmem:[#allocation51_spill] sm:$0xff] }
 0xb0d   :  { %v4754_v21 = vpop.eup %4753  ;;  %v299_v61 = vadd.f32 %v7088_v31, %v7087_v23 }
 0xb0e   :  { %4755 = vrcp.f32 %v2397_v63  ;;  %v2398_v19 = vadd.f32 1.0, %v4754_v21  ;;  %v7081_v63 = vld [vmem:[#allocation22_spill] sm:$0xff]  ;;  %v7086_v21 = vld [vmem:[#allocation21_spill] sm:$0xff] }
 0xb10   :  { %4757 = vrcp.f32 %v2398_v19  ;;  %v7085_v19 = vld [vmem:[#allocation29_spill] sm:$0xff] }
 0xb1b   :  { %v4756_v2 = vpop.eup %4755 }
 0xb1c   :  { %v2404_v17 = vmul.f32 %v4756_v2, %v2403_v26  ;;  %v7082_v2 = vld [vmem:[#allocation24_spill] sm:$0xff] }
 0xb1d   :  { %v4758_v32 = vpop.eup %4757 }
 0xb1e   :  { %v2405_v30 = vadd.f32 %v2404_v17, %v7079_v28  ;;  %v2407_v41 = vsub.f32 1.0, %v4758_v32  ;;  %v2409_v55 = vmul.f32 %v4758_v32, %v6385_v42  ;;  %v7083_v42 = vld [vmem:[#allocation30_spill] sm:$0xff]  ;;  %v7084_v17 = vld [vmem:[#allocation32_spill] sm:$0xff] }
 0xb20   :  { %4759 = vtanh.f32 %v2405_v30 }
 0xb2d   :  { %v4760_v13 = vpop.eup %4759 }
 0xb2e   :  { %v2408_v57 = vmul.f32 %v4760_v13, %v2407_v41  ;;  %v7089_v13 = vld [vmem:[#allocation62_spill] sm:$0xff] }
 0xb30   :  { %v6520_v24 = vadd.f32 %v2409_v55, %v2408_v57  ;;  %v301_v57 = vadd.f32 %v7089_v13, %v5492_v29 }
 0xb32   :  { %7080 = vst [vmem:[#allocation34_spill] sm:$0xff] %v6520_v24  ;;  %2411 = vst [vmem:[#allocation12 + $0x50] sm:$0xff] %v6520_v24  ;;  %2480 = vmatmul.mubr.f32.vlgmr.msra.gmra.mxu1 %v6520_v24  ;;  %4438 = vmatmul.mubr.f32.vlgmr.msra.gmra.mxu0 %v6520_v24 }
 0xb33   :  { %2583 = vmatpush1.msra.mxu1 %v6273_v56  ;;  %4441 = vmatpush3.msra.mxu0 %v6276_v44 }
 0xb34   :  { %2584 = vmatprep.subr.mxu1 %v6279_v45  ;;  %4442 = vmatprep.subr.mxu0 %v7003_v1 }
 0xb35   :  { %2585 = vmatpush1.msra.mxu1 %v6283_v54  ;;  %4443 = vmatpush3.msra.mxu0 %v6286_v3 }
 0xb36   :  { %2586 = vmatprep.subr.mxu1 %v6289_v4  ;;  %4444 = vmatprep.subr.mxu0 %v7003_v1 }
 0xb37   :  { %2587 = vmatpush1.msra.mxu1 %v6293_v5  ;;  %4445 = vmatpush3.msra.mxu0 %v6296_v7 }
 0xb38   :  { %2588 = vmatprep.subr.mxu1 %v6299_v9  ;;  %4446 = vmatprep.subr.mxu0 %v7003_v1 }
 0xb39   :  { %2589 = vmatpush1.msra.mxu1 %v6303_v10  ;;  %4447 = vmatpush3.msra.mxu0 %v6403_v37 }
 0xb3a   :  { %2590 = vmatprep.subr.mxu1 %v6307_v12  ;;  %4448 = vmatprep.subr.mxu0 %v7003_v1 }
 0xb3b   :  { %2591 = vmatpush1.msra.mxu1 %v6311_v11  ;;  %4449 = vmatpush3.msra.mxu0 %v6409_v60 }
 0xb3c   :  { %2592 = vmatprep.subr.mxu1 %v6315_v14  ;;  %4450 = vmatprep.subr.mxu0 %v7003_v1 }
 0xb3d   :  { %2593 = vmatpush1.msra.mxu1 %v6319_v18  ;;  %4451 = vmatpush3.msra.mxu0 %v6415_v35 }
 0xb3e   :  { %2594 = vmatprep.subr.mxu1 %v6323_v36  ;;  %4452 = vmatprep.subr.mxu0 %v7003_v1 }
 0xb3f   :  { %2595 = vmatpush1.msra.mxu1 %v6327_v16  ;;  %4453 = vmatpush3.msra.mxu0 %v6421_v59 }
 0xb40   :  { %2596 = vmatprep.subr.mxu1 %v6331_v34  ;;  %4454 = vmatprep.subr.mxu0 %v7003_v1 }
 0xb41   :  { %2597 = vmatpush1.msra.mxu1 %v6335_v25  ;;  %4455 = vmatpush3.msra.mxu0 %v6427_v46 }
 0xb42   :  { %2598 = vmatprep.subr.mxu1 %v6339_v20  ;;  %4456 = vmatprep.subr.mxu0 %v7003_v1 }
 0xb43   :  { %2599 = vmatpush1.msra.mxu1 %v6432_v48  ;;  %4457 = vmatpush3.msra.mxu0 %v6435_v33 }
 0xb44   :  { %2600 = vmatprep.subr.mxu1 %v6438_v47  ;;  %4458 = vmatprep.subr.mxu0 %v7003_v1 }
 0xb45   :  { %2601 = vmatpush1.msra.mxu1 %v6442_v52  ;;  %4459 = vmatpush3.msra.mxu0 %v6445_v43 }
 0xb46   :  { %2602 = vmatprep.subr.mxu1 %v6448_v53  ;;  %4460 = vmatprep.subr.mxu0 %v7003_v1 }
 0xb47   :  { %2603 = vmatpush1.msra.mxu1 %v6452_v58  ;;  %4461 = vmatpush3.msra.mxu0 %v6455_v38 }
 0xb48   :  { %2604 = vmatprep.subr.mxu1 %v6458_v0  ;;  %4462 = vmatprep.subr.mxu0 %v7003_v1 }
 0xb49   :  { %2605 = vmatpush1.msra.mxu1 %v6462_v8  ;;  %4463 = vmatpush3.msra.mxu0 %v6465_v51 }
 0xb4a   :  { %2606 = vmatprep.subr.mxu1 %v6468_v15  ;;  %4464 = vmatprep.subr.mxu0 %v7003_v1 }
 0xb4b   :  { %2607 = vmatpush1.msra.mxu1 %v6472_v50  ;;  %4465 = vmatpush3.msra.mxu0 %v6475_v6 }
 0xb4c   :  { %2608 = vmatprep.subr.mxu1 %v6478_v62  ;;  %4466 = vmatprep.subr.mxu0 %v7003_v1 }
 0xb4d   :  { %2609 = vmatpush1.msra.mxu1 %v6482_v49  ;;  %4467 = vmatpush3.msra.mxu0 %v6485_v27 }
 0xb4e   :  { %2610 = vmatprep.subr.mxu1 %v6488_v40  ;;  %4468 = vmatprep.subr.mxu0 %v7003_v1 }
 0xb4f   :  { %2611 = vmatpush1.msra.mxu1 %v7081_v63  ;;  %4469 = vmatpush3.msra.mxu0 %v7082_v2 }
 0xb50   :  { %2612 = vmatprep.subr.mxu1 %v7083_v42  ;;  %4470 = vmatprep.subr.mxu0 %v7003_v1 }
 0xb51   :  { %2613 = vmatpush1.msra.mxu1 %v7084_v17  ;;  %2646 = vmatprep.mubr.f32.mxu1 %v7003_v1 }
 0xb52   :  { %4471 = vmatpush3.msra.mxu0 %v7085_v19  ;;  %4472 = vmatprep.mubr.msk.f32.mxu0 %vm5048_vm0, %v7003_v1 }
 0xb53   :  { %2749 = vmatprep.subr.mxu1 %v7086_v21  ;;  %4475 = vmatprep.subr.mxu0 %v7003_v1 }
 0xbf2   :  { %v2481_v22 = vpop.f32.mrf.mxu1  ;;  %v2552_v26 = vpop.f32.mrf.mxu0 }
 0xbf3   :  { %v2556_v28 = vadd.f32 %v2481_v22, %v299_v61  ;;  %v2570_v31 = vadd.f32 %v6103_v39, %v2552_v26  ;;  %v7090_v61 = vld [vmem:[#allocation43_spill] sm:$0xff]  ;;  %v7092_v39 = vld [vmem:[#allocation22_spill] sm:$0xff] }
 0xbf4   :  { %v4439_v30 = vpop.f32.mrf.mxu0  ;;  %v2483_v41 = vpop.f32.mrf.mxu1  ;;  %v7099_v26 = vld [vmem:[#allocation63_spill] sm:$0xff] }
 0xbf5   :  { %v3617_v32 = vmul.f32 -1.442695, %v2556_v28  ;;  %v2557_v55 = vadd.f32 %v2483_v41, %v301_v57 }
 0xbf7   :  { %4761 = vpow2.f32 %v3617_v32  ;;  %v3618_v19 = vmul.f32 -1.442695, %v2557_v55 }
 0xbf9   :  { %4763 = vpow2.f32 %v3618_v19 }
 0xc04   :  { %v4762_v17 = vpop.eup %4761 }
 0xc05   :  { %v2564_v21 = vadd.f32 1.0, %v4762_v17  ;;  %v7096_v17 = vld [vmem:[#allocation29_spill] sm:$0xff] }
 0xc06   :  { %v4764_v42 = vpop.eup %4763 }
 0xc07   :  { %4765 = vrcp.f32 %v2564_v21  ;;  %v2565_v2 = vadd.f32 1.0, %v4764_v42  ;;  %v7095_v42 = vld [vmem:[#allocation32_spill] sm:$0xff]  ;;  %v7097_v21 = vld [vmem:[#allocation21_spill] sm:$0xff] }
 0xc09   :  { %4767 = vrcp.f32 %v2565_v2  ;;  %v7094_v2 = vld [vmem:[#allocation30_spill] sm:$0xff] }
 0xc14   :  { %v4766_v23 = vpop.eup %4765 }
 0xc15   :  { %v2571_v63 = vmul.f32 %v4766_v23, %v2570_v31  ;;  %v7098_v23 = vld [vmem:[#allocation51_spill] sm:$0xff] }
 0xc16   :  { %v4768_v28 = vpop.eup %4767  ;;  %v305_v57 = vadd.f32 %v7099_v26, %v7098_v23  ;;  %v6678_v26 = vld [vmem:[%s6897_s4] ss:$0 sm:$0xff] }
 0xc17   :  { %v2572_v22 = vadd.f32 %v2571_v63, %v7090_v61  ;;  %v2574_v30 = vsub.f32 1.0, %v4768_v28  ;;  %v2576_v41 = vmul.f32 %v4768_v28, %v6520_v24  ;;  %v7093_v63 = vld [vmem:[#allocation24_spill] sm:$0xff] }
 0xc19   :  { %4769 = vtanh.f32 %v2572_v22 }
 0xc26   :  { %v4770_v13 = vpop.eup %4769 }
 0xc27   :  { %v2575_v32 = vmul.f32 %v4770_v13, %v2574_v30  ;;  %v7100_v13 = vld [vmem:[#allocation64_spill] sm:$0xff] }
 0xc29   :  { %v6599_v19 = vadd.f32 %v2576_v41, %v2575_v32  ;;  %v307_v32 = vadd.f32 %v7100_v13, %v5492_v29 }
 0xc2b   :  { %7091 = vst [vmem:[#allocation36_spill] sm:$0xff] %v6599_v19  ;;  %2578 = vst [vmem:[#allocation12 + $0x58] sm:$0xff] %v6599_v19  ;;  %2647 = vmatmul.mubr.f32.vlgmr.msra.gmra.mxu1 %v6599_v19  ;;  %4473 = vmatmul.mubr.f32.vlgmr.msra.gmra.mxu0 %v6599_v19 }
 0xc2c   :  { %2750 = vmatpush1.msra.mxu1 %v6273_v56  ;;  %4476 = vmatpush3.msra.mxu0 %v6276_v44 }
 0xc2d   :  { %2751 = vmatprep.subr.mxu1 %v6279_v45  ;;  %4477 = vmatprep.subr.mxu0 %v7003_v1 }
 0xc2e   :  { %2752 = vmatpush1.msra.mxu1 %v6283_v54  ;;  %4478 = vmatpush3.msra.mxu0 %v6286_v3 }
 0xc2f   :  { %2753 = vmatprep.subr.mxu1 %v6289_v4  ;;  %4479 = vmatprep.subr.mxu0 %v7003_v1 }
 0xc30   :  { %2754 = vmatpush1.msra.mxu1 %v6293_v5  ;;  %4480 = vmatpush3.msra.mxu0 %v6296_v7 }
 0xc31   :  { %2755 = vmatprep.subr.mxu1 %v6299_v9  ;;  %4481 = vmatprep.subr.mxu0 %v7003_v1 }
 0xc32   :  { %2756 = vmatpush1.msra.mxu1 %v6303_v10  ;;  %4482 = vmatpush3.msra.mxu0 %v6403_v37 }
 0xc33   :  { %2757 = vmatprep.subr.mxu1 %v6307_v12  ;;  %4483 = vmatprep.subr.mxu0 %v7003_v1 }
 0xc34   :  { %2758 = vmatpush1.msra.mxu1 %v6311_v11  ;;  %4484 = vmatpush3.msra.mxu0 %v6409_v60 }
 0xc35   :  { %2759 = vmatprep.subr.mxu1 %v6315_v14  ;;  %4485 = vmatprep.subr.mxu0 %v7003_v1 }
 0xc36   :  { %2760 = vmatpush1.msra.mxu1 %v6319_v18  ;;  %4486 = vmatpush3.msra.mxu0 %v6415_v35 }
 0xc37   :  { %2761 = vmatprep.subr.mxu1 %v6323_v36  ;;  %4487 = vmatprep.subr.mxu0 %v7003_v1 }
 0xc38   :  { %2762 = vmatpush1.msra.mxu1 %v6327_v16  ;;  %4488 = vmatpush3.msra.mxu0 %v6421_v59 }
 0xc39   :  { %2763 = vmatprep.subr.mxu1 %v6331_v34  ;;  %4489 = vmatprep.subr.mxu0 %v7003_v1 }
 0xc3a   :  { %2764 = vmatpush1.msra.mxu1 %v6335_v25  ;;  %4490 = vmatpush3.msra.mxu0 %v6427_v46 }
 0xc3b   :  { %2765 = vmatprep.subr.mxu1 %v6339_v20  ;;  %4491 = vmatprep.subr.mxu0 %v7003_v1 }
 0xc3c   :  { %2766 = vmatpush1.msra.mxu1 %v6432_v48  ;;  %4492 = vmatpush3.msra.mxu0 %v6435_v33 }
 0xc3d   :  { %2767 = vmatprep.subr.mxu1 %v6438_v47  ;;  %4493 = vmatprep.subr.mxu0 %v7003_v1 }
 0xc3e   :  { %2768 = vmatpush1.msra.mxu1 %v6442_v52  ;;  %4494 = vmatpush3.msra.mxu0 %v6445_v43 }
 0xc3f   :  { %2769 = vmatprep.subr.mxu1 %v6448_v53  ;;  %4495 = vmatprep.subr.mxu0 %v7003_v1 }
 0xc40   :  { %2770 = vmatpush1.msra.mxu1 %v6452_v58  ;;  %4496 = vmatpush3.msra.mxu0 %v6455_v38 }
 0xc41   :  { %2771 = vmatprep.subr.mxu1 %v6458_v0  ;;  %4497 = vmatprep.subr.mxu0 %v7003_v1 }
 0xc42   :  { %2772 = vmatpush1.msra.mxu1 %v6462_v8  ;;  %4498 = vmatpush3.msra.mxu0 %v6465_v51 }
 0xc43   :  { %2773 = vmatprep.subr.mxu1 %v6468_v15  ;;  %4499 = vmatprep.subr.mxu0 %v7003_v1 }
 0xc44   :  { %2774 = vmatpush1.msra.mxu1 %v6472_v50  ;;  %4500 = vmatpush3.msra.mxu0 %v6475_v6 }
 0xc45   :  { %2775 = vmatprep.subr.mxu1 %v6478_v62  ;;  %4501 = vmatprep.subr.mxu0 %v7003_v1 }
 0xc46   :  { %2776 = vmatpush1.msra.mxu1 %v6482_v49  ;;  %4502 = vmatpush3.msra.mxu0 %v6485_v27 }
 0xc47   :  { %2777 = vmatprep.subr.mxu1 %v6488_v40  ;;  %4503 = vmatprep.subr.mxu0 %v7003_v1 }
 0xc48   :  { %2778 = vmatpush1.msra.mxu1 %v7092_v39  ;;  %4504 = vmatpush3.msra.mxu0 %v7093_v63 }
 0xc49   :  { %2779 = vmatprep.subr.mxu1 %v7094_v2  ;;  %4505 = vmatprep.subr.mxu0 %v7003_v1 }
 0xc4a   :  { %2780 = vmatpush1.msra.mxu1 %v7095_v42  ;;  %2813 = vmatprep.mubr.f32.mxu1 %v7003_v1 }
 0xc4b   :  { %4506 = vmatpush3.msra.mxu0 %v7096_v17  ;;  %4507 = vmatprep.mubr.msk.f32.mxu0 %vm5048_vm0, %v7003_v1 }
 0xc4c   :  { %2916 = vmatprep.subr.mxu1 %v7097_v21  ;;  %4510 = vmatprep.subr.mxu0 %v7003_v1 }
 0xceb   :  { %v2648_v55 = vpop.f32.mrf.mxu1  ;;  %v2719_v31 = vpop.f32.mrf.mxu0 }
 0xcec   :  { %v2723_v61 = vadd.f32 %v2648_v55, %v305_v57  ;;  %v2737_v57 = vadd.f32 %v6678_v26, %v2719_v31  ;;  %v7103_v31 = vld [vmem:[#allocation32_spill] sm:$0xff] }
 0xced   :  { %v4474_v22 = vpop.f32.mrf.mxu0  ;;  %v2650_v30 = vpop.f32.mrf.mxu1 }
 0xcee   :  { %v3619_v28 = vmul.f32 -1.442695, %v2723_v61  ;;  %v2724_v41 = vadd.f32 %v2650_v30, %v307_v32  ;;  %v7101_v22 = vld [vmem:[#allocation49_spill] sm:$0xff] }
 0xcef   :  { %v7104_v32 = vld [vmem:[#allocation29_spill] sm:$0xff] }
 0xcf0   :  { %4771 = vpow2.f32 %v3619_v28  ;;  %v3620_v24 = vmul.f32 -1.442695, %v2724_v41  ;;  %v7105_v41 = vld [vmem:[#allocation21_spill] sm:$0xff] }
 0xcf2   :  { %4773 = vpow2.f32 %v3620_v24 }
 0xcfd   :  { %v4772_v17 = vpop.eup %4771 }
 0xcfe   :  { %v2731_v21 = vadd.f32 1.0, %v4772_v17 }
 0xcff   :  { %v4774_v42 = vpop.eup %4773 }
 0xd00   :  { %4775 = vrcp.f32 %v2731_v21  ;;  %v2732_v2 = vadd.f32 1.0, %v4774_v42 }
 0xd02   :  { %4777 = vrcp.f32 %v2732_v2  ;;  %v7102_v2 = vld [vmem:[#allocation30_spill] sm:$0xff] }
 0xd0d   :  { %v4776_v55 = vpop.eup %4775 }
 0xd0e   :  { %v2738_v61 = vmul.f32 %v4776_v55, %v2737_v57  ;;  %v7106_v57 = vld [vmem:[#allocation65_spill] sm:$0xff] }
 0xd0f   :  { %v4778_v30 = vpop.eup %4777  ;;  %v311_v55 = vadd.f32 %v7106_v57, %v7098_v23 }
 0xd10   :  { %v2739_v28 = vadd.f32 %v2738_v61, %v7101_v22  ;;  %v2741_v24 = vsub.f32 1.0, %v4778_v30  ;;  %v2743_v21 = vmul.f32 %v4778_v30, %v6599_v19 }
 0xd12   :  { %4779 = vtanh.f32 %v2739_v28 }
 0xd1f   :  { %v4780_v13 = vpop.eup %4779 }
 0xd20   :  { %v2742_v17 = vmul.f32 %v4780_v13, %v2741_v24 }
 0xd22   :  { %v6683_v42 = vadd.f32 %v2743_v21, %v2742_v17  ;;  %v7107_v17 = vld [vmem:[#allocation66_spill] sm:$0xff] }
 0xd23   :  { %v313_v21 = vadd.f32 %v7107_v17, %v5492_v29 }
 0xd24   :  { %2745 = vst [vmem:[#allocation12 + $0x60] sm:$0xff] %v6683_v42  ;;  %2814 = vmatmul.mubr.f32.vlgmr.msra.gmra.mxu1 %v6683_v42  ;;  %4508 = vmatmul.mubr.f32.vlgmr.msra.gmra.mxu0 %v6683_v42 }
 0xd25   :  { %2917 = vmatpush1.msra.mxu1 %v6273_v56  ;;  %4511 = vmatpush3.msra.mxu0 %v6276_v44 }
 0xd26   :  { %2918 = vmatprep.subr.mxu1 %v6279_v45  ;;  %4512 = vmatprep.subr.mxu0 %v7003_v1 }
 0xd27   :  { %2919 = vmatpush1.msra.mxu1 %v6283_v54  ;;  %4513 = vmatpush3.msra.mxu0 %v6286_v3 }
 0xd28   :  { %2920 = vmatprep.subr.mxu1 %v6289_v4  ;;  %4514 = vmatprep.subr.mxu0 %v7003_v1 }
 0xd29   :  { %2921 = vmatpush1.msra.mxu1 %v6293_v5  ;;  %4515 = vmatpush3.msra.mxu0 %v6296_v7 }
 0xd2a   :  { %2922 = vmatprep.subr.mxu1 %v6299_v9  ;;  %4516 = vmatprep.subr.mxu0 %v7003_v1 }
 0xd2b   :  { %2923 = vmatpush1.msra.mxu1 %v6303_v10  ;;  %4517 = vmatpush3.msra.mxu0 %v6403_v37 }
 0xd2c   :  { %2924 = vmatprep.subr.mxu1 %v6307_v12  ;;  %4518 = vmatprep.subr.mxu0 %v7003_v1 }
 0xd2d   :  { %2925 = vmatpush1.msra.mxu1 %v6311_v11  ;;  %4519 = vmatpush3.msra.mxu0 %v6409_v60 }
 0xd2e   :  { %2926 = vmatprep.subr.mxu1 %v6315_v14  ;;  %4520 = vmatprep.subr.mxu0 %v7003_v1 }
 0xd2f   :  { %2927 = vmatpush1.msra.mxu1 %v6319_v18  ;;  %4521 = vmatpush3.msra.mxu0 %v6415_v35 }
 0xd30   :  { %2928 = vmatprep.subr.mxu1 %v6323_v36  ;;  %4522 = vmatprep.subr.mxu0 %v7003_v1 }
 0xd31   :  { %2929 = vmatpush1.msra.mxu1 %v6327_v16  ;;  %4523 = vmatpush3.msra.mxu0 %v6421_v59 }
 0xd32   :  { %2930 = vmatprep.subr.mxu1 %v6331_v34  ;;  %4524 = vmatprep.subr.mxu0 %v7003_v1 }
 0xd33   :  { %2931 = vmatpush1.msra.mxu1 %v6335_v25  ;;  %4525 = vmatpush3.msra.mxu0 %v6427_v46 }
 0xd34   :  { %2932 = vmatprep.subr.mxu1 %v6339_v20  ;;  %4526 = vmatprep.subr.mxu0 %v7003_v1 }
 0xd35   :  { %2933 = vmatpush1.msra.mxu1 %v6432_v48  ;;  %4527 = vmatpush3.msra.mxu0 %v6435_v33 }
 0xd36   :  { %2934 = vmatprep.subr.mxu1 %v6438_v47  ;;  %4528 = vmatprep.subr.mxu0 %v7003_v1 }
 0xd37   :  { %2935 = vmatpush1.msra.mxu1 %v6442_v52  ;;  %4529 = vmatpush3.msra.mxu0 %v6445_v43 }
 0xd38   :  { %2936 = vmatprep.subr.mxu1 %v6448_v53  ;;  %4530 = vmatprep.subr.mxu0 %v7003_v1 }
 0xd39   :  { %2937 = vmatpush1.msra.mxu1 %v6452_v58  ;;  %4531 = vmatpush3.msra.mxu0 %v6455_v38 }
 0xd3a   :  { %2938 = vmatprep.subr.mxu1 %v6458_v0  ;;  %4532 = vmatprep.subr.mxu0 %v7003_v1 }
 0xd3b   :  { %2939 = vmatpush1.msra.mxu1 %v6462_v8  ;;  %4533 = vmatpush3.msra.mxu0 %v6465_v51 }
 0xd3c   :  { %2940 = vmatprep.subr.mxu1 %v6468_v15  ;;  %4534 = vmatprep.subr.mxu0 %v7003_v1 }
 0xd3d   :  { %2941 = vmatpush1.msra.mxu1 %v6472_v50  ;;  %4535 = vmatpush3.msra.mxu0 %v6475_v6 }
 0xd3e   :  { %2942 = vmatprep.subr.mxu1 %v6478_v62  ;;  %4536 = vmatprep.subr.mxu0 %v7003_v1 }
 0xd3f   :  { %2943 = vmatpush1.msra.mxu1 %v6482_v49  ;;  %4537 = vmatpush3.msra.mxu0 %v6485_v27 }
 0xd40   :  { %2944 = vmatprep.subr.mxu1 %v6488_v40  ;;  %4538 = vmatprep.subr.mxu0 %v7003_v1 }
 0xd41   :  { %2945 = vmatpush1.msra.mxu1 %v7092_v39  ;;  %4539 = vmatpush3.msra.mxu0 %v7093_v63 }
 0xd42   :  { %2946 = vmatprep.subr.mxu1 %v7102_v2  ;;  %4540 = vmatprep.subr.mxu0 %v7003_v1 }
 0xd43   :  { %2947 = vmatpush1.msra.mxu1 %v7103_v31  ;;  %2980 = vmatprep.mubr.f32.mxu1 %v7003_v1 }
 0xd44   :  { %4541 = vmatpush3.msra.mxu0 %v7104_v32  ;;  %4542 = vmatprep.mubr.msk.f32.mxu0 %vm5048_vm0, %v7003_v1 }
 0xd45   :  { %3083 = vmatprep.subr.mxu1 %v7105_v41  ;;  %4545 = vmatprep.subr.mxu0 %v7003_v1 }
 0xde4   :  { %v2815_v61 = vpop.f32.mrf.mxu1  ;;  %v2886_v22 = vpop.f32.mrf.mxu0 }
 0xde5   :  { %v2890_v28 = vadd.f32 %v2815_v61, %v311_v55  ;;  %v2904_v57 = vadd.f32 %v6678_v26, %v2886_v22  ;;  %v7108_v55 = vld [vmem:[#allocation47_spill] sm:$0xff] }
 0xde6   :  { %v4509_v30 = vpop.f32.mrf.mxu0  ;;  %v2817_v13 = vpop.f32.mrf.mxu1 }
 0xde7   :  { %v3621_v24 = vmul.f32 -1.442695, %v2890_v28  ;;  %v2891_v19 = vadd.f32 %v2817_v13, %v313_v21  ;;  %v3277_v13 = vld [vmem:[#allocation9 + $0x70] sm:$0xff]  ;;  %v3247_v21 = vld [vmem:[#allocation12] sm:$0xff] }
 0xde9   :  { %4781 = vpow2.f32 %v3621_v24  ;;  %v3622_v32 = vmul.f32 -1.442695, %v2891_v19 }
 0xdeb   :  { %4783 = vpow2.f32 %v3622_v32 }
 0xdf6   :  { %v4782_v31 = vpop.eup %4781 }
 0xdf7   :  { %v2898_v41 = vadd.f32 1.0, %v4782_v31 }
 0xdf8   :  { %v4784_v2 = vpop.eup %4783 }
 0xdf9   :  { %4785 = vrcp.f32 %v2898_v41  ;;  %v2899_v63 = vadd.f32 1.0, %v4784_v2  ;;  %v3276_v41 = vld [vmem:[#allocation9 + $0x68] sm:$0xff] }
 0xdfb   :  { %4787 = vrcp.f32 %v2899_v63 }
 0xe06   :  { %v4786_v23 = vpop.eup %4785 }
 0xe07   :  { %v2905_v39 = vmul.f32 %v4786_v23, %v2904_v57  ;;  %v3275_v57 = vld [vmem:[#allocation9 + $0x60] sm:$0xff] }
 0xe08   :  { %v4788_v28 = vpop.eup %4787 }
 0xe09   :  { %v2906_v61 = vadd.f32 %v2905_v39, %v7108_v55  ;;  %v2908_v30 = vsub.f32 1.0, %v4788_v28  ;;  %v2910_v19 = vmul.f32 %v4788_v28, %v6683_v42  ;;  %v3274_v55 = vld [vmem:[#allocation9 + $0x58] sm:$0xff]  ;;  %v3272_v28 = vld [vmem:[#allocation9 + $0x48] sm:$0xff] }
 0xe0b   :  { %4789 = vtanh.f32 %v2906_v61  ;;  %v3273_v61 = vld [vmem:[#allocation9 + $0x50] sm:$0xff] }
 0xe18   :  { %v4790_v17 = vpop.eup %4789 }
 0xe19   :  { %v2909_v24 = vmul.f32 %v4790_v17, %v2908_v30  ;;  %v3271_v30 = vld [vmem:[#allocation9 + $0x40] sm:$0xff]  ;;  %v3270_v17 = vld [vmem:[#allocation9 + $0x38] sm:$0xff] }
 0xe1b   :  { %v6762_v32 = vadd.f32 %v2910_v19, %v2909_v24  ;;  %v3269_v24 = vld [vmem:[#allocation9 + $0x30] sm:$0xff]  ;;  %v3268_v19 = vld [vmem:[#allocation9 + $0x28] sm:$0xff] }
 0xe1d   :  { %2912 = vst [vmem:[#allocation12 + $0x68] sm:$0xff] %v6762_v32  ;;  %2981 = vmatmul.mubr.f32.vlgmr.msra.gmra.mxu1 %v6762_v32  ;;  %4543 = vmatmul.mubr.f32.vlgmr.msra.gmra.mxu0 %v6762_v32 }
 0xe1e   :  { %3084 = vmatpush1.msra.mxu1 %v6273_v56  ;;  %4546 = vmatpush3.msra.mxu0 %v6276_v44  ;;  %v7109_v56 = vld [vmem:[#allocation22_spill] sm:$0xff]  ;;  %v7110_v44 = vld [vmem:[#allocation24_spill] sm:$0xff] }
 0xe1f   :  { %3085 = vmatprep.subr.mxu1 %v6279_v45  ;;  %4547 = vmatprep.subr.mxu0 %v7003_v1  ;;  %v7111_v45 = vld [vmem:[#allocation30_spill] sm:$0xff] }
 0xe20   :  { %3086 = vmatpush1.msra.mxu1 %v6283_v54  ;;  %4548 = vmatpush3.msra.mxu0 %v6286_v3  ;;  %v7112_v54 = vld [vmem:[#allocation32_spill] sm:$0xff]  ;;  %v7113_v3 = vld [vmem:[#allocation29_spill] sm:$0xff] }
 0xe21   :  { %3087 = vmatprep.subr.mxu1 %v6289_v4  ;;  %4549 = vmatprep.subr.mxu0 %v7003_v1  ;;  %v6832_v4 = vld [vmem:[#allocation9 + $0x78] sm:$0xff] }
 0xe22   :  { %3088 = vmatpush1.msra.mxu1 %v6293_v5  ;;  %4550 = vmatpush3.msra.mxu0 %v6296_v7  ;;  %v3431_v5 = vld [vmem:[#allocation3] sm:$0xff]  ;;  %v3433_v7 = vld [vmem:[#allocation3 + $0x10] sm:$0xff] }
 0xe23   :  { %3089 = vmatprep.subr.mxu1 %v6299_v9  ;;  %4551 = vmatprep.subr.mxu0 %v7003_v1  ;;  %v5049_v9 = vmov 0  }
 0xe24   :  { %3090 = vmatpush1.msra.mxu1 %v6303_v10  ;;  %4552 = vmatpush3.msra.mxu0 %v6403_v37  ;;  %v3432_v10 = vld [vmem:[#allocation3 + $0x8] sm:$0xff] }
 0xe25   :  { %3091 = vmatprep.subr.mxu1 %v6307_v12  ;;  %4553 = vmatprep.subr.mxu0 %v7003_v1  ;;  %v3434_v12 = vld [vmem:[#allocation3 + $0x18] sm:$0xff] }
 0xe26   :  { %3092 = vmatpush1.msra.mxu1 %v6311_v11  ;;  %4554 = vmatpush3.msra.mxu0 %v6409_v60  ;;  %v3436_v11 = vld [vmem:[#allocation3 + $0x28] sm:$0xff] }
 0xe27   :  { %3093 = vmatprep.subr.mxu1 %v6315_v14  ;;  %4555 = vmatprep.subr.mxu0 %v7003_v1  ;;  %v3435_v14 = vld [vmem:[#allocation3 + $0x20] sm:$0xff]  ;;  %v3440_v60 = vld [vmem:[#allocation3 + $0x48] sm:$0xff] }
 0xe28   :  { %3094 = vmatpush1.msra.mxu1 %v6319_v18  ;;  %4556 = vmatpush3.msra.mxu0 %v6415_v35  ;;  %v3437_v18 = vld [vmem:[#allocation3 + $0x30] sm:$0xff]  ;;  %v3439_v35 = vld [vmem:[#allocation3 + $0x40] sm:$0xff] }
 0xe29   :  { %3095 = vmatprep.subr.mxu1 %v6323_v36  ;;  %4557 = vmatprep.subr.mxu0 %v7003_v1  ;;  %v7114_v36 = vld [vmem:[#allocation51_spill] sm:$0xff] }
 0xe2a   :  { %3096 = vmatpush1.msra.mxu1 %v6327_v16  ;;  %4558 = vmatpush3.msra.mxu0 %v6421_v59  ;;  %v7115_v16 = vld [vmem:[#allocation67_spill] sm:$0xff] }
 0xe2b   :  { %3097 = vmatprep.subr.mxu1 %v6331_v34  ;;  %4559 = vmatprep.subr.mxu0 %v7003_v1  ;;  %v317_v34 = vadd.f32 %v7115_v16, %v7114_v36  ;;  %v7119_v16 = vld [vmem:[#allocation36_spill] sm:$0xff] }
 0xe2c   :  { %3098 = vmatpush1.msra.mxu1 %v6335_v25  ;;  %4560 = vmatpush3.msra.mxu0 %v6427_v46 }
 0xe2d   :  { %3099 = vmatprep.subr.mxu1 %v6339_v20  ;;  %4561 = vmatprep.subr.mxu0 %v7003_v1 }
 0xe2e   :  { %3100 = vmatpush1.msra.mxu1 %v6432_v48  ;;  %4562 = vmatpush3.msra.mxu0 %v6435_v33  ;;  %v7116_v33 = vld [vmem:[#allocation68_spill] sm:$0xff] }
 0xe2f   :  { %3101 = vmatprep.subr.mxu1 %v6438_v47  ;;  %4563 = vmatprep.subr.mxu0 %v7003_v1  ;;  %v319_v47 = vadd.f32 %v7116_v33, %v5492_v29 }
 0xe30   :  { %3102 = vmatpush1.msra.mxu1 %v6442_v52  ;;  %4564 = vmatpush3.msra.mxu0 %v6445_v43  ;;  %v3442_v52 = vld [vmem:[#allocation3 + $0x58] sm:$0xff]  ;;  %v3441_v43 = vld [vmem:[#allocation3 + $0x50] sm:$0xff] }
 0xe31   :  { %3103 = vmatprep.subr.mxu1 %v6448_v53  ;;  %4565 = vmatprep.subr.mxu0 %v7003_v1 }
 0xe32   :  { %3104 = vmatpush1.msra.mxu1 %v6452_v58  ;;  %4566 = vmatpush3.msra.mxu0 %v6455_v38  ;;  %v3444_v58 = vld [vmem:[#allocation3 + $0x68] sm:$0xff]  ;;  %v3443_v38 = vld [vmem:[#allocation3 + $0x60] sm:$0xff] }
 0xe33   :  { %3105 = vmatprep.subr.mxu1 %v6458_v0  ;;  %4567 = vmatprep.subr.mxu0 %v7003_v1 }
 0xe34   :  { %3106 = vmatpush1.msra.mxu1 %v6462_v8  ;;  %4568 = vmatpush3.msra.mxu0 %v6465_v51 }
 0xe35   :  { %3107 = vmatprep.subr.mxu1 %v6468_v15  ;;  %4569 = vmatprep.subr.mxu0 %v7003_v1 }
 0xe36   :  { %3108 = vmatpush1.msra.mxu1 %v6472_v50  ;;  %4570 = vmatpush3.msra.mxu0 %v6475_v6 }
 0xe37   :  { %3109 = vmatprep.subr.mxu1 %v6478_v62  ;;  %4571 = vmatprep.subr.mxu0 %v7003_v1 }
 0xe38   :  { %3110 = vmatpush1.msra.mxu1 %v6482_v49  ;;  %4572 = vmatpush3.msra.mxu0 %v6485_v27  ;;  %v7117_v27 = vld [vmem:[#allocation54_spill] sm:$0xff] }
 0xe39   :  { %3111 = vmatprep.subr.mxu1 %v6488_v40  ;;  %4573 = vmatprep.subr.mxu0 %v7003_v1 }
 0xe3a   :  { %3112 = vmatpush1.msra.mxu1 %v7109_v56  ;;  %4574 = vmatpush3.msra.mxu0 %v7110_v44  ;;  %v3267_v56 = vld [vmem:[#allocation9 + $0x20] sm:$0xff]  ;;  %v3266_v44 = vld [vmem:[#allocation9 + $0x18] sm:$0xff] }
 0xe3b   :  { %3113 = vmatprep.subr.mxu1 %v7111_v45  ;;  %4575 = vmatprep.subr.mxu0 %v7003_v1  ;;  %v3265_v45 = vld [vmem:[#allocation9 + $0x10] sm:$0xff] }
 0xe3c   :  { %3114 = vmatpush1.msra.mxu1 %v7112_v54  ;;  %3147 = vmatprep.mubr.f32.mxu1 %v7003_v1  ;;  %v3264_v54 = vld [vmem:[#allocation9 + $0x8] sm:$0xff] }
 0xe3d   :  { %4576 = vmatpush3.msra.mxu0 %v7113_v3  ;;  %4577 = vmatprep.mubr.msk.f32.mxu0 %vm5048_vm0, %v7003_v1  ;;  %v3438_v1 = vld [vmem:[#allocation3 + $0x38] sm:$0xff]  ;;  %v3263_v3 = vld [vmem:[#allocation9] sm:$0xff] }
 0xe3e   :  { %4580 = vmatprep.subr.mxu1 %v6832_v4  ;;  %4649 = vset.pattern.permute.xlu0 %v5049_v9 }
 0xe3f   :  { %4650 = vset.pattern.permute.xlu1 %v5049_v9  ;;  %3449 = vperm.xlu0 %4649, %v3431_v5   ;;  %v3249_v5 = vld [vmem:[#allocation12 + $0x10] sm:$0xff]  ;;  %v3251_v9 = vld [vmem:[#allocation12 + $0x20] sm:$0xff] }
 0xe40   :  { %3459 = vperm.xlu1 %4650, %v3433_v7   ;;  %v3250_v7 = vld [vmem:[#allocation12 + $0x18] sm:$0xff] }
 0xe43   :  { %3454 = vperm.xlu0 %4649, %v3432_v10   ;;  %v3252_v10 = vld [vmem:[#allocation12 + $0x28] sm:$0xff] }
 0xe44   :  { %3464 = vperm.xlu1 %4650, %v3434_v12   ;;  %v3253_v12 = vld [vmem:[#allocation12 + $0x30] sm:$0xff] }
 0xe47   :  { %3469 = vperm.xlu0 %4649, %v3435_v14   ;;  %v3255_v14 = vld [vmem:[#allocation12 + $0x40] sm:$0xff] }
 0xe48   :  { %3474 = vperm.xlu1 %4650, %v3436_v11   ;;  %v3254_v11 = vld [vmem:[#allocation12 + $0x38] sm:$0xff] }
 0xe4b   :  { %3479 = vperm.xlu0 %4649, %v3437_v18   ;;  %v7118_v18 = vld [vmem:[#allocation34_spill] sm:$0xff] }
 0xe4c   :  { %3484 = vperm.xlu1 %4650, %v3438_v1   ;;  %v3256_v1 = vld [vmem:[#allocation12 + $0x48] sm:$0xff] }
 0xe4f   :  { %3489 = vperm.xlu0 %4649, %v3439_v35  }
 0xe50   :  { %3494 = vperm.xlu1 %4650, %v3440_v60  }
 0xe53   :  { %3499 = vperm.xlu0 %4649, %v3441_v43  }
 0xe54   :  { %3504 = vperm.xlu1 %4650, %v3442_v52  }
 0xe57   :  { %3509 = vperm.xlu0 %4649, %v3443_v38  }
 0xe58   :  { %3514 = vperm.xlu1 %4650, %v3444_v58  }
 0xeba   :  { %v3450_v38 = vpop.permute.xlu0 %3449 }
 0xebb   :  { %v3460_v58 = vpop.permute.xlu1 %3459 }
 0xedd   :  { %v2982_v25 = vpop.f32.mrf.mxu1  ;;  %v3053_v20 = vpop.f32.mrf.mxu0 }
 0xede   :  { %v3057_v37 = vadd.f32 %v2982_v25, %v317_v34  ;;  %v3071_v6 = vadd.f32 %v6678_v26, %v3053_v20  ;;  %v3446_v34 = vld [vmem:[#allocation3 + $0x78] sm:$0xff]  ;;  %v3445_v25 = vld [vmem:[#allocation3 + $0x70] sm:$0xff] }
 0xedf   :  { %v4544_v59 = vpop.f32.mrf.mxu0  ;;  %v2984_v48 = vpop.f32.mrf.mxu1  ;;  %3524 = vperm.xlu1 %4650, %v3446_v34   ;;  %3519 = vperm.xlu0 %4649, %v3445_v25   ;;  %v7120_v20 = vld [vmem:[#allocation69_spill] sm:$0xff] }
 0xee0   :  { %v3623_v46 = vmul.f32 -1.442695, %v3057_v37  ;;  %v3058_v53 = vadd.f32 %v2984_v48, %v319_v47  ;;  %v323_v37 = vadd.f32 %v7120_v20, %v7114_v36  ;;  %v7121_v47 = vld [vmem:[#allocation70_spill] sm:$0xff] }
 0xee2   :  { %4791 = vpow2.f32 %v3623_v46  ;;  %v3624_v0 = vmul.f32 -1.442695, %v3058_v53 }
 0xee4   :  { %4793 = vpow2.f32 %v3624_v0  ;;  %v3465_v0 = vpop.permute.xlu1 %3464 }
 0xeef   :  { %v4792_v8 = vpop.eup %4791 }
 0xef0   :  { %v3065_v51 = vadd.f32 1.0, %v4792_v8  ;;  %v6860_v8 = vld [vmem:[%s6899_s6] ss:$0 sm:$0xff]  ;;  %s5050_s6 = smov [#allocation12]  }
 0xef1   :  { %v4794_v15 = vpop.eup %4793  ;;  %s3576_s11 = sshll.u32 %s5050_s6, 4  ;;  %s3577_s11 = int_to_ptr.vmem [resolvable:$true] %s3576_s11 }
 0xef2   :  { %4795 = vrcp.f32 %v3065_v51  ;;  %v3066_v50 = vadd.f32 1.0, %v4794_v15  ;;  %v3455_v51 = vpop.permute.xlu0 %3454  ;;  %s4989_s12 = scalar_lea.vmem %s3577_s11, 2048  ;;  %p4994_p7 = scmp.lt.s32.totalorder %s3577_s11, %s3577_s11 }
 0xef3   :  { %p4990_p6 = scmp.ne.s32.totalorder %s3577_s11, %s4989_s12  ;;  %p4995_p8 = scmp.lt.s32.totalorder %s4989_s12, %s4989_s12 }
 0xef4   :  { %4797 = vrcp.f32 %v3066_v50 }
 0xef5   :  { %p4996_p9 = por %p4995_p8, %p4994_p7 }
 0xef7   :  { %p4997_p10 = pnand %p4996_p9, %p4990_p6 }
 0xeff   :  { %v4796_v62 = vpop.eup %4795 }
 0xf00   :  { %v3072_v49 = vmul.f32 %v4796_v62, %v3071_v6 }
 0xf01   :  { %v4798_v39 = vpop.eup %4797 }
 0xf02   :  { %v3073_v40 = vadd.f32 %v3072_v49, %v7117_v27  ;;  %v3075_v63 = vsub.f32 1.0, %v4798_v39  ;;  %v3077_v31 = vmul.f32 %v4798_v39, %v6762_v32 }
 0xf04   :  { %4799 = vtanh.f32 %v3073_v40  ;;  %v3470_v40 = vpop.permute.xlu0 %3469 }
 0xf11   :  { %v4800_v23 = vpop.eup %4799 }
 0xf12   :  { %v3076_v2 = vmul.f32 %v4800_v23, %v3075_v63 }
 0xf14   :  { %v6842_v22 = vadd.f32 %v3077_v31, %v3076_v2  ;;  %v7122_v31 = vld [vmem:[#allocation52_spill] sm:$0xff] }
 0xf16   :  { %3079 = vst [vmem:[#allocation12 + $0x70] sm:$0xff] %v6842_v22  ;;  %3148 = vmatmul.mubr.f32.vlgmr.msra.gmra.mxu1 %v6842_v22  ;;  %4578 = vmatmul.mubr.f32.vlgmr.msra.gmra.mxu0 %v6842_v22 }
 0xf17   :  { %4581 = vmatpush3.msra.mxu1 %v6832_v4  ;;  %4612 = vmatprep.mubr.f32.mxu1 %v3247_v21  ;;  %v3248_v4 = vld [vmem:[#allocation12 + $0x8] sm:$0xff] }
 0xf18   :  { %4582 = vmatprep.subr.mxu1 %v3277_v13 }
 0xf19   :  { %4583 = vmatpush3.msra.mxu1 %v3277_v13 }
 0xf1a   :  { %4584 = vmatprep.subr.mxu1 %v3276_v41 }
 0xf1b   :  { %4585 = vmatpush3.msra.mxu1 %v3276_v41 }
 0xf1c   :  { %4586 = vmatprep.subr.mxu1 %v3275_v57 }
 0xf1d   :  { %4587 = vmatpush3.msra.mxu1 %v3275_v57 }
 0xf1e   :  { %4588 = vmatprep.subr.mxu1 %v3274_v55 }
 0xf1f   :  { %4589 = vmatpush3.msra.mxu1 %v3274_v55 }
 0xf20   :  { %4590 = vmatprep.subr.mxu1 %v3273_v61 }
 0xf21   :  { %4591 = vmatpush3.msra.mxu1 %v3273_v61 }
 0xf22   :  { %4592 = vmatprep.subr.mxu1 %v3272_v28 }
 0xf23   :  { %4593 = vmatpush3.msra.mxu1 %v3272_v28 }
 0xf24   :  { %4594 = vmatprep.subr.mxu1 %v3271_v30 }
 0xf25   :  { %4595 = vmatpush3.msra.mxu1 %v3271_v30  ;;  %v3480_v30 = vpop.permute.xlu0 %3479 }
 0xf26   :  { %4596 = vmatprep.subr.mxu1 %v3270_v17 }
 0xf27   :  { %4597 = vmatpush3.msra.mxu1 %v3270_v17 }
 0xf28   :  { %4598 = vmatprep.subr.mxu1 %v3269_v24 }
 0xf29   :  { %4599 = vmatpush3.msra.mxu1 %v3269_v24 }
 0xf2a   :  { %4600 = vmatprep.subr.mxu1 %v3268_v19 }
 0xf2b   :  { %4601 = vmatpush3.msra.mxu1 %v3268_v19 }
 0xf2c   :  { %4602 = vmatprep.subr.mxu1 %v3267_v56 }
 0xf2d   :  { %4603 = vmatpush3.msra.mxu1 %v3267_v56 }
 0xf2e   :  { %4604 = vmatprep.subr.mxu1 %v3266_v44 }
 0xf2f   :  { %4605 = vmatpush3.msra.mxu1 %v3266_v44 }
 0xf30   :  { %4606 = vmatprep.subr.mxu1 %v3265_v45 }
 0xf31   :  { %4607 = vmatpush3.msra.mxu1 %v3265_v45 }
 0xf32   :  { %4608 = vmatprep.subr.mxu1 %v3264_v54 }
 0xf33   :  { %4609 = vmatpush3.msra.mxu1 %v3264_v54 }
 0xf34   :  { %4610 = vmatprep.subr.mxu1 %v3263_v3 }
 0xf35   :  { %4611 = vmatpush3.msra.mxu1 %v3263_v3 }
 0xf36   :  { %4613 = vmatmul.mubr.f32.vlgmr.msra.gmra.mxu1 %v3248_v4 }
 0xf37   :  { %4615 = vmatprep.mubr.f32.mxu1 %v3249_v5 }
 0xf3a   :  { %4616 = vmatmul.mubr.f32.gmra.mxu1 %v3250_v7  ;;  %v3490_v7 = vpop.permute.xlu0 %3489 }
 0xf3b   :  { %4618 = vmatprep.mubr.f32.mxu1 %v3251_v9 }
 0xf3e   :  { %4619 = vmatmul.mubr.f32.gmra.mxu1 %v3252_v10 }
 0xf3f   :  { %4621 = vmatprep.mubr.f32.mxu1 %v3253_v12 }
 0xf42   :  { %4622 = vmatmul.mubr.f32.gmra.mxu1 %v3254_v11 }
 0xf43   :  { %4624 = vmatprep.mubr.f32.mxu1 %v3255_v14 }
 0xf46   :  { %4625 = vmatmul.mubr.f32.gmra.mxu1 %v3256_v1 }
 0xf47   :  { %4627 = vmatprep.mubr.f32.mxu1 %v7118_v18 }
 0xf4a   :  { %4628 = vmatmul.mubr.f32.gmra.mxu1 %v7119_v16 }
 0xf4b   :  { %4630 = vmatprep.mubr.f32.mxu1 %v6683_v42  ;;  %v325_v42 = vadd.f32 %v7121_v47, %v5492_v29  ;;  %v3475_v29 = vpop.permute.xlu1 %3474 }
 0xf4e   :  { %4631 = vmatmul.mubr.f32.gmra.mxu1 %v6762_v32 }
 0xf4f   :  { %4633 = vmatprep.mubr.f32.mxu1 %v6842_v22  ;;  %v3485_v55 = vpop.permute.xlu1 %3484 }
 0xf53   :  { %v3495_v54 = vpop.permute.xlu1 %3494 }
 0xf57   :  { %v3505_v16 = vpop.permute.xlu1 %3504 }
 0xfd6   :  { %v3149_v60 = vpop.f32.mrf.mxu1  ;;  %v3220_v35 = vpop.f32.mrf.mxu0 }
 0xfd7   :  { %v3224_v59 = vadd.f32 %v3149_v60, %v323_v37  ;;  %v3238_v6 = vadd.f32 %v6678_v26, %v3220_v35  ;;  %v3500_v35 = vpop.permute.xlu0 %3499 }
 0xfd8   :  { %v4579_v46 = vpop.f32.mrf.mxu0  ;;  %v3151_v33 = vpop.f32.mrf.mxu1 }
 0xfd9   :  { %v3625_v48 = vmul.f32 -1.442695, %v3224_v59  ;;  %v3225_v32 = vadd.f32 %v3151_v33, %v325_v42 }
 0xfdb   :  { %4801 = vpow2.f32 %v3625_v48  ;;  %v3626_v52 = vmul.f32 -1.442695, %v3225_v32 }
 0xfdd   :  { %4803 = vpow2.f32 %v3626_v52 }
 0xfe8   :  { %v4802_v43 = vpop.eup %4801 }
 0xfe9   :  { %v3232_v53 = vadd.f32 1.0, %v4802_v43 }
 0xfea   :  { %v4804_v36 = vpop.eup %4803 }
 0xfeb   :  { %4805 = vrcp.f32 %v3232_v53  ;;  %v3233_v15 = vadd.f32 1.0, %v4804_v36  ;;  %v3515_v53 = vpop.permute.xlu1 %3514 }
 0xfed   :  { %4807 = vrcp.f32 %v3233_v15 }
 0xff6   :  { %v4614_v50 = vpop.f32.mrf.mxu1 }
 0xff7   :  { %v3358_v62 = vadd.f32 %v4614_v50, %v6860_v8 }
 0xff8   :  { %v4806_v49 = vpop.eup %4805  ;;  %v3352_v27 = vpop.f32.mrf.mxu1 }
 0xff9   :  { %v3239_v39 = vmul.f32 %v4806_v49, %v3238_v6  ;;  %v3528_v63 = vadd.f32 %v3455_v51, %v3358_v62  ;;  %v3353_v23 = vadd.f32 %v6860_v8, %v3352_v27 }
 0xffa   :  { %v4617_v2 = vpop.f32.mrf.mxu1  ;;  %v4808_v12 = vpop.eup %4807 }
 0xffb   :  { %v3240_v13 = vadd.f32 %v3239_v39, %v7122_v31  ;;  %3544 = vst [vmem:[#allocation11 + $0x8] sm:$0xff] %v3528_v63  ;;  %v3527_v21 = vadd.f32 %v3450_v38, %v3353_v23  ;;  %v3368_v41 = vadd.f32 %v4617_v2, %v6860_v8  ;;  %v3242_v34 = vsub.f32 1.0, %v4808_v12 }
 0xffc   :  { %v3362_v57 = vpop.f32.mrf.mxu1  ;;  %v3244_v46 = vmul.f32 %v4808_v12, %v6842_v22  ;;  %v3510_v22 = vpop.permute.xlu0 %3509 }
 0xffd   :  { %4809 = vtanh.f32 %v3240_v13  ;;  %3543 = vst [vmem:[#allocation11] sm:$0xff] %v3527_v21  ;;  %v3363_v26 = vadd.f32 %v6860_v8, %v3362_v57  ;;  %v3530_v61 = vadd.f32 %v3465_v0, %v3368_v41 }
 0xffe   :  { %v4620_v28 = vpop.f32.mrf.mxu1 }
 0xfff   :  { %v3529_v17 = vadd.f32 %v3460_v58, %v3363_v26  ;;  %v3378_v24 = vadd.f32 %v4620_v28, %v6860_v8  ;;  %3546 = vst [vmem:[#allocation11 + $0x18] sm:$0xff] %v3530_v61 }
0x1000   :  { %v3372_v19 = vpop.f32.mrf.mxu1 }
0x1001   :  { %3545 = vst [vmem:[#allocation11 + $0x10] sm:$0xff] %v3529_v17  ;;  %v3532_v56 = vadd.f32 %v3475_v29, %v3378_v24  ;;  %v3373_v44 = vadd.f32 %v6860_v8, %v3372_v19 }
0x1002   :  { %v4623_v45 = vpop.f32.mrf.mxu1 }
0x1003   :  { %3548 = vst [vmem:[#allocation11 + $0x28] sm:$0xff] %v3532_v56  ;;  %v3531_v3 = vadd.f32 %v3470_v40, %v3373_v44  ;;  %v3388_v4 = vadd.f32 %v4623_v45, %v6860_v8 }
0x1004   :  { %v3382_v5 = vpop.f32.mrf.mxu1 }
0x1005   :  { %3547 = vst [vmem:[#allocation11 + $0x20] sm:$0xff] %v3531_v3  ;;  %v3534_v9 = vadd.f32 %v3485_v55, %v3388_v4  ;;  %v3383_v10 = vadd.f32 %v6860_v8, %v3382_v5 }
0x1006   :  { %v4626_v11 = vpop.f32.mrf.mxu1 }
0x1007   :  { %3550 = vst [vmem:[#allocation11 + $0x38] sm:$0xff] %v3534_v9  ;;  %v3533_v14 = vadd.f32 %v3480_v30, %v3383_v10  ;;  %v3398_v1 = vadd.f32 %v4626_v11, %v6860_v8 }
0x1008   :  { %v3392_v18 = vpop.f32.mrf.mxu1 }
0x1009   :  { %3549 = vst [vmem:[#allocation11 + $0x30] sm:$0xff] %v3533_v14  ;;  %v3536_v25 = vadd.f32 %v3495_v54, %v3398_v1  ;;  %v3393_v20 = vadd.f32 %v6860_v8, %v3392_v18 }
0x100a   :  { %v4810_v37 = vpop.eup %4809  ;;  %v4629_v60 = vpop.f32.mrf.mxu1 }
0x100b   :  { %v3243_v59 = vmul.f32 %v4810_v37, %v3242_v34  ;;  %3552 = vst [vmem:[#allocation11 + $0x48] sm:$0xff] %v3536_v25  ;;  %v3535_v48 = vadd.f32 %v3490_v7, %v3393_v20  ;;  %v3408_v33 = vadd.f32 %v4629_v60, %v6860_v8 }
0x100c   :  { %v3402_v47 = vpop.f32.mrf.mxu1 }
0x100d   :  { %v3245_v42 = vadd.f32 %v3244_v46, %v3243_v59  ;;  %3551 = vst [vmem:[#allocation11 + $0x40] sm:$0xff] %v3535_v48  ;;  %v3538_v32 = vadd.f32 %v3505_v16, %v3408_v33  ;;  %v3403_v52 = vadd.f32 %v6860_v8, %v3402_v47 }
0x100e   :  { %v4632_v43 = vpop.f32.mrf.mxu1 }
0x100f   :  { %3246 = vst [vmem:[#allocation12 + $0x78] sm:$0xff] %v3245_v42  ;;  %3554 = vst [vmem:[#allocation11 + $0x58] sm:$0xff] %v3538_v32  ;;  %v3537_v58 = vadd.f32 %v3500_v35, %v3403_v52  ;;  %v3418_v38 = vadd.f32 %v4632_v43, %v6860_v8  ;;  %4634 = vmatmul.mubr.f32.gmra.mxu1 %v3245_v42 }
0x1010   :  { %v3412_v0 = vpop.f32.mrf.mxu1 }
0x1011   :  { %3553 = vst [vmem:[#allocation11 + $0x50] sm:$0xff] %v3537_v58  ;;  %v3540_v36 = vadd.f32 %v3515_v53, %v3418_v38  ;;  %v3413_v51 = vadd.f32 %v6860_v8, %v3412_v0 }
0x1013   :  { %3556 = vst [vmem:[#allocation11 + $0x68] sm:$0xff] %v3540_v36  ;;  %v3539_v15 = vadd.f32 %v3510_v22, %v3413_v51 }
0x1015   :  { %3555 = vst [vmem:[#allocation11 + $0x60] sm:$0xff] %v3539_v15 }
0x1016   :  { %5000 = shalt.err (!%p4997_p10)
}
0x1017   :  { %3582 = dma.vmem_to_hbm [thread:$0]  %s3577_s11, 2048, %s6901_s8, [#allocation13], %s5043_s15, %s5043_s15, %s5044_s16   ;;  %v3525_v6 = vpop.permute.xlu1 %3524  ;;  %v3520_v40 = vpop.permute.xlu0 %3519 }
0x1018   :  { %s5051_s17 = smov [#allocation11]  }
0x1019   :  { %s3564_s18 = sshll.u32 %s5051_s17, 4  ;;  %s3565_s18 = int_to_ptr.vmem [resolvable:$true] %s3564_s18 }
0x101a   :  { %s5009_s1 = scalar_lea.vmem %s3565_s18, 2048  ;;  %p5014_p12 = scmp.lt.s32.totalorder %s3565_s18, %s3565_s18 }
0x101b   :  { %p5010_p11 = scmp.ne.s32.totalorder %s3565_s18, %s5009_s1  ;;  %p5015_p13 = scmp.lt.s32.totalorder %s5009_s1, %s5009_s1 }
0x101d   :  { %p5016_p0 = por %p5015_p13, %p5014_p12 }
0x101f   :  { %p5017_p1 = pnand %p5016_p0, %p5010_p11 }
0x10cf   :  { %v4635_v50 = vpop.f32.mrf.mxu1 }
0x10d0   :  { %v3428_v29 = vadd.f32 %v4635_v50, %v6860_v8 }
0x10d1   :  { %v3422_v62 = vpop.f32.mrf.mxu1 }
0x10d2   :  { %v3542_v49 = vadd.f32 %v3525_v6, %v3428_v29  ;;  %v3423_v27 = vadd.f32 %v6860_v8, %v3422_v62 }
0x10d4   :  { %3558 = vst [vmem:[#allocation11 + $0x78] sm:$0xff] %v3542_v49  ;;  %v3541_v39 = vadd.f32 %v3520_v40, %v3423_v27 }
0x10d6   :  { %3557 = vst [vmem:[#allocation11 + $0x70] sm:$0xff] %v3541_v39 }
0x10d7   :  { %5020 = shalt.err (!%p5017_p1)
}
0x10d8   :  { %3570 = dma.vmem_to_hbm [thread:$0]  %s3565_s18, 2048, %s6900_s7, [#allocation5], %s5043_s15, %s5043_s15, %s5044_s16  }
0x10d9   :  { %5035 = dma.done.wait [#allocation5], 2048  }
0x10da   :  { %5036 = vsyncadd [#allocation5], 4294965248 }
0x10db   :  { %5037 = dma.done.wait [#allocation13], 2048  }
0x10dc   :  { %5038 = vsyncadd [#allocation13], 4294965248 }
0x10dd   :  { %3589 = vsyncpa [#allocation4], 1 }
0x10de   :  { %3590 = vsyncpa [#allocation7], 1 }
0x10df   :  { %3591 = vsyncpa [#allocation10], 1 }
0x10e0   :  { %3592 = vsyncpa [#allocation5], 1 }
0x10e1   :  { %3593 = vsyncpa [#allocation13], 1 }

</bundles_post_ra>
